<compile_context>
chip_gen: v5e
topology: v5e:2x2
jax: 0.10.0
libtpu: 0.0.40
codegen_flags: <defaults>
</compile_context>

<pallas_src>
import functools

import jax
import jax.numpy as jnp
from jax.experimental import pallas as pl
from jax.experimental.pallas import tpu as pltpu

EMBED = 8      # config.model.embedding_size
HIDDEN = 16    # config.model.hidden_size
SEQ_LEN = 8    # config.dataset.seq_len == rollout_length == T
OUT_FEAT = 2   # x, y

# Row offsets inside the packed weight slab ([W_ROWS, 4*HIDDEN], zero-padded).
# Gate columns inside each 4H block are stored in (i, f, o, g) order.
_OFF_W_ENC = 0       # rows 0..23 : fused encoder [W_ih; W_hh]  ([E+H, 4H])
_OFF_B_ENC = 24      # row 24     : encoder bias (b_ih + b_hh)
_OFF_W_DEC = 32      # rows 32..55: fused decoder [W_ih; W_hh]
_OFF_B_DEC = 56      # row 56     : decoder bias
_OFF_SMALL = 64      # 8 rows x E : wres(2) wgcn(2) bgcn(1) lin1_w(2) lin1_b(1)
_OFF_LIN2W = 72      # [H, 2] (cols 2:64 zero)
_OFF_LIN2B = 88      # [1, 2] (cols 2:64 zero)
W_ROWS = 96
W_COLS = 4 * HIDDEN


def _lstm_step(w_xh, b, x, h, c):
    """PyTorch LSTMCell semantics; fused x/h matmul; gates packed (i, f, o, g)."""
    H = HIDDEN
    xh = jnp.concatenate([x, h], axis=1)                        # [TB, E+H]
    gates = jnp.dot(xh, w_xh, preferred_element_type=jnp.float32) + b
    sig = jax.nn.sigmoid(gates[:, :3 * H])                      # i, f, o contiguous
    g_g = jnp.tanh(gates[:, 3 * H:])
    i_g = sig[:, 0:H]
    f_g = sig[:, H:2 * H]
    o_g = sig[:, 2 * H:3 * H]
    c_new = f_g * c + i_g * g_g
    h_new = o_g * jnp.tanh(c_new)
    return h_new, c_new


def stgae_kernel(xy_ref, w_ref, out_ref, *, n_agents, seq_len):
    # xy_ref : [TB, 2*N*T]  local-frame coords, lanes ordered (coord, agent, time)
    # w_ref  : [W_ROWS, 4H] packed weights
    # out_ref: [TB, 2R + H] cols 0:2R = decoder outputs (decode order, x/y pairs),
    #                       cols 2R:  = encoder final hidden state (latent)
    N, T = n_agents, seq_len
    E, H, R = EMBED, HIDDEN, SEQ_LEN
    TB = xy_ref.shape[0]

    w = w_ref[...]
    w_enc = w[_OFF_W_ENC:_OFF_W_ENC + E + H, :]
    b_enc = w[_OFF_B_ENC:_OFF_B_ENC + 1, :]
    w_dec = w[_OFF_W_DEC:_OFF_W_DEC + E + H, :]
    b_dec = w[_OFF_B_DEC:_OFF_B_DEC + 1, :]
    small = w[_OFF_SMALL:_OFF_SMALL + 8, :E]
    wres_x, wres_y = small[0:1, :], small[1:2, :]
    wgcn_x, wgcn_y = small[2:3, :], small[3:4, :]
    bgcn = small[4:5, :]
    l1w_x, l1w_y = small[5:6, :], small[6:7, :]
    l1b = small[7:8, :]
    lin2_w_full = w[_OFF_LIN2W:_OFF_LIN2W + H, :]               # cols >= 2 are zero
    lin2_b_full = w[_OFF_LIN2B:_OFF_LIN2B + 1, :]

    xy = xy_ref[...]
    xs = [xy[:, j * T:(j + 1) * T] for j in range(N)]           # agent-j x over time  [TB, T]
    ys = [xy[:, (N + j) * T:(N + j + 1) * T] for j in range(N)]  # agent-j y over time [TB, T]

    # ---- spatial GCN, vectorized over the time lanes (computed once) ----
    # Fully connected per-(sample, timestep) graph; edge weight min(1/dist, 1),
    # self-loop weight 1 (GCNConv add_self_loops), symmetric normalization.
    pair_w = {}
    for j in range(N):
        for k in range(j + 1, N):
            dx = xs[j] - xs[k]
            dy = ys[j] - ys[k]
            # min(rsqrt(d2), 1) == min(1/dist, 1) incl. the dist==0 -> 1e-6 case
            pair_w[(j, k)] = jnp.minimum(jax.lax.rsqrt(dx * dx + dy * dy), 1.0)

    def ew(a, b_):
        return pair_w[(a, b_)] if a < b_ else pair_w[(b_, a)]

    d_inv = []
    for j in range(N):
        deg = jnp.ones_like(xs[0])                              # self loop
        for k in range(N):
            if k != j:
                deg = deg + ew(j, k)
        d_inv.append(jax.lax.rsqrt(deg))                        # [TB, T]

    # Agent-0 aggregation (select_agent_only), factored: agg0 = d0 * (sx*Wx + sy*Wy)
    sx = d_inv[0] * xs[0]
    sy = d_inv[0] * ys[0]
    for j in range(1, N):
        cj = ew(0, j) * d_inv[j]
        sx = sx + cj * xs[j]
        sy = sy + cj * ys[j]
    ax = d_inv[0] * sx                                          # [TB, T]
    ay = d_inv[0] * sy
    x0, y0 = xs[0], ys[0]

    # ---- temporal LSTM encoder ----
    h = jnp.zeros((TB, H), jnp.float32)
    c = jnp.zeros((TB, H), jnp.float32)
    for t in range(T):
        emb = jnp.maximum(ax[:, t:t + 1] * wgcn_x + ay[:, t:t + 1] * wgcn_y
                          + x0[:, t:t + 1] * wres_x + y0[:, t:t + 1] * wres_y
                          + bgcn, 0.0)                          # [TB, E]
        h, c = _lstm_step(w_enc, b_enc, emb, h, c)

    latent = h                                                  # encoder final hidden state

    # ---- autoregressive LSTM decoder (teacher forcing ratio = 0.0) ----
    dec_x = x0[:, T - 1:T]                                      # agent-0 last local position
    dec_y = y0[:, T - 1:T]
    h_d, c_d = h, c
    outs = []
    for _ in range(R):
        e = jnp.maximum(dec_x * l1w_x + dec_y * l1w_y + l1b, 0.0)   # [TB, E]
        h_d, c_d = _lstm_step(w_dec, b_dec, e, h_d, c_d)
        out_full = (jnp.dot(h_d, lin2_w_full, preferred_element_type=jnp.float32)
                    + lin2_b_full)                              # only first 2 cols nonzero
        dec_x = out_full[:, 0:1]
        dec_y = out_full[:, 1:2]
        outs.append(out_full[:, 0:OUT_FEAT])

    # Single lane-dense store: [reg (2R cols) | latent (H cols)].
    out_ref[...] = jnp.concatenate(outs + [latent], axis=1)


def _round_up(x, m):
    return ((x + m - 1) // m) * m


def _choose_tb(B, block_batch):
    # Aim for >= 4 grid blocks on realistic batches so v7x's 2 TensorCores both
    # get work and input DMA hides behind compute; floor of 8 for the sublane tile.
    tb = _round_up(max(1, -(-B // 4)), 8)
    return max(8, min(tb, block_batch))


def _reorder_gates(m):
    """(i, f, g, o) -> (i, f, o, g) along the last (4H) axis."""
    H = HIDDEN
    return jnp.concatenate([m[..., 0:2 * H], m[..., 3 * H:4 * H], m[..., 2 * H:3 * H]],
                           axis=-1)


def _pack_weights(params):
    slab = jnp.zeros((W_ROWS, W_COLS), jnp.float32)
    w_enc = jnp.concatenate([params["wih_e"], params["whh_e"]], axis=0)   # [E+H, 4H]
    w_dec = jnp.concatenate([params["wih_d"], params["whh_d"]], axis=0)
    slab = slab.at[_OFF_W_ENC:_OFF_W_ENC + EMBED + HIDDEN, :].set(_reorder_gates(w_enc))
    slab = slab.at[_OFF_B_ENC:_OFF_B_ENC + 1, :].set(_reorder_gates(params["b_e"]))
    slab = slab.at[_OFF_W_DEC:_OFF_W_DEC + EMBED + HIDDEN, :].set(_reorder_gates(w_dec))
    slab = slab.at[_OFF_B_DEC:_OFF_B_DEC + 1, :].set(_reorder_gates(params["b_d"]))
    small = jnp.concatenate([params["wres"], params["wgcn"], params["bgcn"],
                             params["lin1_w"], params["lin1_b"]], axis=0)  # [8, E]
    slab = slab.at[_OFF_SMALL:_OFF_SMALL + 8, :EMBED].set(small)
    slab = slab.at[_OFF_LIN2W:_OFF_LIN2W + HIDDEN, :OUT_FEAT].set(params["lin2_w"])
    slab = slab.at[_OFF_LIN2B:_OFF_LIN2B + 1, :OUT_FEAT].set(params["lin2_b"])
    return slab


def stgae_forward(gt_preds, rot, orig, params, block_batch=256):
    """gt_preds: [B, N, T, 2] global coords; rot: [B, 2, 2]; orig: [B, 2]."""
    B, N, T, F = gt_preds.shape
    assert F == OUT_FEAT and T == SEQ_LEN
    H, R = HIDDEN, SEQ_LEN

    gt_preds = gt_preds.astype(jnp.float32)
    rot = rot.astype(jnp.float32)
    orig = orig.astype(jnp.float32)

    # ---- hoisted coordinate-frame transform: local = rot @ (x - orig) ----
    diff = gt_preds - orig[:, None, None, :]
    x_local = jnp.einsum('bed,bntd->bnte', rot, diff)                  # [B, N, T, 2]
    # Lane-dense layout: flatten (coord, agent, time) onto the last axis.
    xy = jnp.transpose(x_local, (0, 3, 1, 2)).reshape(B, 2 * N * T)    # [B, 2*N*T]

    TB = _choose_tb(B, block_batch)
    B_pad = _round_up(B, TB)
    if B_pad != B:
        xy = jnp.pad(xy, ((0, B_pad - B), (0, 0)))

    w_slab = _pack_weights(params)
    lanes = 2 * N * T
    out_cols = 2 * R + H

    kernel = functools.partial(stgae_kernel, n_agents=N, seq_len=T)
    out = pl.pallas_call(
        kernel,
        grid=(B_pad // TB,),
        in_specs=[pl.BlockSpec((TB, lanes), lambda b: (b, 0)),         # local trajectories
                  pl.BlockSpec((W_ROWS, W_COLS), lambda b: (0, 0))],   # packed weight slab
        out_specs=pl.BlockSpec((TB, out_cols), lambda b: (b, 0)),      # [reg | latent]
        out_shape=jax.ShapeDtypeStruct((B_pad, out_cols), jnp.float32),
        compiler_params=pltpu.CompilerParams(
            dimension_semantics=("parallel",),        # batch blocks independent (v7x: 2 TCs)
            vmem_limit_bytes=32 * 1024 * 1024),
    )(xy, w_slab)

    # ---- hoisted post-processing: time flip, rotate back to global, translate ----
    reg_local = out[:B, :2 * R].reshape(B, R, OUT_FEAT)                # decode order
    latent = out[:B, 2 * R:]

    reg_flipped = reg_local[:, ::-1, :]                                # reg.flip([1])
    reg_global = jnp.einsum('brd,bde->bre', reg_flipped, rot) + orig[:, None, :]

    # Agents n > 0: zeros @ rot + orig == orig (matches the reference module).
    reg_full = jnp.broadcast_to(orig[:, None, None, None, :], (B, N, 1, R, OUT_FEAT))
    reg_full = reg_full.at[:, 0, 0, :, :].set(reg_global)              # [B, N, 1, R, 2]

    latent = latent[:, None, :]                                        # [B, 1, H]

    # The torch module returns per-sample Python lists; here the same data is
    # returned stacked along a leading batch axis (out["reg"][b] == torch reg[b]).
    return {"reg": reg_full, "latent_features": latent, "gt_preds": gt_preds}


def init_params(key):
    """Deterministic synthetic parameters matching the module's layer shapes
    (stored as [in, out], PyTorch (i,f,g,o) gate order; LSTM biases pre-summed)."""
    E, H = EMBED, HIDDEN
    ks = jax.random.split(key, 15)
    n = lambda k, shape, s=0.3: (jax.random.normal(k, shape) * s).astype(jnp.float32)
    return {
        "wres":   n(ks[0], (2, E)),                 # EncoderSpatial.residual (no bias)
        "wgcn":   n(ks[1], (2, E)),                 # GCNConv.lin.weight^T
        "bgcn":   n(ks[2], (1, E), 0.1),            # GCNConv.bias
        "wih_e":  n(ks[3], (E, 4 * H)),             # EncoderRNN.lstm1
        "whh_e":  n(ks[4], (H, 4 * H)),
        "b_e":    n(ks[5], (1, 4 * H), 0.1) + n(ks[6], (1, 4 * H), 0.1),
        "lin1_w": n(ks[7], (2, E)),                 # DecoderRNN.linear1
        "lin1_b": n(ks[8], (1, E), 0.1),
        "wih_d":  n(ks[9], (E, 4 * H)),             # DecoderRNN.lstm1
        "whh_d":  n(ks[10], (H, 4 * H)),
        "b_d":    n(ks[11], (1, 4 * H), 0.1) + n(ks[12], (1, 4 * H), 0.1),
        "lin2_w": n(ks[13], (H, 2)),                # DecoderRNN.linear2
        "lin2_b": n(ks[14], (1, 2), 0.1),
    }


if __name__ == "__main__":
    B, N, T = 2, 3, SEQ_LEN
    key = jax.random.PRNGKey(0)
    k_gt, k_orig, k_par = jax.random.split(key, 3)

    gt_preds = (jax.random.normal(k_gt, (B, N, T, OUT_FEAT)) * 2.0).astype(jnp.float32)
    angles = jnp.array([0.3, -1.1], dtype=jnp.float32)
    rot = jnp.stack(
        [jnp.stack([jnp.cos(angles), -jnp.sin(angles)], axis=-1),
         jnp.stack([jnp.sin(angles), jnp.cos(angles)], axis=-1)], axis=-2)  # [B,2,2]
    orig = (jax.random.normal(k_orig, (B, 2)) * 1.5).astype(jnp.float32)

    params = init_params(k_par)
    out = stgae_forward(gt_preds, rot, orig, params)
    jax.block_until_ready(out)
    print("KERNEL_OK")
</pallas_src>

<mosaic_0001>
module attributes {stable_mosaic.version = 11 : i64} {
  func.func @stgae_kernel(%arg0: i32, %arg1: memref<8x48xf32, #tpu.memory_space<vmem>>, %arg2: memref<96x64xf32, #tpu.memory_space<vmem>>, %arg3: memref<8x32xf32, #tpu.memory_space<vmem>>) attributes {dimension_semantics = [#tpu.dimension_semantics<parallel>], iteration_bounds = array<i64: 1>, scalar_prefetch = 0 : i64, scratch_operands = 0 : i64, tpu.core_type = #tpu.core_type<tc>, window_params = [{transform_indices = @transform_0, window_bounds = array<i64: 8, 48>}, {pipeline_mode = #tpu.pipeline_mode<synchronous>, transform_indices = @transform_1, window_bounds = array<i64: 96, 64>}, {transform_indices = @transform_2, window_bounds = array<i64: 8, 32>}]} {
    %c0 = arith.constant 0 : index
    %c0_0 = arith.constant 0 : index
    %0 = vector.load %arg2[%c0, %c0_0] : memref<96x64xf32, #tpu.memory_space<vmem>>, vector<96x64xf32>
    %1 = vector.extract_strided_slice %0 {offsets = [0, 0], sizes = [24, 64], strides = [1, 1]} : vector<96x64xf32> to vector<24x64xf32>
    %2 = vector.extract_strided_slice %0 {offsets = [24, 0], sizes = [1, 64], strides = [1, 1]} : vector<96x64xf32> to vector<1x64xf32>
    %3 = vector.extract_strided_slice %0 {offsets = [32, 0], sizes = [24, 64], strides = [1, 1]} : vector<96x64xf32> to vector<24x64xf32>
    %4 = vector.extract_strided_slice %0 {offsets = [56, 0], sizes = [1, 64], strides = [1, 1]} : vector<96x64xf32> to vector<1x64xf32>
    %5 = vector.extract_strided_slice %0 {offsets = [64, 0], sizes = [8, 8], strides = [1, 1]} : vector<96x64xf32> to vector<8x8xf32>
    %6 = vector.extract_strided_slice %5 {offsets = [0, 0], sizes = [1, 8], strides = [1, 1]} : vector<8x8xf32> to vector<1x8xf32>
    %7 = vector.extract_strided_slice %5 {offsets = [1, 0], sizes = [1, 8], strides = [1, 1]} : vector<8x8xf32> to vector<1x8xf32>
    %8 = vector.extract_strided_slice %5 {offsets = [2, 0], sizes = [1, 8], strides = [1, 1]} : vector<8x8xf32> to vector<1x8xf32>
    %9 = vector.extract_strided_slice %5 {offsets = [3, 0], sizes = [1, 8], strides = [1, 1]} : vector<8x8xf32> to vector<1x8xf32>
    %10 = vector.extract_strided_slice %5 {offsets = [4, 0], sizes = [1, 8], strides = [1, 1]} : vector<8x8xf32> to vector<1x8xf32>
    %11 = vector.extract_strided_slice %5 {offsets = [5, 0], sizes = [1, 8], strides = [1, 1]} : vector<8x8xf32> to vector<1x8xf32>
    %12 = vector.extract_strided_slice %5 {offsets = [6, 0], sizes = [1, 8], strides = [1, 1]} : vector<8x8xf32> to vector<1x8xf32>
    %13 = vector.extract_strided_slice %5 {offsets = [7, 0], sizes = [1, 8], strides = [1, 1]} : vector<8x8xf32> to vector<1x8xf32>
    %14 = vector.extract_strided_slice %0 {offsets = [72, 0], sizes = [16, 64], strides = [1, 1]} : vector<96x64xf32> to vector<16x64xf32>
    %15 = vector.extract_strided_slice %0 {offsets = [88, 0], sizes = [1, 64], strides = [1, 1]} : vector<96x64xf32> to vector<1x64xf32>
    %c0_1 = arith.constant 0 : index
    %c0_2 = arith.constant 0 : index
    %16 = vector.load %arg1[%c0_1, %c0_2] : memref<8x48xf32, #tpu.memory_space<vmem>>, vector<8x48xf32>
    %17 = vector.extract_strided_slice %16 {offsets = [0, 0], sizes = [8, 8], strides = [1, 1]} : vector<8x48xf32> to vector<8x8xf32>
    %18 = vector.extract_strided_slice %16 {offsets = [0, 8], sizes = [8, 8], strides = [1, 1]} : vector<8x48xf32> to vector<8x8xf32>
    %19 = vector.extract_strided_slice %16 {offsets = [0, 16], sizes = [8, 8], strides = [1, 1]} : vector<8x48xf32> to vector<8x8xf32>
    %20 = vector.extract_strided_slice %16 {offsets = [0, 24], sizes = [8, 8], strides = [1, 1]} : vector<8x48xf32> to vector<8x8xf32>
    %21 = vector.extract_strided_slice %16 {offsets = [0, 32], sizes = [8, 8], strides = [1, 1]} : vector<8x48xf32> to vector<8x8xf32>
    %22 = vector.extract_strided_slice %16 {offsets = [0, 40], sizes = [8, 8], strides = [1, 1]} : vector<8x48xf32> to vector<8x8xf32>
    %23 = arith.subf %17, %18 : vector<8x8xf32>
    %24 = arith.subf %20, %21 : vector<8x8xf32>
    %25 = arith.mulf %23, %23 : vector<8x8xf32>
    %26 = arith.mulf %24, %24 : vector<8x8xf32>
    %27 = arith.addf %25, %26 : vector<8x8xf32>
    %28 = math.rsqrt %27 : vector<8x8xf32>
    %cst = arith.constant 1.000000e+00 : f32
    %29 = vector.broadcast %cst : f32 to vector<8x8xf32>
    %30 = arith.minimumf %28, %29 : vector<8x8xf32>
    %31 = arith.subf %17, %19 : vector<8x8xf32>
    %32 = arith.subf %20, %22 : vector<8x8xf32>
    %33 = arith.mulf %31, %31 : vector<8x8xf32>
    %34 = arith.mulf %32, %32 : vector<8x8xf32>
    %35 = arith.addf %33, %34 : vector<8x8xf32>
    %36 = math.rsqrt %35 : vector<8x8xf32>
    %cst_3 = arith.constant 1.000000e+00 : f32
    %37 = vector.broadcast %cst_3 : f32 to vector<8x8xf32>
    %38 = arith.minimumf %36, %37 : vector<8x8xf32>
    %39 = arith.subf %18, %19 : vector<8x8xf32>
    %40 = arith.subf %21, %22 : vector<8x8xf32>
    %41 = arith.mulf %39, %39 : vector<8x8xf32>
    %42 = arith.mulf %40, %40 : vector<8x8xf32>
    %43 = arith.addf %41, %42 : vector<8x8xf32>
    %44 = math.rsqrt %43 : vector<8x8xf32>
    %cst_4 = arith.constant 1.000000e+00 : f32
    %45 = vector.broadcast %cst_4 : f32 to vector<8x8xf32>
    %46 = arith.minimumf %44, %45 : vector<8x8xf32>
    %cst_5 = arith.constant 1.000000e+00 : f32
    %47 = vector.broadcast %cst_5 : f32 to vector<8x8xf32>
    %48 = arith.addf %47, %30 : vector<8x8xf32>
    %49 = arith.addf %48, %38 : vector<8x8xf32>
    %50 = math.rsqrt %49 : vector<8x8xf32>
    %cst_6 = arith.constant 1.000000e+00 : f32
    %51 = vector.broadcast %cst_6 : f32 to vector<8x8xf32>
    %52 = arith.addf %51, %30 : vector<8x8xf32>
    %53 = arith.addf %52, %46 : vector<8x8xf32>
    %54 = math.rsqrt %53 : vector<8x8xf32>
    %cst_7 = arith.constant 1.000000e+00 : f32
    %55 = vector.broadcast %cst_7 : f32 to vector<8x8xf32>
    %56 = arith.addf %55, %38 : vector<8x8xf32>
    %57 = arith.addf %56, %46 : vector<8x8xf32>
    %58 = math.rsqrt %57 : vector<8x8xf32>
    %59 = arith.mulf %50, %17 : vector<8x8xf32>
    %60 = arith.mulf %50, %20 : vector<8x8xf32>
    %61 = arith.mulf %30, %54 : vector<8x8xf32>
    %62 = arith.mulf %61, %18 : vector<8x8xf32>
    %63 = arith.addf %59, %62 : vector<8x8xf32>
    %64 = arith.mulf %61, %21 : vector<8x8xf32>
    %65 = arith.addf %60, %64 : vector<8x8xf32>
    %66 = arith.mulf %38, %58 : vector<8x8xf32>
    %67 = arith.mulf %66, %19 : vector<8x8xf32>
    %68 = arith.addf %63, %67 : vector<8x8xf32>
    %69 = arith.mulf %66, %22 : vector<8x8xf32>
    %70 = arith.addf %65, %69 : vector<8x8xf32>
    %71 = arith.mulf %50, %68 : vector<8x8xf32>
    %72 = arith.mulf %50, %70 : vector<8x8xf32>
    %cst_8 = arith.constant 0.000000e+00 : f32
    %73 = vector.broadcast %cst_8 : f32 to vector<8x16xf32>
    %cst_9 = arith.constant 0.000000e+00 : f32
    %74 = vector.broadcast %cst_9 : f32 to vector<8x16xf32>
    %75 = vector.extract_strided_slice %71 {offsets = [0, 0], sizes = [8, 1], strides = [1, 1]} : vector<8x8xf32> to vector<8x1xf32>
    %76 = vector.broadcast %75 : vector<8x1xf32> to vector<8x8xf32>
    %77 = vector.broadcast %8 : vector<1x8xf32> to vector<8x8xf32>
    %78 = arith.mulf %76, %77 : vector<8x8xf32>
    %79 = vector.extract_strided_slice %72 {offsets = [0, 0], sizes = [8, 1], strides = [1, 1]} : vector<8x8xf32> to vector<8x1xf32>
    %80 = vector.broadcast %79 : vector<8x1xf32> to vector<8x8xf32>
    %81 = vector.broadcast %9 : vector<1x8xf32> to vector<8x8xf32>
    %82 = arith.mulf %80, %81 : vector<8x8xf32>
    %83 = arith.addf %78, %82 : vector<8x8xf32>
    %84 = vector.extract_strided_slice %17 {offsets = [0, 0], sizes = [8, 1], strides = [1, 1]} : vector<8x8xf32> to vector<8x1xf32>
    %85 = vector.broadcast %84 : vector<8x1xf32> to vector<8x8xf32>
    %86 = vector.broadcast %6 : vector<1x8xf32> to vector<8x8xf32>
    %87 = arith.mulf %85, %86 : vector<8x8xf32>
    %88 = arith.addf %83, %87 : vector<8x8xf32>
    %89 = vector.extract_strided_slice %20 {offsets = [0, 0], sizes = [8, 1], strides = [1, 1]} : vector<8x8xf32> to vector<8x1xf32>
    %90 = vector.broadcast %89 : vector<8x1xf32> to vector<8x8xf32>
    %91 = vector.broadcast %7 : vector<1x8xf32> to vector<8x8xf32>
    %92 = arith.mulf %90, %91 : vector<8x8xf32>
    %93 = arith.addf %88, %92 : vector<8x8xf32>
    %94 = vector.broadcast %10 : vector<1x8xf32> to vector<8x8xf32>
    %95 = arith.addf %93, %94 : vector<8x8xf32>
    %cst_10 = arith.constant 0.000000e+00 : f32
    %96 = vector.broadcast %cst_10 : f32 to vector<8x8xf32>
    %97 = arith.maximumf %95, %96 : vector<8x8xf32>
    %98 = tpu.concatenate %97, %73 in 1 : vector<8x8xf32>, vector<8x16xf32> -> vector<8x24xf32>
    %cst_11 = arith.constant dense<0.000000e+00> : vector<8x64xf32>
    %99 = tpu.matmul %98, %1, %cst_11 {dimension_numbers = #tpu.dot_dimension_numbers<[1], [0], [0], [1], [0, 0, 1, 1], [], []>} : vector<8x24xf32>, vector<24x64xf32>, vector<8x64xf32> -> vector<8x64xf32>
    %100 = vector.broadcast %2 : vector<1x64xf32> to vector<8x64xf32>
    %101 = arith.addf %99, %100 : vector<8x64xf32>
    %102 = vector.extract_strided_slice %101 {offsets = [0, 0], sizes = [8, 48], strides = [1, 1]} : vector<8x64xf32> to vector<8x48xf32>
    %103 = arith.negf %102 : vector<8x48xf32>
    %104 = math.exp %103 : vector<8x48xf32>
    %cst_12 = arith.constant 1.000000e+00 : f32
    %105 = vector.broadcast %cst_12 : f32 to vector<8x48xf32>
    %106 = arith.addf %105, %104 : vector<8x48xf32>
    %107 = arith.divf %105, %106 : vector<8x48xf32>
    %108 = vector.extract_strided_slice %101 {offsets = [0, 48], sizes = [8, 16], strides = [1, 1]} : vector<8x64xf32> to vector<8x16xf32>
    %109 = math.tanh %108 : vector<8x16xf32>
    %110 = vector.extract_strided_slice %107 {offsets = [0, 0], sizes = [8, 16], strides = [1, 1]} : vector<8x48xf32> to vector<8x16xf32>
    %111 = vector.extract_strided_slice %107 {offsets = [0, 16], sizes = [8, 16], strides = [1, 1]} : vector<8x48xf32> to vector<8x16xf32>
    %112 = vector.extract_strided_slice %107 {offsets = [0, 32], sizes = [8, 16], strides = [1, 1]} : vector<8x48xf32> to vector<8x16xf32>
    %113 = arith.mulf %111, %74 : vector<8x16xf32>
    %114 = arith.mulf %110, %109 : vector<8x16xf32>
    %115 = arith.addf %113, %114 : vector<8x16xf32>
    %116 = math.tanh %115 : vector<8x16xf32>
    %117 = arith.mulf %112, %116 : vector<8x16xf32>
    %118 = vector.extract_strided_slice %71 {offsets = [0, 1], sizes = [8, 1], strides = [1, 1]} : vector<8x8xf32> to vector<8x1xf32>
    %119 = vector.broadcast %118 : vector<8x1xf32> to vector<8x8xf32>
    %120 = vector.broadcast %8 : vector<1x8xf32> to vector<8x8xf32>
    %121 = arith.mulf %119, %120 : vector<8x8xf32>
    %122 = vector.extract_strided_slice %72 {offsets = [0, 1], sizes = [8, 1], strides = [1, 1]} : vector<8x8xf32> to vector<8x1xf32>
    %123 = vector.broadcast %122 : vector<8x1xf32> to vector<8x8xf32>
    %124 = vector.broadcast %9 : vector<1x8xf32> to vector<8x8xf32>
    %125 = arith.mulf %123, %124 : vector<8x8xf32>
    %126 = arith.addf %121, %125 : vector<8x8xf32>
    %127 = vector.extract_strided_slice %17 {offsets = [0, 1], sizes = [8, 1], strides = [1, 1]} : vector<8x8xf32> to vector<8x1xf32>
    %128 = vector.broadcast %127 : vector<8x1xf32> to vector<8x8xf32>
    %129 = vector.broadcast %6 : vector<1x8xf32> to vector<8x8xf32>
    %130 = arith.mulf %128, %129 : vector<8x8xf32>
    %131 = arith.addf %126, %130 : vector<8x8xf32>
    %132 = vector.extract_strided_slice %20 {offsets = [0, 1], sizes = [8, 1], strides = [1, 1]} : vector<8x8xf32> to vector<8x1xf32>
    %133 = vector.broadcast %132 : vector<8x1xf32> to vector<8x8xf32>
    %134 = vector.broadcast %7 : vector<1x8xf32> to vector<8x8xf32>
    %135 = arith.mulf %133, %134 : vector<8x8xf32>
    %136 = arith.addf %131, %135 : vector<8x8xf32>
    %137 = vector.broadcast %10 : vector<1x8xf32> to vector<8x8xf32>
    %138 = arith.addf %136, %137 : vector<8x8xf32>
    %cst_13 = arith.constant 0.000000e+00 : f32
    %139 = vector.broadcast %cst_13 : f32 to vector<8x8xf32>
    %140 = arith.maximumf %138, %139 : vector<8x8xf32>
    %141 = tpu.concatenate %140, %117 in 1 : vector<8x8xf32>, vector<8x16xf32> -> vector<8x24xf32>
    %cst_14 = arith.constant dense<0.000000e+00> : vector<8x64xf32>
    %142 = tpu.matmul %141, %1, %cst_14 {dimension_numbers = #tpu.dot_dimension_numbers<[1], [0], [0], [1], [0, 0, 1, 1], [], []>} : vector<8x24xf32>, vector<24x64xf32>, vector<8x64xf32> -> vector<8x64xf32>
    %143 = vector.broadcast %2 : vector<1x64xf32> to vector<8x64xf32>
    %144 = arith.addf %142, %143 : vector<8x64xf32>
    %145 = vector.extract_strided_slice %144 {offsets = [0, 0], sizes = [8, 48], strides = [1, 1]} : vector<8x64xf32> to vector<8x48xf32>
    %146 = arith.negf %145 : vector<8x48xf32>
    %147 = math.exp %146 : vector<8x48xf32>
    %cst_15 = arith.constant 1.000000e+00 : f32
    %148 = vector.broadcast %cst_15 : f32 to vector<8x48xf32>
    %149 = arith.addf %148, %147 : vector<8x48xf32>
    %150 = arith.divf %148, %149 : vector<8x48xf32>
    %151 = vector.extract_strided_slice %144 {offsets = [0, 48], sizes = [8, 16], strides = [1, 1]} : vector<8x64xf32> to vector<8x16xf32>
    %152 = math.tanh %151 : vector<8x16xf32>
    %153 = vector.extract_strided_slice %150 {offsets = [0, 0], sizes = [8, 16], strides = [1, 1]} : vector<8x48xf32> to vector<8x16xf32>
    %154 = vector.extract_strided_slice %150 {offsets = [0, 16], sizes = [8, 16], strides = [1, 1]} : vector<8x48xf32> to vector<8x16xf32>
    %155 = vector.extract_strided_slice %150 {offsets = [0, 32], sizes = [8, 16], strides = [1, 1]} : vector<8x48xf32> to vector<8x16xf32>
    %156 = arith.mulf %154, %115 : vector<8x16xf32>
    %157 = arith.mulf %153, %152 : vector<8x16xf32>
    %158 = arith.addf %156, %157 : vector<8x16xf32>
    %159 = math.tanh %158 : vector<8x16xf32>
    %160 = arith.mulf %155, %159 : vector<8x16xf32>
    %161 = vector.extract_strided_slice %71 {offsets = [0, 2], sizes = [8, 1], strides = [1, 1]} : vector<8x8xf32> to vector<8x1xf32>
    %162 = vector.broadcast %161 : vector<8x1xf32> to vector<8x8xf32>
    %163 = vector.broadcast %8 : vector<1x8xf32> to vector<8x8xf32>
    %164 = arith.mulf %162, %163 : vector<8x8xf32>
    %165 = vector.extract_strided_slice %72 {offsets = [0, 2], sizes = [8, 1], strides = [1, 1]} : vector<8x8xf32> to vector<8x1xf32>
    %166 = vector.broadcast %165 : vector<8x1xf32> to vector<8x8xf32>
    %167 = vector.broadcast %9 : vector<1x8xf32> to vector<8x8xf32>
    %168 = arith.mulf %166, %167 : vector<8x8xf32>
    %169 = arith.addf %164, %168 : vector<8x8xf32>
    %170 = vector.extract_strided_slice %17 {offsets = [0, 2], sizes = [8, 1], strides = [1, 1]} : vector<8x8xf32> to vector<8x1xf32>
    %171 = vector.broadcast %170 : vector<8x1xf32> to vector<8x8xf32>
    %172 = vector.broadcast %6 : vector<1x8xf32> to vector<8x8xf32>
    %173 = arith.mulf %171, %172 : vector<8x8xf32>
    %174 = arith.addf %169, %173 : vector<8x8xf32>
    %175 = vector.extract_strided_slice %20 {offsets = [0, 2], sizes = [8, 1], strides = [1, 1]} : vector<8x8xf32> to vector<8x1xf32>
    %176 = vector.broadcast %175 : vector<8x1xf32> to vector<8x8xf32>
    %177 = vector.broadcast %7 : vector<1x8xf32> to vector<8x8xf32>
    %178 = arith.mulf %176, %177 : vector<8x8xf32>
    %179 = arith.addf %174, %178 : vector<8x8xf32>
    %180 = vector.broadcast %10 : vector<1x8xf32> to vector<8x8xf32>
    %181 = arith.addf %179, %180 : vector<8x8xf32>
    %cst_16 = arith.constant 0.000000e+00 : f32
    %182 = vector.broadcast %cst_16 : f32 to vector<8x8xf32>
    %183 = arith.maximumf %181, %182 : vector<8x8xf32>
    %184 = tpu.concatenate %183, %160 in 1 : vector<8x8xf32>, vector<8x16xf32> -> vector<8x24xf32>
    %cst_17 = arith.constant dense<0.000000e+00> : vector<8x64xf32>
    %185 = tpu.matmul %184, %1, %cst_17 {dimension_numbers = #tpu.dot_dimension_numbers<[1], [0], [0], [1], [0, 0, 1, 1], [], []>} : vector<8x24xf32>, vector<24x64xf32>, vector<8x64xf32> -> vector<8x64xf32>
    %186 = vector.broadcast %2 : vector<1x64xf32> to vector<8x64xf32>
    %187 = arith.addf %185, %186 : vector<8x64xf32>
    %188 = vector.extract_strided_slice %187 {offsets = [0, 0], sizes = [8, 48], strides = [1, 1]} : vector<8x64xf32> to vector<8x48xf32>
    %189 = arith.negf %188 : vector<8x48xf32>
    %190 = math.exp %189 : vector<8x48xf32>
    %cst_18 = arith.constant 1.000000e+00 : f32
    %191 = vector.broadcast %cst_18 : f32 to vector<8x48xf32>
    %192 = arith.addf %191, %190 : vector<8x48xf32>
    %193 = arith.divf %191, %192 : vector<8x48xf32>
    %194 = vector.extract_strided_slice %187 {offsets = [0, 48], sizes = [8, 16], strides = [1, 1]} : vector<8x64xf32> to vector<8x16xf32>
    %195 = math.tanh %194 : vector<8x16xf32>
    %196 = vector.extract_strided_slice %193 {offsets = [0, 0], sizes = [8, 16], strides = [1, 1]} : vector<8x48xf32> to vector<8x16xf32>
    %197 = vector.extract_strided_slice %193 {offsets = [0, 16], sizes = [8, 16], strides = [1, 1]} : vector<8x48xf32> to vector<8x16xf32>
    %198 = vector.extract_strided_slice %193 {offsets = [0, 32], sizes = [8, 16], strides = [1, 1]} : vector<8x48xf32> to vector<8x16xf32>
    %199 = arith.mulf %197, %158 : vector<8x16xf32>
    %200 = arith.mulf %196, %195 : vector<8x16xf32>
    %201 = arith.addf %199, %200 : vector<8x16xf32>
    %202 = math.tanh %201 : vector<8x16xf32>
    %203 = arith.mulf %198, %202 : vector<8x16xf32>
    %204 = vector.extract_strided_slice %71 {offsets = [0, 3], sizes = [8, 1], strides = [1, 1]} : vector<8x8xf32> to vector<8x1xf32>
    %205 = vector.broadcast %204 : vector<8x1xf32> to vector<8x8xf32>
    %206 = vector.broadcast %8 : vector<1x8xf32> to vector<8x8xf32>
    %207 = arith.mulf %205, %206 : vector<8x8xf32>
    %208 = vector.extract_strided_slice %72 {offsets = [0, 3], sizes = [8, 1], strides = [1, 1]} : vector<8x8xf32> to vector<8x1xf32>
    %209 = vector.broadcast %208 : vector<8x1xf32> to vector<8x8xf32>
    %210 = vector.broadcast %9 : vector<1x8xf32> to vector<8x8xf32>
    %211 = arith.mulf %209, %210 : vector<8x8xf32>
    %212 = arith.addf %207, %211 : vector<8x8xf32>
    %213 = vector.extract_strided_slice %17 {offsets = [0, 3], sizes = [8, 1], strides = [1, 1]} : vector<8x8xf32> to vector<8x1xf32>
    %214 = vector.broadcast %213 : vector<8x1xf32> to vector<8x8xf32>
    %215 = vector.broadcast %6 : vector<1x8xf32> to vector<8x8xf32>
    %216 = arith.mulf %214, %215 : vector<8x8xf32>
    %217 = arith.addf %212, %216 : vector<8x8xf32>
    %218 = vector.extract_strided_slice %20 {offsets = [0, 3], sizes = [8, 1], strides = [1, 1]} : vector<8x8xf32> to vector<8x1xf32>
    %219 = vector.broadcast %218 : vector<8x1xf32> to vector<8x8xf32>
    %220 = vector.broadcast %7 : vector<1x8xf32> to vector<8x8xf32>
    %221 = arith.mulf %219, %220 : vector<8x8xf32>
    %222 = arith.addf %217, %221 : vector<8x8xf32>
    %223 = vector.broadcast %10 : vector<1x8xf32> to vector<8x8xf32>
    %224 = arith.addf %222, %223 : vector<8x8xf32>
    %cst_19 = arith.constant 0.000000e+00 : f32
    %225 = vector.broadcast %cst_19 : f32 to vector<8x8xf32>
    %226 = arith.maximumf %224, %225 : vector<8x8xf32>
    %227 = tpu.concatenate %226, %203 in 1 : vector<8x8xf32>, vector<8x16xf32> -> vector<8x24xf32>
    %cst_20 = arith.constant dense<0.000000e+00> : vector<8x64xf32>
    %228 = tpu.matmul %227, %1, %cst_20 {dimension_numbers = #tpu.dot_dimension_numbers<[1], [0], [0], [1], [0, 0, 1, 1], [], []>} : vector<8x24xf32>, vector<24x64xf32>, vector<8x64xf32> -> vector<8x64xf32>
    %229 = vector.broadcast %2 : vector<1x64xf32> to vector<8x64xf32>
    %230 = arith.addf %228, %229 : vector<8x64xf32>
    %231 = vector.extract_strided_slice %230 {offsets = [0, 0], sizes = [8, 48], strides = [1, 1]} : vector<8x64xf32> to vector<8x48xf32>
    %232 = arith.negf %231 : vector<8x48xf32>
    %233 = math.exp %232 : vector<8x48xf32>
    %cst_21 = arith.constant 1.000000e+00 : f32
    %234 = vector.broadcast %cst_21 : f32 to vector<8x48xf32>
    %235 = arith.addf %234, %233 : vector<8x48xf32>
    %236 = arith.divf %234, %235 : vector<8x48xf32>
    %237 = vector.extract_strided_slice %230 {offsets = [0, 48], sizes = [8, 16], strides = [1, 1]} : vector<8x64xf32> to vector<8x16xf32>
    %238 = math.tanh %237 : vector<8x16xf32>
    %239 = vector.extract_strided_slice %236 {offsets = [0, 0], sizes = [8, 16], strides = [1, 1]} : vector<8x48xf32> to vector<8x16xf32>
    %240 = vector.extract_strided_slice %236 {offsets = [0, 16], sizes = [8, 16], strides = [1, 1]} : vector<8x48xf32> to vector<8x16xf32>
    %241 = vector.extract_strided_slice %236 {offsets = [0, 32], sizes = [8, 16], strides = [1, 1]} : vector<8x48xf32> to vector<8x16xf32>
    %242 = arith.mulf %240, %201 : vector<8x16xf32>
    %243 = arith.mulf %239, %238 : vector<8x16xf32>
    %244 = arith.addf %242, %243 : vector<8x16xf32>
    %245 = math.tanh %244 : vector<8x16xf32>
    %246 = arith.mulf %241, %245 : vector<8x16xf32>
    %247 = vector.extract_strided_slice %71 {offsets = [0, 4], sizes = [8, 1], strides = [1, 1]} : vector<8x8xf32> to vector<8x1xf32>
    %248 = vector.broadcast %247 : vector<8x1xf32> to vector<8x8xf32>
    %249 = vector.broadcast %8 : vector<1x8xf32> to vector<8x8xf32>
    %250 = arith.mulf %248, %249 : vector<8x8xf32>
    %251 = vector.extract_strided_slice %72 {offsets = [0, 4], sizes = [8, 1], strides = [1, 1]} : vector<8x8xf32> to vector<8x1xf32>
    %252 = vector.broadcast %251 : vector<8x1xf32> to vector<8x8xf32>
    %253 = vector.broadcast %9 : vector<1x8xf32> to vector<8x8xf32>
    %254 = arith.mulf %252, %253 : vector<8x8xf32>
    %255 = arith.addf %250, %254 : vector<8x8xf32>
    %256 = vector.extract_strided_slice %17 {offsets = [0, 4], sizes = [8, 1], strides = [1, 1]} : vector<8x8xf32> to vector<8x1xf32>
    %257 = vector.broadcast %256 : vector<8x1xf32> to vector<8x8xf32>
    %258 = vector.broadcast %6 : vector<1x8xf32> to vector<8x8xf32>
    %259 = arith.mulf %257, %258 : vector<8x8xf32>
    %260 = arith.addf %255, %259 : vector<8x8xf32>
    %261 = vector.extract_strided_slice %20 {offsets = [0, 4], sizes = [8, 1], strides = [1, 1]} : vector<8x8xf32> to vector<8x1xf32>
    %262 = vector.broadcast %261 : vector<8x1xf32> to vector<8x8xf32>
    %263 = vector.broadcast %7 : vector<1x8xf32> to vector<8x8xf32>
    %264 = arith.mulf %262, %263 : vector<8x8xf32>
    %265 = arith.addf %260, %264 : vector<8x8xf32>
    %266 = vector.broadcast %10 : vector<1x8xf32> to vector<8x8xf32>
    %267 = arith.addf %265, %266 : vector<8x8xf32>
    %cst_22 = arith.constant 0.000000e+00 : f32
    %268 = vector.broadcast %cst_22 : f32 to vector<8x8xf32>
    %269 = arith.maximumf %267, %268 : vector<8x8xf32>
    %270 = tpu.concatenate %269, %246 in 1 : vector<8x8xf32>, vector<8x16xf32> -> vector<8x24xf32>
    %cst_23 = arith.constant dense<0.000000e+00> : vector<8x64xf32>
    %271 = tpu.matmul %270, %1, %cst_23 {dimension_numbers = #tpu.dot_dimension_numbers<[1], [0], [0], [1], [0, 0, 1, 1], [], []>} : vector<8x24xf32>, vector<24x64xf32>, vector<8x64xf32> -> vector<8x64xf32>
    %272 = vector.broadcast %2 : vector<1x64xf32> to vector<8x64xf32>
    %273 = arith.addf %271, %272 : vector<8x64xf32>
    %274 = vector.extract_strided_slice %273 {offsets = [0, 0], sizes = [8, 48], strides = [1, 1]} : vector<8x64xf32> to vector<8x48xf32>
    %275 = arith.negf %274 : vector<8x48xf32>
    %276 = math.exp %275 : vector<8x48xf32>
    %cst_24 = arith.constant 1.000000e+00 : f32
    %277 = vector.broadcast %cst_24 : f32 to vector<8x48xf32>
    %278 = arith.addf %277, %276 : vector<8x48xf32>
    %279 = arith.divf %277, %278 : vector<8x48xf32>
    %280 = vector.extract_strided_slice %273 {offsets = [0, 48], sizes = [8, 16], strides = [1, 1]} : vector<8x64xf32> to vector<8x16xf32>
    %281 = math.tanh %280 : vector<8x16xf32>
    %282 = vector.extract_strided_slice %279 {offsets = [0, 0], sizes = [8, 16], strides = [1, 1]} : vector<8x48xf32> to vector<8x16xf32>
    %283 = vector.extract_strided_slice %279 {offsets = [0, 16], sizes = [8, 16], strides = [1, 1]} : vector<8x48xf32> to vector<8x16xf32>
    %284 = vector.extract_strided_slice %279 {offsets = [0, 32], sizes = [8, 16], strides = [1, 1]} : vector<8x48xf32> to vector<8x16xf32>
    %285 = arith.mulf %283, %244 : vector<8x16xf32>
    %286 = arith.mulf %282, %281 : vector<8x16xf32>
    %287 = arith.addf %285, %286 : vector<8x16xf32>
    %288 = math.tanh %287 : vector<8x16xf32>
    %289 = arith.mulf %284, %288 : vector<8x16xf32>
    %290 = vector.extract_strided_slice %71 {offsets = [0, 5], sizes = [8, 1], strides = [1, 1]} : vector<8x8xf32> to vector<8x1xf32>
    %291 = vector.broadcast %290 : vector<8x1xf32> to vector<8x8xf32>
    %292 = vector.broadcast %8 : vector<1x8xf32> to vector<8x8xf32>
    %293 = arith.mulf %291, %292 : vector<8x8xf32>
    %294 = vector.extract_strided_slice %72 {offsets = [0, 5], sizes = [8, 1], strides = [1, 1]} : vector<8x8xf32> to vector<8x1xf32>
    %295 = vector.broadcast %294 : vector<8x1xf32> to vector<8x8xf32>
    %296 = vector.broadcast %9 : vector<1x8xf32> to vector<8x8xf32>
    %297 = arith.mulf %295, %296 : vector<8x8xf32>
    %298 = arith.addf %293, %297 : vector<8x8xf32>
    %299 = vector.extract_strided_slice %17 {offsets = [0, 5], sizes = [8, 1], strides = [1, 1]} : vector<8x8xf32> to vector<8x1xf32>
    %300 = vector.broadcast %299 : vector<8x1xf32> to vector<8x8xf32>
    %301 = vector.broadcast %6 : vector<1x8xf32> to vector<8x8xf32>
    %302 = arith.mulf %300, %301 : vector<8x8xf32>
    %303 = arith.addf %298, %302 : vector<8x8xf32>
    %304 = vector.extract_strided_slice %20 {offsets = [0, 5], sizes = [8, 1], strides = [1, 1]} : vector<8x8xf32> to vector<8x1xf32>
    %305 = vector.broadcast %304 : vector<8x1xf32> to vector<8x8xf32>
    %306 = vector.broadcast %7 : vector<1x8xf32> to vector<8x8xf32>
    %307 = arith.mulf %305, %306 : vector<8x8xf32>
    %308 = arith.addf %303, %307 : vector<8x8xf32>
    %309 = vector.broadcast %10 : vector<1x8xf32> to vector<8x8xf32>
    %310 = arith.addf %308, %309 : vector<8x8xf32>
    %cst_25 = arith.constant 0.000000e+00 : f32
    %311 = vector.broadcast %cst_25 : f32 to vector<8x8xf32>
    %312 = arith.maximumf %310, %311 : vector<8x8xf32>
    %313 = tpu.concatenate %312, %289 in 1 : vector<8x8xf32>, vector<8x16xf32> -> vector<8x24xf32>
    %cst_26 = arith.constant dense<0.000000e+00> : vector<8x64xf32>
    %314 = tpu.matmul %313, %1, %cst_26 {dimension_numbers = #tpu.dot_dimension_numbers<[1], [0], [0], [1], [0, 0, 1, 1], [], []>} : vector<8x24xf32>, vector<24x64xf32>, vector<8x64xf32> -> vector<8x64xf32>
    %315 = vector.broadcast %2 : vector<1x64xf32> to vector<8x64xf32>
    %316 = arith.addf %314, %315 : vector<8x64xf32>
    %317 = vector.extract_strided_slice %316 {offsets = [0, 0], sizes = [8, 48], strides = [1, 1]} : vector<8x64xf32> to vector<8x48xf32>
    %318 = arith.negf %317 : vector<8x48xf32>
    %319 = math.exp %318 : vector<8x48xf32>
    %cst_27 = arith.constant 1.000000e+00 : f32
    %320 = vector.broadcast %cst_27 : f32 to vector<8x48xf32>
    %321 = arith.addf %320, %319 : vector<8x48xf32>
    %322 = arith.divf %320, %321 : vector<8x48xf32>
    %323 = vector.extract_strided_slice %316 {offsets = [0, 48], sizes = [8, 16], strides = [1, 1]} : vector<8x64xf32> to vector<8x16xf32>
    %324 = math.tanh %323 : vector<8x16xf32>
    %325 = vector.extract_strided_slice %322 {offsets = [0, 0], sizes = [8, 16], strides = [1, 1]} : vector<8x48xf32> to vector<8x16xf32>
    %326 = vector.extract_strided_slice %322 {offsets = [0, 16], sizes = [8, 16], strides = [1, 1]} : vector<8x48xf32> to vector<8x16xf32>
    %327 = vector.extract_strided_slice %322 {offsets = [0, 32], sizes = [8, 16], strides = [1, 1]} : vector<8x48xf32> to vector<8x16xf32>
    %328 = arith.mulf %326, %287 : vector<8x16xf32>
    %329 = arith.mulf %325, %324 : vector<8x16xf32>
    %330 = arith.addf %328, %329 : vector<8x16xf32>
    %331 = math.tanh %330 : vector<8x16xf32>
    %332 = arith.mulf %327, %331 : vector<8x16xf32>
    %333 = vector.extract_strided_slice %71 {offsets = [0, 6], sizes = [8, 1], strides = [1, 1]} : vector<8x8xf32> to vector<8x1xf32>
    %334 = vector.broadcast %333 : vector<8x1xf32> to vector<8x8xf32>
    %335 = vector.broadcast %8 : vector<1x8xf32> to vector<8x8xf32>
    %336 = arith.mulf %334, %335 : vector<8x8xf32>
    %337 = vector.extract_strided_slice %72 {offsets = [0, 6], sizes = [8, 1], strides = [1, 1]} : vector<8x8xf32> to vector<8x1xf32>
    %338 = vector.broadcast %337 : vector<8x1xf32> to vector<8x8xf32>
    %339 = vector.broadcast %9 : vector<1x8xf32> to vector<8x8xf32>
    %340 = arith.mulf %338, %339 : vector<8x8xf32>
    %341 = arith.addf %336, %340 : vector<8x8xf32>
    %342 = vector.extract_strided_slice %17 {offsets = [0, 6], sizes = [8, 1], strides = [1, 1]} : vector<8x8xf32> to vector<8x1xf32>
    %343 = vector.broadcast %342 : vector<8x1xf32> to vector<8x8xf32>
    %344 = vector.broadcast %6 : vector<1x8xf32> to vector<8x8xf32>
    %345 = arith.mulf %343, %344 : vector<8x8xf32>
    %346 = arith.addf %341, %345 : vector<8x8xf32>
    %347 = vector.extract_strided_slice %20 {offsets = [0, 6], sizes = [8, 1], strides = [1, 1]} : vector<8x8xf32> to vector<8x1xf32>
    %348 = vector.broadcast %347 : vector<8x1xf32> to vector<8x8xf32>
    %349 = vector.broadcast %7 : vector<1x8xf32> to vector<8x8xf32>
    %350 = arith.mulf %348, %349 : vector<8x8xf32>
    %351 = arith.addf %346, %350 : vector<8x8xf32>
    %352 = vector.broadcast %10 : vector<1x8xf32> to vector<8x8xf32>
    %353 = arith.addf %351, %352 : vector<8x8xf32>
    %cst_28 = arith.constant 0.000000e+00 : f32
    %354 = vector.broadcast %cst_28 : f32 to vector<8x8xf32>
    %355 = arith.maximumf %353, %354 : vector<8x8xf32>
    %356 = tpu.concatenate %355, %332 in 1 : vector<8x8xf32>, vector<8x16xf32> -> vector<8x24xf32>
    %cst_29 = arith.constant dense<0.000000e+00> : vector<8x64xf32>
    %357 = tpu.matmul %356, %1, %cst_29 {dimension_numbers = #tpu.dot_dimension_numbers<[1], [0], [0], [1], [0, 0, 1, 1], [], []>} : vector<8x24xf32>, vector<24x64xf32>, vector<8x64xf32> -> vector<8x64xf32>
    %358 = vector.broadcast %2 : vector<1x64xf32> to vector<8x64xf32>
    %359 = arith.addf %357, %358 : vector<8x64xf32>
    %360 = vector.extract_strided_slice %359 {offsets = [0, 0], sizes = [8, 48], strides = [1, 1]} : vector<8x64xf32> to vector<8x48xf32>
    %361 = arith.negf %360 : vector<8x48xf32>
    %362 = math.exp %361 : vector<8x48xf32>
    %cst_30 = arith.constant 1.000000e+00 : f32
    %363 = vector.broadcast %cst_30 : f32 to vector<8x48xf32>
    %364 = arith.addf %363, %362 : vector<8x48xf32>
    %365 = arith.divf %363, %364 : vector<8x48xf32>
    %366 = vector.extract_strided_slice %359 {offsets = [0, 48], sizes = [8, 16], strides = [1, 1]} : vector<8x64xf32> to vector<8x16xf32>
    %367 = math.tanh %366 : vector<8x16xf32>
    %368 = vector.extract_strided_slice %365 {offsets = [0, 0], sizes = [8, 16], strides = [1, 1]} : vector<8x48xf32> to vector<8x16xf32>
    %369 = vector.extract_strided_slice %365 {offsets = [0, 16], sizes = [8, 16], strides = [1, 1]} : vector<8x48xf32> to vector<8x16xf32>
    %370 = vector.extract_strided_slice %365 {offsets = [0, 32], sizes = [8, 16], strides = [1, 1]} : vector<8x48xf32> to vector<8x16xf32>
    %371 = arith.mulf %369, %330 : vector<8x16xf32>
    %372 = arith.mulf %368, %367 : vector<8x16xf32>
    %373 = arith.addf %371, %372 : vector<8x16xf32>
    %374 = math.tanh %373 : vector<8x16xf32>
    %375 = arith.mulf %370, %374 : vector<8x16xf32>
    %376 = vector.extract_strided_slice %71 {offsets = [0, 7], sizes = [8, 1], strides = [1, 1]} : vector<8x8xf32> to vector<8x1xf32>
    %377 = vector.broadcast %376 : vector<8x1xf32> to vector<8x8xf32>
    %378 = vector.broadcast %8 : vector<1x8xf32> to vector<8x8xf32>
    %379 = arith.mulf %377, %378 : vector<8x8xf32>
    %380 = vector.extract_strided_slice %72 {offsets = [0, 7], sizes = [8, 1], strides = [1, 1]} : vector<8x8xf32> to vector<8x1xf32>
    %381 = vector.broadcast %380 : vector<8x1xf32> to vector<8x8xf32>
    %382 = vector.broadcast %9 : vector<1x8xf32> to vector<8x8xf32>
    %383 = arith.mulf %381, %382 : vector<8x8xf32>
    %384 = arith.addf %379, %383 : vector<8x8xf32>
    %385 = vector.extract_strided_slice %17 {offsets = [0, 7], sizes = [8, 1], strides = [1, 1]} : vector<8x8xf32> to vector<8x1xf32>
    %386 = vector.broadcast %385 : vector<8x1xf32> to vector<8x8xf32>
    %387 = vector.broadcast %6 : vector<1x8xf32> to vector<8x8xf32>
    %388 = arith.mulf %386, %387 : vector<8x8xf32>
    %389 = arith.addf %384, %388 : vector<8x8xf32>
    %390 = vector.extract_strided_slice %20 {offsets = [0, 7], sizes = [8, 1], strides = [1, 1]} : vector<8x8xf32> to vector<8x1xf32>
    %391 = vector.broadcast %390 : vector<8x1xf32> to vector<8x8xf32>
    %392 = vector.broadcast %7 : vector<1x8xf32> to vector<8x8xf32>
    %393 = arith.mulf %391, %392 : vector<8x8xf32>
    %394 = arith.addf %389, %393 : vector<8x8xf32>
    %395 = vector.broadcast %10 : vector<1x8xf32> to vector<8x8xf32>
    %396 = arith.addf %394, %395 : vector<8x8xf32>
    %cst_31 = arith.constant 0.000000e+00 : f32
    %397 = vector.broadcast %cst_31 : f32 to vector<8x8xf32>
    %398 = arith.maximumf %396, %397 : vector<8x8xf32>
    %399 = tpu.concatenate %398, %375 in 1 : vector<8x8xf32>, vector<8x16xf32> -> vector<8x24xf32>
    %cst_32 = arith.constant dense<0.000000e+00> : vector<8x64xf32>
    %400 = tpu.matmul %399, %1, %cst_32 {dimension_numbers = #tpu.dot_dimension_numbers<[1], [0], [0], [1], [0, 0, 1, 1], [], []>} : vector<8x24xf32>, vector<24x64xf32>, vector<8x64xf32> -> vector<8x64xf32>
    %401 = vector.broadcast %2 : vector<1x64xf32> to vector<8x64xf32>
    %402 = arith.addf %400, %401 : vector<8x64xf32>
    %403 = vector.extract_strided_slice %402 {offsets = [0, 0], sizes = [8, 48], strides = [1, 1]} : vector<8x64xf32> to vector<8x48xf32>
    %404 = arith.negf %403 : vector<8x48xf32>
    %405 = math.exp %404 : vector<8x48xf32>
    %cst_33 = arith.constant 1.000000e+00 : f32
    %406 = vector.broadcast %cst_33 : f32 to vector<8x48xf32>
    %407 = arith.addf %406, %405 : vector<8x48xf32>
    %408 = arith.divf %406, %407 : vector<8x48xf32>
    %409 = vector.extract_strided_slice %402 {offsets = [0, 48], sizes = [8, 16], strides = [1, 1]} : vector<8x64xf32> to vector<8x16xf32>
    %410 = math.tanh %409 : vector<8x16xf32>
    %411 = vector.extract_strided_slice %408 {offsets = [0, 0], sizes = [8, 16], strides = [1, 1]} : vector<8x48xf32> to vector<8x16xf32>
    %412 = vector.extract_strided_slice %408 {offsets = [0, 16], sizes = [8, 16], strides = [1, 1]} : vector<8x48xf32> to vector<8x16xf32>
    %413 = vector.extract_strided_slice %408 {offsets = [0, 32], sizes = [8, 16], strides = [1, 1]} : vector<8x48xf32> to vector<8x16xf32>
    %414 = arith.mulf %412, %373 : vector<8x16xf32>
    %415 = arith.mulf %411, %410 : vector<8x16xf32>
    %416 = arith.addf %414, %415 : vector<8x16xf32>
    %417 = math.tanh %416 : vector<8x16xf32>
    %418 = arith.mulf %413, %417 : vector<8x16xf32>
    %419 = vector.extract_strided_slice %17 {offsets = [0, 7], sizes = [8, 1], strides = [1, 1]} : vector<8x8xf32> to vector<8x1xf32>
    %420 = vector.extract_strided_slice %20 {offsets = [0, 7], sizes = [8, 1], strides = [1, 1]} : vector<8x8xf32> to vector<8x1xf32>
    %421 = vector.broadcast %419 : vector<8x1xf32> to vector<8x8xf32>
    %422 = vector.broadcast %11 : vector<1x8xf32> to vector<8x8xf32>
    %423 = arith.mulf %421, %422 : vector<8x8xf32>
    %424 = vector.broadcast %420 : vector<8x1xf32> to vector<8x8xf32>
    %425 = vector.broadcast %12 : vector<1x8xf32> to vector<8x8xf32>
    %426 = arith.mulf %424, %425 : vector<8x8xf32>
    %427 = arith.addf %423, %426 : vector<8x8xf32>
    %428 = vector.broadcast %13 : vector<1x8xf32> to vector<8x8xf32>
    %429 = arith.addf %427, %428 : vector<8x8xf32>
    %cst_34 = arith.constant 0.000000e+00 : f32
    %430 = vector.broadcast %cst_34 : f32 to vector<8x8xf32>
    %431 = arith.maximumf %429, %430 : vector<8x8xf32>
    %432 = tpu.concatenate %431, %418 in 1 : vector<8x8xf32>, vector<8x16xf32> -> vector<8x24xf32>
    %cst_35 = arith.constant dense<0.000000e+00> : vector<8x64xf32>
    %433 = tpu.matmul %432, %3, %cst_35 {dimension_numbers = #tpu.dot_dimension_numbers<[1], [0], [0], [1], [0, 0, 1, 1], [], []>} : vector<8x24xf32>, vector<24x64xf32>, vector<8x64xf32> -> vector<8x64xf32>
    %434 = vector.broadcast %4 : vector<1x64xf32> to vector<8x64xf32>
    %435 = arith.addf %433, %434 : vector<8x64xf32>
    %436 = vector.extract_strided_slice %435 {offsets = [0, 0], sizes = [8, 48], strides = [1, 1]} : vector<8x64xf32> to vector<8x48xf32>
    %437 = arith.negf %436 : vector<8x48xf32>
    %438 = math.exp %437 : vector<8x48xf32>
    %cst_36 = arith.constant 1.000000e+00 : f32
    %439 = vector.broadcast %cst_36 : f32 to vector<8x48xf32>
    %440 = arith.addf %439, %438 : vector<8x48xf32>
    %441 = arith.divf %439, %440 : vector<8x48xf32>
    %442 = vector.extract_strided_slice %435 {offsets = [0, 48], sizes = [8, 16], strides = [1, 1]} : vector<8x64xf32> to vector<8x16xf32>
    %443 = math.tanh %442 : vector<8x16xf32>
    %444 = vector.extract_strided_slice %441 {offsets = [0, 0], sizes = [8, 16], strides = [1, 1]} : vector<8x48xf32> to vector<8x16xf32>
    %445 = vector.extract_strided_slice %441 {offsets = [0, 16], sizes = [8, 16], strides = [1, 1]} : vector<8x48xf32> to vector<8x16xf32>
    %446 = vector.extract_strided_slice %441 {offsets = [0, 32], sizes = [8, 16], strides = [1, 1]} : vector<8x48xf32> to vector<8x16xf32>
    %447 = arith.mulf %445, %416 : vector<8x16xf32>
    %448 = arith.mulf %444, %443 : vector<8x16xf32>
    %449 = arith.addf %447, %448 : vector<8x16xf32>
    %450 = math.tanh %449 : vector<8x16xf32>
    %451 = arith.mulf %446, %450 : vector<8x16xf32>
    %cst_37 = arith.constant dense<0.000000e+00> : vector<8x64xf32>
    %452 = tpu.matmul %451, %14, %cst_37 {dimension_numbers = #tpu.dot_dimension_numbers<[1], [0], [0], [1], [0, 0, 1, 1], [], []>} : vector<8x16xf32>, vector<16x64xf32>, vector<8x64xf32> -> vector<8x64xf32>
    %453 = vector.broadcast %15 : vector<1x64xf32> to vector<8x64xf32>
    %454 = arith.addf %452, %453 : vector<8x64xf32>
    %455 = vector.extract_strided_slice %454 {offsets = [0, 0], sizes = [8, 1], strides = [1, 1]} : vector<8x64xf32> to vector<8x1xf32>
    %456 = vector.extract_strided_slice %454 {offsets = [0, 1], sizes = [8, 1], strides = [1, 1]} : vector<8x64xf32> to vector<8x1xf32>
    %457 = vector.extract_strided_slice %454 {offsets = [0, 0], sizes = [8, 2], strides = [1, 1]} : vector<8x64xf32> to vector<8x2xf32>
    %458 = vector.broadcast %455 : vector<8x1xf32> to vector<8x8xf32>
    %459 = vector.broadcast %11 : vector<1x8xf32> to vector<8x8xf32>
    %460 = arith.mulf %458, %459 : vector<8x8xf32>
    %461 = vector.broadcast %456 : vector<8x1xf32> to vector<8x8xf32>
    %462 = vector.broadcast %12 : vector<1x8xf32> to vector<8x8xf32>
    %463 = arith.mulf %461, %462 : vector<8x8xf32>
    %464 = arith.addf %460, %463 : vector<8x8xf32>
    %465 = vector.broadcast %13 : vector<1x8xf32> to vector<8x8xf32>
    %466 = arith.addf %464, %465 : vector<8x8xf32>
    %cst_38 = arith.constant 0.000000e+00 : f32
    %467 = vector.broadcast %cst_38 : f32 to vector<8x8xf32>
    %468 = arith.maximumf %466, %467 : vector<8x8xf32>
    %469 = tpu.concatenate %468, %451 in 1 : vector<8x8xf32>, vector<8x16xf32> -> vector<8x24xf32>
    %cst_39 = arith.constant dense<0.000000e+00> : vector<8x64xf32>
    %470 = tpu.matmul %469, %3, %cst_39 {dimension_numbers = #tpu.dot_dimension_numbers<[1], [0], [0], [1], [0, 0, 1, 1], [], []>} : vector<8x24xf32>, vector<24x64xf32>, vector<8x64xf32> -> vector<8x64xf32>
    %471 = vector.broadcast %4 : vector<1x64xf32> to vector<8x64xf32>
    %472 = arith.addf %470, %471 : vector<8x64xf32>
    %473 = vector.extract_strided_slice %472 {offsets = [0, 0], sizes = [8, 48], strides = [1, 1]} : vector<8x64xf32> to vector<8x48xf32>
    %474 = arith.negf %473 : vector<8x48xf32>
    %475 = math.exp %474 : vector<8x48xf32>
    %cst_40 = arith.constant 1.000000e+00 : f32
    %476 = vector.broadcast %cst_40 : f32 to vector<8x48xf32>
    %477 = arith.addf %476, %475 : vector<8x48xf32>
    %478 = arith.divf %476, %477 : vector<8x48xf32>
    %479 = vector.extract_strided_slice %472 {offsets = [0, 48], sizes = [8, 16], strides = [1, 1]} : vector<8x64xf32> to vector<8x16xf32>
    %480 = math.tanh %479 : vector<8x16xf32>
    %481 = vector.extract_strided_slice %478 {offsets = [0, 0], sizes = [8, 16], strides = [1, 1]} : vector<8x48xf32> to vector<8x16xf32>
    %482 = vector.extract_strided_slice %478 {offsets = [0, 16], sizes = [8, 16], strides = [1, 1]} : vector<8x48xf32> to vector<8x16xf32>
    %483 = vector.extract_strided_slice %478 {offsets = [0, 32], sizes = [8, 16], strides = [1, 1]} : vector<8x48xf32> to vector<8x16xf32>
    %484 = arith.mulf %482, %449 : vector<8x16xf32>
    %485 = arith.mulf %481, %480 : vector<8x16xf32>
    %486 = arith.addf %484, %485 : vector<8x16xf32>
    %487 = math.tanh %486 : vector<8x16xf32>
    %488 = arith.mulf %483, %487 : vector<8x16xf32>
    %cst_41 = arith.constant dense<0.000000e+00> : vector<8x64xf32>
    %489 = tpu.matmul %488, %14, %cst_41 {dimension_numbers = #tpu.dot_dimension_numbers<[1], [0], [0], [1], [0, 0, 1, 1], [], []>} : vector<8x16xf32>, vector<16x64xf32>, vector<8x64xf32> -> vector<8x64xf32>
    %490 = vector.broadcast %15 : vector<1x64xf32> to vector<8x64xf32>
    %491 = arith.addf %489, %490 : vector<8x64xf32>
    %492 = vector.extract_strided_slice %491 {offsets = [0, 0], sizes = [8, 1], strides = [1, 1]} : vector<8x64xf32> to vector<8x1xf32>
    %493 = vector.extract_strided_slice %491 {offsets = [0, 1], sizes = [8, 1], strides = [1, 1]} : vector<8x64xf32> to vector<8x1xf32>
    %494 = vector.extract_strided_slice %491 {offsets = [0, 0], sizes = [8, 2], strides = [1, 1]} : vector<8x64xf32> to vector<8x2xf32>
    %495 = vector.broadcast %492 : vector<8x1xf32> to vector<8x8xf32>
    %496 = vector.broadcast %11 : vector<1x8xf32> to vector<8x8xf32>
    %497 = arith.mulf %495, %496 : vector<8x8xf32>
    %498 = vector.broadcast %493 : vector<8x1xf32> to vector<8x8xf32>
    %499 = vector.broadcast %12 : vector<1x8xf32> to vector<8x8xf32>
    %500 = arith.mulf %498, %499 : vector<8x8xf32>
    %501 = arith.addf %497, %500 : vector<8x8xf32>
    %502 = vector.broadcast %13 : vector<1x8xf32> to vector<8x8xf32>
    %503 = arith.addf %501, %502 : vector<8x8xf32>
    %cst_42 = arith.constant 0.000000e+00 : f32
    %504 = vector.broadcast %cst_42 : f32 to vector<8x8xf32>
    %505 = arith.maximumf %503, %504 : vector<8x8xf32>
    %506 = tpu.concatenate %505, %488 in 1 : vector<8x8xf32>, vector<8x16xf32> -> vector<8x24xf32>
    %cst_43 = arith.constant dense<0.000000e+00> : vector<8x64xf32>
    %507 = tpu.matmul %506, %3, %cst_43 {dimension_numbers = #tpu.dot_dimension_numbers<[1], [0], [0], [1], [0, 0, 1, 1], [], []>} : vector<8x24xf32>, vector<24x64xf32>, vector<8x64xf32> -> vector<8x64xf32>
    %508 = vector.broadcast %4 : vector<1x64xf32> to vector<8x64xf32>
    %509 = arith.addf %507, %508 : vector<8x64xf32>
    %510 = vector.extract_strided_slice %509 {offsets = [0, 0], sizes = [8, 48], strides = [1, 1]} : vector<8x64xf32> to vector<8x48xf32>
    %511 = arith.negf %510 : vector<8x48xf32>
    %512 = math.exp %511 : vector<8x48xf32>
    %cst_44 = arith.constant 1.000000e+00 : f32
    %513 = vector.broadcast %cst_44 : f32 to vector<8x48xf32>
    %514 = arith.addf %513, %512 : vector<8x48xf32>
    %515 = arith.divf %513, %514 : vector<8x48xf32>
    %516 = vector.extract_strided_slice %509 {offsets = [0, 48], sizes = [8, 16], strides = [1, 1]} : vector<8x64xf32> to vector<8x16xf32>
    %517 = math.tanh %516 : vector<8x16xf32>
    %518 = vector.extract_strided_slice %515 {offsets = [0, 0], sizes = [8, 16], strides = [1, 1]} : vector<8x48xf32> to vector<8x16xf32>
    %519 = vector.extract_strided_slice %515 {offsets = [0, 16], sizes = [8, 16], strides = [1, 1]} : vector<8x48xf32> to vector<8x16xf32>
    %520 = vector.extract_strided_slice %515 {offsets = [0, 32], sizes = [8, 16], strides = [1, 1]} : vector<8x48xf32> to vector<8x16xf32>
    %521 = arith.mulf %519, %486 : vector<8x16xf32>
    %522 = arith.mulf %518, %517 : vector<8x16xf32>
    %523 = arith.addf %521, %522 : vector<8x16xf32>
    %524 = math.tanh %523 : vector<8x16xf32>
    %525 = arith.mulf %520, %524 : vector<8x16xf32>
    %cst_45 = arith.constant dense<0.000000e+00> : vector<8x64xf32>
    %526 = tpu.matmul %525, %14, %cst_45 {dimension_numbers = #tpu.dot_dimension_numbers<[1], [0], [0], [1], [0, 0, 1, 1], [], []>} : vector<8x16xf32>, vector<16x64xf32>, vector<8x64xf32> -> vector<8x64xf32>
    %527 = vector.broadcast %15 : vector<1x64xf32> to vector<8x64xf32>
    %528 = arith.addf %526, %527 : vector<8x64xf32>
    %529 = vector.extract_strided_slice %528 {offsets = [0, 0], sizes = [8, 1], strides = [1, 1]} : vector<8x64xf32> to vector<8x1xf32>
    %530 = vector.extract_strided_slice %528 {offsets = [0, 1], sizes = [8, 1], strides = [1, 1]} : vector<8x64xf32> to vector<8x1xf32>
    %531 = vector.extract_strided_slice %528 {offsets = [0, 0], sizes = [8, 2], strides = [1, 1]} : vector<8x64xf32> to vector<8x2xf32>
    %532 = vector.broadcast %529 : vector<8x1xf32> to vector<8x8xf32>
    %533 = vector.broadcast %11 : vector<1x8xf32> to vector<8x8xf32>
    %534 = arith.mulf %532, %533 : vector<8x8xf32>
    %535 = vector.broadcast %530 : vector<8x1xf32> to vector<8x8xf32>
    %536 = vector.broadcast %12 : vector<1x8xf32> to vector<8x8xf32>
    %537 = arith.mulf %535, %536 : vector<8x8xf32>
    %538 = arith.addf %534, %537 : vector<8x8xf32>
    %539 = vector.broadcast %13 : vector<1x8xf32> to vector<8x8xf32>
    %540 = arith.addf %538, %539 : vector<8x8xf32>
    %cst_46 = arith.constant 0.000000e+00 : f32
    %541 = vector.broadcast %cst_46 : f32 to vector<8x8xf32>
    %542 = arith.maximumf %540, %541 : vector<8x8xf32>
    %543 = tpu.concatenate %542, %525 in 1 : vector<8x8xf32>, vector<8x16xf32> -> vector<8x24xf32>
    %cst_47 = arith.constant dense<0.000000e+00> : vector<8x64xf32>
    %544 = tpu.matmul %543, %3, %cst_47 {dimension_numbers = #tpu.dot_dimension_numbers<[1], [0], [0], [1], [0, 0, 1, 1], [], []>} : vector<8x24xf32>, vector<24x64xf32>, vector<8x64xf32> -> vector<8x64xf32>
    %545 = vector.broadcast %4 : vector<1x64xf32> to vector<8x64xf32>
    %546 = arith.addf %544, %545 : vector<8x64xf32>
    %547 = vector.extract_strided_slice %546 {offsets = [0, 0], sizes = [8, 48], strides = [1, 1]} : vector<8x64xf32> to vector<8x48xf32>
    %548 = arith.negf %547 : vector<8x48xf32>
    %549 = math.exp %548 : vector<8x48xf32>
    %cst_48 = arith.constant 1.000000e+00 : f32
    %550 = vector.broadcast %cst_48 : f32 to vector<8x48xf32>
    %551 = arith.addf %550, %549 : vector<8x48xf32>
    %552 = arith.divf %550, %551 : vector<8x48xf32>
    %553 = vector.extract_strided_slice %546 {offsets = [0, 48], sizes = [8, 16], strides = [1, 1]} : vector<8x64xf32> to vector<8x16xf32>
    %554 = math.tanh %553 : vector<8x16xf32>
    %555 = vector.extract_strided_slice %552 {offsets = [0, 0], sizes = [8, 16], strides = [1, 1]} : vector<8x48xf32> to vector<8x16xf32>
    %556 = vector.extract_strided_slice %552 {offsets = [0, 16], sizes = [8, 16], strides = [1, 1]} : vector<8x48xf32> to vector<8x16xf32>
    %557 = vector.extract_strided_slice %552 {offsets = [0, 32], sizes = [8, 16], strides = [1, 1]} : vector<8x48xf32> to vector<8x16xf32>
    %558 = arith.mulf %556, %523 : vector<8x16xf32>
    %559 = arith.mulf %555, %554 : vector<8x16xf32>
    %560 = arith.addf %558, %559 : vector<8x16xf32>
    %561 = math.tanh %560 : vector<8x16xf32>
    %562 = arith.mulf %557, %561 : vector<8x16xf32>
    %cst_49 = arith.constant dense<0.000000e+00> : vector<8x64xf32>
    %563 = tpu.matmul %562, %14, %cst_49 {dimension_numbers = #tpu.dot_dimension_numbers<[1], [0], [0], [1], [0, 0, 1, 1], [], []>} : vector<8x16xf32>, vector<16x64xf32>, vector<8x64xf32> -> vector<8x64xf32>
    %564 = vector.broadcast %15 : vector<1x64xf32> to vector<8x64xf32>
    %565 = arith.addf %563, %564 : vector<8x64xf32>
    %566 = vector.extract_strided_slice %565 {offsets = [0, 0], sizes = [8, 1], strides = [1, 1]} : vector<8x64xf32> to vector<8x1xf32>
    %567 = vector.extract_strided_slice %565 {offsets = [0, 1], sizes = [8, 1], strides = [1, 1]} : vector<8x64xf32> to vector<8x1xf32>
    %568 = vector.extract_strided_slice %565 {offsets = [0, 0], sizes = [8, 2], strides = [1, 1]} : vector<8x64xf32> to vector<8x2xf32>
    %569 = vector.broadcast %566 : vector<8x1xf32> to vector<8x8xf32>
    %570 = vector.broadcast %11 : vector<1x8xf32> to vector<8x8xf32>
    %571 = arith.mulf %569, %570 : vector<8x8xf32>
    %572 = vector.broadcast %567 : vector<8x1xf32> to vector<8x8xf32>
    %573 = vector.broadcast %12 : vector<1x8xf32> to vector<8x8xf32>
    %574 = arith.mulf %572, %573 : vector<8x8xf32>
    %575 = arith.addf %571, %574 : vector<8x8xf32>
    %576 = vector.broadcast %13 : vector<1x8xf32> to vector<8x8xf32>
    %577 = arith.addf %575, %576 : vector<8x8xf32>
    %cst_50 = arith.constant 0.000000e+00 : f32
    %578 = vector.broadcast %cst_50 : f32 to vector<8x8xf32>
    %579 = arith.maximumf %577, %578 : vector<8x8xf32>
    %580 = tpu.concatenate %579, %562 in 1 : vector<8x8xf32>, vector<8x16xf32> -> vector<8x24xf32>
    %cst_51 = arith.constant dense<0.000000e+00> : vector<8x64xf32>
    %581 = tpu.matmul %580, %3, %cst_51 {dimension_numbers = #tpu.dot_dimension_numbers<[1], [0], [0], [1], [0, 0, 1, 1], [], []>} : vector<8x24xf32>, vector<24x64xf32>, vector<8x64xf32> -> vector<8x64xf32>
    %582 = vector.broadcast %4 : vector<1x64xf32> to vector<8x64xf32>
    %583 = arith.addf %581, %582 : vector<8x64xf32>
    %584 = vector.extract_strided_slice %583 {offsets = [0, 0], sizes = [8, 48], strides = [1, 1]} : vector<8x64xf32> to vector<8x48xf32>
    %585 = arith.negf %584 : vector<8x48xf32>
    %586 = math.exp %585 : vector<8x48xf32>
    %cst_52 = arith.constant 1.000000e+00 : f32
    %587 = vector.broadcast %cst_52 : f32 to vector<8x48xf32>
    %588 = arith.addf %587, %586 : vector<8x48xf32>
    %589 = arith.divf %587, %588 : vector<8x48xf32>
    %590 = vector.extract_strided_slice %583 {offsets = [0, 48], sizes = [8, 16], strides = [1, 1]} : vector<8x64xf32> to vector<8x16xf32>
    %591 = math.tanh %590 : vector<8x16xf32>
    %592 = vector.extract_strided_slice %589 {offsets = [0, 0], sizes = [8, 16], strides = [1, 1]} : vector<8x48xf32> to vector<8x16xf32>
    %593 = vector.extract_strided_slice %589 {offsets = [0, 16], sizes = [8, 16], strides = [1, 1]} : vector<8x48xf32> to vector<8x16xf32>
    %594 = vector.extract_strided_slice %589 {offsets = [0, 32], sizes = [8, 16], strides = [1, 1]} : vector<8x48xf32> to vector<8x16xf32>
    %595 = arith.mulf %593, %560 : vector<8x16xf32>
    %596 = arith.mulf %592, %591 : vector<8x16xf32>
    %597 = arith.addf %595, %596 : vector<8x16xf32>
    %598 = math.tanh %597 : vector<8x16xf32>
    %599 = arith.mulf %594, %598 : vector<8x16xf32>
    %cst_53 = arith.constant dense<0.000000e+00> : vector<8x64xf32>
    %600 = tpu.matmul %599, %14, %cst_53 {dimension_numbers = #tpu.dot_dimension_numbers<[1], [0], [0], [1], [0, 0, 1, 1], [], []>} : vector<8x16xf32>, vector<16x64xf32>, vector<8x64xf32> -> vector<8x64xf32>
    %601 = vector.broadcast %15 : vector<1x64xf32> to vector<8x64xf32>
    %602 = arith.addf %600, %601 : vector<8x64xf32>
    %603 = vector.extract_strided_slice %602 {offsets = [0, 0], sizes = [8, 1], strides = [1, 1]} : vector<8x64xf32> to vector<8x1xf32>
    %604 = vector.extract_strided_slice %602 {offsets = [0, 1], sizes = [8, 1], strides = [1, 1]} : vector<8x64xf32> to vector<8x1xf32>
    %605 = vector.extract_strided_slice %602 {offsets = [0, 0], sizes = [8, 2], strides = [1, 1]} : vector<8x64xf32> to vector<8x2xf32>
    %606 = vector.broadcast %603 : vector<8x1xf32> to vector<8x8xf32>
    %607 = vector.broadcast %11 : vector<1x8xf32> to vector<8x8xf32>
    %608 = arith.mulf %606, %607 : vector<8x8xf32>
    %609 = vector.broadcast %604 : vector<8x1xf32> to vector<8x8xf32>
    %610 = vector.broadcast %12 : vector<1x8xf32> to vector<8x8xf32>
    %611 = arith.mulf %609, %610 : vector<8x8xf32>
    %612 = arith.addf %608, %611 : vector<8x8xf32>
    %613 = vector.broadcast %13 : vector<1x8xf32> to vector<8x8xf32>
    %614 = arith.addf %612, %613 : vector<8x8xf32>
    %cst_54 = arith.constant 0.000000e+00 : f32
    %615 = vector.broadcast %cst_54 : f32 to vector<8x8xf32>
    %616 = arith.maximumf %614, %615 : vector<8x8xf32>
    %617 = tpu.concatenate %616, %599 in 1 : vector<8x8xf32>, vector<8x16xf32> -> vector<8x24xf32>
    %cst_55 = arith.constant dense<0.000000e+00> : vector<8x64xf32>
    %618 = tpu.matmul %617, %3, %cst_55 {dimension_numbers = #tpu.dot_dimension_numbers<[1], [0], [0], [1], [0, 0, 1, 1], [], []>} : vector<8x24xf32>, vector<24x64xf32>, vector<8x64xf32> -> vector<8x64xf32>
    %619 = vector.broadcast %4 : vector<1x64xf32> to vector<8x64xf32>
    %620 = arith.addf %618, %619 : vector<8x64xf32>
    %621 = vector.extract_strided_slice %620 {offsets = [0, 0], sizes = [8, 48], strides = [1, 1]} : vector<8x64xf32> to vector<8x48xf32>
    %622 = arith.negf %621 : vector<8x48xf32>
    %623 = math.exp %622 : vector<8x48xf32>
    %cst_56 = arith.constant 1.000000e+00 : f32
    %624 = vector.broadcast %cst_56 : f32 to vector<8x48xf32>
    %625 = arith.addf %624, %623 : vector<8x48xf32>
    %626 = arith.divf %624, %625 : vector<8x48xf32>
    %627 = vector.extract_strided_slice %620 {offsets = [0, 48], sizes = [8, 16], strides = [1, 1]} : vector<8x64xf32> to vector<8x16xf32>
    %628 = math.tanh %627 : vector<8x16xf32>
    %629 = vector.extract_strided_slice %626 {offsets = [0, 0], sizes = [8, 16], strides = [1, 1]} : vector<8x48xf32> to vector<8x16xf32>
    %630 = vector.extract_strided_slice %626 {offsets = [0, 16], sizes = [8, 16], strides = [1, 1]} : vector<8x48xf32> to vector<8x16xf32>
    %631 = vector.extract_strided_slice %626 {offsets = [0, 32], sizes = [8, 16], strides = [1, 1]} : vector<8x48xf32> to vector<8x16xf32>
    %632 = arith.mulf %630, %597 : vector<8x16xf32>
    %633 = arith.mulf %629, %628 : vector<8x16xf32>
    %634 = arith.addf %632, %633 : vector<8x16xf32>
    %635 = math.tanh %634 : vector<8x16xf32>
    %636 = arith.mulf %631, %635 : vector<8x16xf32>
    %cst_57 = arith.constant dense<0.000000e+00> : vector<8x64xf32>
    %637 = tpu.matmul %636, %14, %cst_57 {dimension_numbers = #tpu.dot_dimension_numbers<[1], [0], [0], [1], [0, 0, 1, 1], [], []>} : vector<8x16xf32>, vector<16x64xf32>, vector<8x64xf32> -> vector<8x64xf32>
    %638 = vector.broadcast %15 : vector<1x64xf32> to vector<8x64xf32>
    %639 = arith.addf %637, %638 : vector<8x64xf32>
    %640 = vector.extract_strided_slice %639 {offsets = [0, 0], sizes = [8, 1], strides = [1, 1]} : vector<8x64xf32> to vector<8x1xf32>
    %641 = vector.extract_strided_slice %639 {offsets = [0, 1], sizes = [8, 1], strides = [1, 1]} : vector<8x64xf32> to vector<8x1xf32>
    %642 = vector.extract_strided_slice %639 {offsets = [0, 0], sizes = [8, 2], strides = [1, 1]} : vector<8x64xf32> to vector<8x2xf32>
    %643 = vector.broadcast %640 : vector<8x1xf32> to vector<8x8xf32>
    %644 = vector.broadcast %11 : vector<1x8xf32> to vector<8x8xf32>
    %645 = arith.mulf %643, %644 : vector<8x8xf32>
    %646 = vector.broadcast %641 : vector<8x1xf32> to vector<8x8xf32>
    %647 = vector.broadcast %12 : vector<1x8xf32> to vector<8x8xf32>
    %648 = arith.mulf %646, %647 : vector<8x8xf32>
    %649 = arith.addf %645, %648 : vector<8x8xf32>
    %650 = vector.broadcast %13 : vector<1x8xf32> to vector<8x8xf32>
    %651 = arith.addf %649, %650 : vector<8x8xf32>
    %cst_58 = arith.constant 0.000000e+00 : f32
    %652 = vector.broadcast %cst_58 : f32 to vector<8x8xf32>
    %653 = arith.maximumf %651, %652 : vector<8x8xf32>
    %654 = tpu.concatenate %653, %636 in 1 : vector<8x8xf32>, vector<8x16xf32> -> vector<8x24xf32>
    %cst_59 = arith.constant dense<0.000000e+00> : vector<8x64xf32>
    %655 = tpu.matmul %654, %3, %cst_59 {dimension_numbers = #tpu.dot_dimension_numbers<[1], [0], [0], [1], [0, 0, 1, 1], [], []>} : vector<8x24xf32>, vector<24x64xf32>, vector<8x64xf32> -> vector<8x64xf32>
    %656 = vector.broadcast %4 : vector<1x64xf32> to vector<8x64xf32>
    %657 = arith.addf %655, %656 : vector<8x64xf32>
    %658 = vector.extract_strided_slice %657 {offsets = [0, 0], sizes = [8, 48], strides = [1, 1]} : vector<8x64xf32> to vector<8x48xf32>
    %659 = arith.negf %658 : vector<8x48xf32>
    %660 = math.exp %659 : vector<8x48xf32>
    %cst_60 = arith.constant 1.000000e+00 : f32
    %661 = vector.broadcast %cst_60 : f32 to vector<8x48xf32>
    %662 = arith.addf %661, %660 : vector<8x48xf32>
    %663 = arith.divf %661, %662 : vector<8x48xf32>
    %664 = vector.extract_strided_slice %657 {offsets = [0, 48], sizes = [8, 16], strides = [1, 1]} : vector<8x64xf32> to vector<8x16xf32>
    %665 = math.tanh %664 : vector<8x16xf32>
    %666 = vector.extract_strided_slice %663 {offsets = [0, 0], sizes = [8, 16], strides = [1, 1]} : vector<8x48xf32> to vector<8x16xf32>
    %667 = vector.extract_strided_slice %663 {offsets = [0, 16], sizes = [8, 16], strides = [1, 1]} : vector<8x48xf32> to vector<8x16xf32>
    %668 = vector.extract_strided_slice %663 {offsets = [0, 32], sizes = [8, 16], strides = [1, 1]} : vector<8x48xf32> to vector<8x16xf32>
    %669 = arith.mulf %667, %634 : vector<8x16xf32>
    %670 = arith.mulf %666, %665 : vector<8x16xf32>
    %671 = arith.addf %669, %670 : vector<8x16xf32>
    %672 = math.tanh %671 : vector<8x16xf32>
    %673 = arith.mulf %668, %672 : vector<8x16xf32>
    %cst_61 = arith.constant dense<0.000000e+00> : vector<8x64xf32>
    %674 = tpu.matmul %673, %14, %cst_61 {dimension_numbers = #tpu.dot_dimension_numbers<[1], [0], [0], [1], [0, 0, 1, 1], [], []>} : vector<8x16xf32>, vector<16x64xf32>, vector<8x64xf32> -> vector<8x64xf32>
    %675 = vector.broadcast %15 : vector<1x64xf32> to vector<8x64xf32>
    %676 = arith.addf %674, %675 : vector<8x64xf32>
    %677 = vector.extract_strided_slice %676 {offsets = [0, 0], sizes = [8, 1], strides = [1, 1]} : vector<8x64xf32> to vector<8x1xf32>
    %678 = vector.extract_strided_slice %676 {offsets = [0, 1], sizes = [8, 1], strides = [1, 1]} : vector<8x64xf32> to vector<8x1xf32>
    %679 = vector.extract_strided_slice %676 {offsets = [0, 0], sizes = [8, 2], strides = [1, 1]} : vector<8x64xf32> to vector<8x2xf32>
    %680 = vector.broadcast %677 : vector<8x1xf32> to vector<8x8xf32>
    %681 = vector.broadcast %11 : vector<1x8xf32> to vector<8x8xf32>
    %682 = arith.mulf %680, %681 : vector<8x8xf32>
    %683 = vector.broadcast %678 : vector<8x1xf32> to vector<8x8xf32>
    %684 = vector.broadcast %12 : vector<1x8xf32> to vector<8x8xf32>
    %685 = arith.mulf %683, %684 : vector<8x8xf32>
    %686 = arith.addf %682, %685 : vector<8x8xf32>
    %687 = vector.broadcast %13 : vector<1x8xf32> to vector<8x8xf32>
    %688 = arith.addf %686, %687 : vector<8x8xf32>
    %cst_62 = arith.constant 0.000000e+00 : f32
    %689 = vector.broadcast %cst_62 : f32 to vector<8x8xf32>
    %690 = arith.maximumf %688, %689 : vector<8x8xf32>
    %691 = tpu.concatenate %690, %673 in 1 : vector<8x8xf32>, vector<8x16xf32> -> vector<8x24xf32>
    %cst_63 = arith.constant dense<0.000000e+00> : vector<8x64xf32>
    %692 = tpu.matmul %691, %3, %cst_63 {dimension_numbers = #tpu.dot_dimension_numbers<[1], [0], [0], [1], [0, 0, 1, 1], [], []>} : vector<8x24xf32>, vector<24x64xf32>, vector<8x64xf32> -> vector<8x64xf32>
    %693 = vector.broadcast %4 : vector<1x64xf32> to vector<8x64xf32>
    %694 = arith.addf %692, %693 : vector<8x64xf32>
    %695 = vector.extract_strided_slice %694 {offsets = [0, 0], sizes = [8, 48], strides = [1, 1]} : vector<8x64xf32> to vector<8x48xf32>
    %696 = arith.negf %695 : vector<8x48xf32>
    %697 = math.exp %696 : vector<8x48xf32>
    %cst_64 = arith.constant 1.000000e+00 : f32
    %698 = vector.broadcast %cst_64 : f32 to vector<8x48xf32>
    %699 = arith.addf %698, %697 : vector<8x48xf32>
    %700 = arith.divf %698, %699 : vector<8x48xf32>
    %701 = vector.extract_strided_slice %694 {offsets = [0, 48], sizes = [8, 16], strides = [1, 1]} : vector<8x64xf32> to vector<8x16xf32>
    %702 = math.tanh %701 : vector<8x16xf32>
    %703 = vector.extract_strided_slice %700 {offsets = [0, 0], sizes = [8, 16], strides = [1, 1]} : vector<8x48xf32> to vector<8x16xf32>
    %704 = vector.extract_strided_slice %700 {offsets = [0, 16], sizes = [8, 16], strides = [1, 1]} : vector<8x48xf32> to vector<8x16xf32>
    %705 = vector.extract_strided_slice %700 {offsets = [0, 32], sizes = [8, 16], strides = [1, 1]} : vector<8x48xf32> to vector<8x16xf32>
    %706 = arith.mulf %704, %671 : vector<8x16xf32>
    %707 = arith.mulf %703, %702 : vector<8x16xf32>
    %708 = arith.addf %706, %707 : vector<8x16xf32>
    %709 = math.tanh %708 : vector<8x16xf32>
    %710 = arith.mulf %705, %709 : vector<8x16xf32>
    %cst_65 = arith.constant dense<0.000000e+00> : vector<8x64xf32>
    %711 = tpu.matmul %710, %14, %cst_65 {dimension_numbers = #tpu.dot_dimension_numbers<[1], [0], [0], [1], [0, 0, 1, 1], [], []>} : vector<8x16xf32>, vector<16x64xf32>, vector<8x64xf32> -> vector<8x64xf32>
    %712 = vector.broadcast %15 : vector<1x64xf32> to vector<8x64xf32>
    %713 = arith.addf %711, %712 : vector<8x64xf32>
    %714 = vector.extract_strided_slice %713 {offsets = [0, 0], sizes = [8, 2], strides = [1, 1]} : vector<8x64xf32> to vector<8x2xf32>
    %715 = tpu.concatenate %457, %494, %531, %568, %605, %642, %679, %714, %418 in 1 : vector<8x2xf32>, vector<8x2xf32>, vector<8x2xf32>, vector<8x2xf32>, vector<8x2xf32>, vector<8x2xf32>, vector<8x2xf32>, vector<8x2xf32>, vector<8x16xf32> -> vector<8x32xf32>
    %c0_66 = arith.constant 0 : index
    %c0_67 = arith.constant 0 : index
    %716 = vector.load %arg3[%c0_66, %c0_67] : memref<8x32xf32, #tpu.memory_space<vmem>>, vector<8x32xf32>
    tpu.vector_store %arg3[%c0_66, %c0_67], %715 {strides = array<i32>} : memref<8x32xf32, #tpu.memory_space<vmem>>, vector<8x32xf32>,
    return
  }
  func.func @transform_0(%arg0: i32) -> (i32, i32) {
    %c0_i32 = arith.constant 0 : i32
    %c0_i32_0 = arith.constant 0 : i32
    return %arg0, %c0_i32 : i32, i32
  }
  func.func @transform_1(%arg0: i32) -> (i32, i32) {
    %c0_i32 = arith.constant 0 : i32
    %c0_i32_0 = arith.constant 0 : i32
    %c0_i32_1 = arith.constant 0 : i32
    return %c0_i32, %c0_i32_0 : i32, i32
  }
  func.func @transform_2(%arg0: i32) -> (i32, i32) {
    %c0_i32 = arith.constant 0 : i32
    %c0_i32_0 = arith.constant 0 : i32
    return %arg0, %c0_i32 : i32, i32
  }
}

</mosaic_0001>

<bundles_post_ra>
// kernel: tpu_custom_call.1
= control target key start
LH: loop header
LB: loop body
LE: loop exit
PB: predicated region body
PF: predicated region fallthrough
CT: control target
= control target key end

     0   :  { %s2520_s0 = inlined_call_operand.vmem [shape: f32[8,48], index: 0, kind: input, shape index: {}]   ;;  %s2521_s1 = inlined_call_operand.vmem [shape: f32[96,64], index: 1, kind: input, shape index: {}]   ;;  %s2522_s2 = inlined_call_operand.hbm [shape: f32[8,32], index: 2, kind: output, shape index: {}]  }
   0x1   :  { %v2065_v0 = vld [vmem:[%s2520_s0] sm:$0xff] }
   0x2   :  { %7 = vsyncpa [#allocation3], 0  ;;  %s2016_s11 = smov 120   ;;  %s2017_s12 = smov 112   ;;  %v2021_v30 = vmov 0   ;;  %vm162_vm15 = vcmask 64512  }
   0x3   :  { %26 = vrot.lane.b32.xlu0 %v2065_v0, %s2016_s11  ;;  %s2018_s13 = smov 104   ;;  %s2019_s14 = smov 96   ;;  %1806 = vset.pattern.permute.xlu2 %v2021_v30 }
   0x4   :  { %s2020_s15 = smov 88   ;;  %1807 = vset.pattern.permute.xlu0 %v2021_v30  ;;  %1808 = vset.pattern.permute.xlu1 %v2021_v30  ;;  %s2024_s26 = smov 80  }
   0x5   :  { %s2025_s27 = smov 16   ;;  %s2041_s20 = smov 4  }
   0x6   :  { %s2042_s21 = smov 10   ;;  %s2043_s22 = smov 6  }
   0x7   :  { %s2044_s23 = smov 12   ;;  %s2045_s24 = smov 14  }
   0xb   :  { %47 = vrot.lane.b32.xlu0 %v2065_v0, %s2017_s12 }
  0x13   :  { %115 = vrot.lane.b32.xlu0 %v2065_v0, %s2019_s14 }
  0x75   :  { %v2071_v1 = vpop.permute.xlu0 %26 }
  0x76   :  { %v29_v2 = vsub.f32 %v2065_v0, %v2071_v1 }
  0x78   :  { %v30_v3 = vmul.f32 %v29_v2, %v29_v2 }
  0x7a   :  { %32 = vrot.lane.b32.xlu1 %v30_v3, %s2018_s13 }
  0x7d   :  { %v2076_v4 = vpop.permute.xlu0 %47 }
  0x7e   :  { %v50_v5 = vsub.f32 %v2065_v0, %v2076_v4 }
  0x80   :  { %v51_v6 = vmul.f32 %v50_v5, %v50_v5 }
  0x82   :  { %53 = vrot.lane.b32.xlu1 %v51_v6, %s2018_s13 }
  0x85   :  { %v116_v55 = vpop.permute.xlu0 %115 }
  0x8a   :  { %123 = vrot.lane.b32.xlu1 %v2065_v0, %s2020_s15 }
  0x92   :  { %146 = vperm.xlu1 %1808, %v2065_v0  }
  0xec   :  { %v33_v7 = vpop.permute.xlu1 %32 }
  0xed   :  { %v35_v8 = vadd.f32 %v33_v7, %v30_v3 }
  0xef   :  { %1850 = vrsqrt.f32 %v35_v8  ;;  %vm42_vm1 = vweird.f32 %v35_v8 }
  0xf4   :  { %v54_v17 = vpop.permute.xlu1 %53 }
  0xf5   :  { %v1851_v9 = vpop.eup %1850  ;;  %v56_v18 = vadd.f32 %v54_v17, %v51_v6 }
  0xf6   :  { %v37_v10 = vmul.f32 %v1851_v9, %v35_v8  ;;  %vm43_vm0 = vweird.f32 %v1851_v9 }
  0xf7   :  { %vm44_vm2 = vmor %vm42_vm1, %vm43_vm0  ;;  %1852 = vrsqrt.f32 %v56_v18  ;;  %vm63_vm4 = vweird.f32 %v56_v18  ;;  %vm165_vm0 = vcmask 195584  }
  0xf8   :  { %v38_v11 = vmul.f32 %v1851_v9, %v37_v10 }
  0xfa   :  { %v39_v12 = vmul.f32 0.5, %v38_v11  ;;  %v2022_v11 = vmov 24  }
  0xfc   :  { %v40_v13 = vsub.f32 1.5, %v39_v12  ;;  %v124_v59 = vpop.permute.xlu1 %123  ;;  %v12_v12 = vld [vmem:[%s2521_s1] sm:$0xff] }
  0xfd   :  { %v1853_v19 = vpop.eup %1852 }
  0xfe   :  { %v41_v14 = vmul.f32 %v1851_v9, %v40_v13  ;;  %v58_v20 = vmul.f32 %v1853_v19, %v56_v18  ;;  %vm64_vm3 = vweird.f32 %v1853_v19 }
  0xff   :  { %vm65_vm5 = vmor %vm63_vm4, %vm64_vm3 }
 0x100   :  { %v45_v15 = vsel %vm44_vm2, %v1851_v9, %v41_v14  ;;  %v59_v21 = vmul.f32 %v1853_v19, %v58_v20  ;;  %v20_v14 = vld [vmem:[%s2521_s1 + $0x40] sm:$0xff] }
 0x101   :  { %v2084_v16 = vmin.f32 %v45_v15, 1.0  ;;  %v2118_v15 = vperm.slane %v20_v14, 2  ;;  %v2122_v17 = vperm.slane %v20_v14, 0 }
 0x102   :  { %v60_v22 = vmul.f32 0.5, %v59_v21 }
 0x103   :  { %81 = vrot.lane.b32.xlu2 %v2084_v16, %s2016_s11  ;;  %v68_v27 = vadd.f32 1.0, %v2084_v16 }
 0x104   :  { %v61_v23 = vsub.f32 1.5, %v60_v22  ;;  %v147_v18 = vpop.permute.xlu1 %146 }
 0x106   :  { %v62_v24 = vmul.f32 %v1853_v19, %v61_v23 }
 0x108   :  { %v66_v25 = vsel %vm65_vm5, %v1853_v19, %v62_v24  ;;  %v2124_v19 = vperm.slane %v20_v14, 1  ;;  %v150_v24 = vmul.f32 %v2122_v17, %v147_v18 }
 0x109   :  { %v67_v26 = vmin.f32 %v66_v25, 1.0 }
 0x10b   :  { %108 = vrot.lane.b32.xlu2 %v2065_v0, %s2018_s13  ;;  %v69_v28 = vadd.f32 %v68_v27, %v67_v26  ;;  %v95_v31 = vadd.f32 1.0, %v67_v26 }
 0x10d   :  { %1854 = vrsqrt.f32 %v69_v28  ;;  %vm76_vm8 = vweird.f32 %v69_v28 }
 0x113   :  { %v1855_v29 = vpop.eup %1854 }
 0x114   :  { %v71_v33 = vmul.f32 %v1855_v29, %v69_v28  ;;  %vm77_vm6 = vweird.f32 %v1855_v29  ;;  %v2130_v28 = vperm.slane %v20_v14, 4 }
 0x115   :  { %vm78_vm11 = vmor %vm76_vm8, %vm77_vm6 }
 0x116   :  { %v72_v36 = vmul.f32 %v1855_v29, %v71_v33 }
 0x118   :  { %v73_v37 = vmul.f32 0.5, %v72_v36 }
 0x11a   :  { %v74_v43 = vsub.f32 1.5, %v73_v37 }
 0x11c   :  { %v75_v48 = vmul.f32 %v1855_v29, %v74_v43 }
 0x11e   :  { %v79_v53 = vsel %vm78_vm11, %v1855_v29, %v75_v48 }
 0x11f   :  { %v107_v61 = vmul.f32 %v79_v53, %v2065_v0 }
 0x15d   :  { %v82_v32 = vpop.permute.xlu2 %81 }
 0x15e   :  { %v84_v34 = vadd.f32 %v82_v32, %v68_v27  ;;  %v96_v35 = vadd.f32 %v95_v31, %v82_v32 }
 0x160   :  { %1856 = vrsqrt.f32 %v84_v34  ;;  %vm91_vm10 = vweird.f32 %v84_v34  ;;  %vm103_vm12 = vweird.f32 %v96_v35 }
 0x161   :  { %1858 = vrsqrt.f32 %v96_v35 }
 0x165   :  { %v109_v52 = vpop.permute.xlu2 %108 }
 0x166   :  { %v1857_v38 = vpop.eup %1856  ;;  %v111_v60 = vmul.f32 %v109_v52, %v79_v53 }
 0x167   :  { %v1859_v39 = vpop.eup %1858  ;;  %v86_v40 = vmul.f32 %v1857_v38, %v84_v34  ;;  %vm92_vm7 = vweird.f32 %v1857_v38  ;;  %v2023_v34 = vmov 1  }
 0x168   :  { %v98_v41 = vmul.f32 %v1859_v39, %v96_v35  ;;  %vm104_vm9 = vweird.f32 %v1859_v39  ;;  %vm93_vm13 = vmor %vm91_vm10, %vm92_vm7  ;;  %1810 = vset.pattern.permute.xlu1 %v2023_v34  ;;  %v15_v35 = vld [vmem:[%s2521_s1 + $0x18] sm:$0xff] }
 0x169   :  { %v87_v42 = vmul.f32 %v1857_v38, %v86_v40  ;;  %vm105_vm14 = vmor %vm103_vm12, %vm104_vm9  ;;  %v2141_v36 = vperm.slane %v15_v35, 0 }
 0x16a   :  { %v99_v44 = vmul.f32 %v1859_v39, %v98_v41 }
 0x16b   :  { %v88_v45 = vmul.f32 0.5, %v87_v42 }
 0x16c   :  { %v100_v46 = vmul.f32 0.5, %v99_v44 }
 0x16d   :  { %v89_v47 = vsub.f32 1.5, %v88_v45 }
 0x16e   :  { %v101_v49 = vsub.f32 1.5, %v100_v46 }
 0x16f   :  { %v90_v50 = vmul.f32 %v1857_v38, %v89_v47 }
 0x170   :  { %v102_v51 = vmul.f32 %v1859_v39, %v101_v49 }
 0x171   :  { %v94_v54 = vsel %vm93_vm13, %v1857_v38, %v90_v50 }
 0x172   :  { %v106_v56 = vsel %vm105_vm14, %v1859_v39, %v102_v51  ;;  %v112_v57 = vmul.f32 %v94_v54, %v2084_v16  ;;  %v2120_v16 = vperm.slane %v20_v14, 3 }
 0x173   :  { %v120_v58 = vmul.f32 %v106_v56, %v67_v26 }
 0x174   :  { %v113_v62 = vmul.f32 %v112_v57, %v2071_v1  ;;  %v118_v63 = vmul.f32 %v116_v55, %v112_v57  ;;  %v14_v1 = vld [vmem:[%s2521_s1 + $0x10] sm:$0xff]  ;;  %v2026_v55 = vmov 25  }
 0x175   :  { %v121_v2 = vmul.f32 %v120_v58, %v2076_v4  ;;  %v126_v3 = vmul.f32 %v124_v59, %v120_v58  ;;  %v13_v4 = vld [vmem:[%s2521_s1 + $0x8] sm:$0xff]  ;;  %182 = vmatpush.msra.mxu0 %v14_v1  ;;  %272 = vmatpush.msra.mxu1 %v14_v1 }
 0x176   :  { %v114_v5 = vadd.f32 %v113_v62, %v107_v61  ;;  %v119_v6 = vadd.f32 %v118_v63, %v111_v60  ;;  %362 = vmatpush.msra.mxu2 %v14_v1  ;;  %452 = vmatpush.msra.mxu3 %v14_v1 }
 0x177   :  { %183 = vmatpush.msra.mxu0 %v13_v4  ;;  %273 = vmatpush.msra.mxu1 %v13_v4 }
 0x178   :  { %v122_v7 = vadd.f32 %v121_v2, %v114_v5  ;;  %v127_v8 = vadd.f32 %v126_v3, %v119_v6  ;;  %363 = vmatpush.msra.mxu2 %v13_v4  ;;  %453 = vmatpush.msra.mxu3 %v13_v4 }
 0x179   :  { %184 = vmatpush.msra.mxu0 %v12_v12  ;;  %274 = vmatpush.msra.mxu1 %v12_v12 }
 0x17a   :  { %v2099_v9 = vmul.f32 %v122_v7, %v79_v53  ;;  %v2101_v10 = vmul.f32 %v127_v8, %v79_v53  ;;  %364 = vmatpush.msra.mxu2 %v12_v12  ;;  %454 = vmatpush.msra.mxu3 %v12_v12 }
 0x17b   :  { %542 = vmatpush.msrb.mxu0 %v14_v1  ;;  %632 = vmatpush.msrb.mxu1 %v14_v1 }
 0x17c   :  { %132 = vperm.xlu2 %1806, %v2099_v9   ;;  %139 = vperm.xlu0 %1807, %v2101_v10  }
 0x17d   :  { %722 = vmatpush.msrb.mxu2 %v14_v1  ;;  %812 = vmatpush.msrb.mxu3 %v14_v1 }
 0x17e   :  { %543 = vmatpush.msrb.mxu0 %v13_v4  ;;  %633 = vmatpush.msrb.mxu1 %v13_v4 }
 0x17f   :  { %723 = vmatpush.msrb.mxu2 %v13_v4  ;;  %813 = vmatpush.msrb.mxu3 %v13_v4 }
 0x180   :  { %544 = vmatpush.msrb.mxu0 %v12_v12  ;;  %634 = vmatpush.msrb.mxu1 %v12_v12 }
 0x181   :  { %724 = vmatpush.msrb.mxu2 %v12_v12  ;;  %814 = vmatpush.msrb.mxu3 %v12_v12 }
 0x184   :  { %1809 = vset.pattern.permute.xlu2 %v2022_v11  ;;  %1812 = vset.pattern.permute.xlu0 %v2023_v34 }
 0x185   :  { %153 = vperm.xlu2 %1809, %v2065_v0  }
 0x18d   :  { %1811 = vset.pattern.permute.xlu2 %v2023_v34 }
 0x1d6   :  { %v133_v13 = vpop.permute.xlu2 %132 }
 0x1d7   :  { %v136_v22 = vmul.f32 %v2118_v15, %v133_v13 }
 0x1df   :  { %v154_v21 = vpop.permute.xlu2 %153 }
 0x1e0   :  { %v157_v26 = vmul.f32 %v2124_v19, %v154_v21 }
 0x1ee   :  { %v140_v20 = vpop.permute.xlu0 %139 }
 0x1ef   :  { %v143_v23 = vmul.f32 %v2120_v16, %v140_v20  ;;  %v2027_v20 = vmov 2  }
 0x1f1   :  { %v144_v25 = vadd.f32 %v143_v23, %v136_v22 }
 0x1f3   :  { %v151_v27 = vadd.f32 %v150_v24, %v144_v25 }
 0x1f5   :  { %v158_v29 = vadd.f32 %v157_v26, %v151_v27 }
 0x1f7   :  { %v160_v31 = vadd.f32 %v2130_v28, %v158_v29 }
 0x1f9   :  { %v161_v32 = vmax.f32 %v160_v31, 0.0 }
 0x1fb   :  { %v163_v33 = vsel %vm162_vm15, %v161_v32, 0.0 }
 0x1fc   :  { %1735 = vmatmul.msk.f32.vlgmr.msra.gmra.mxu0 %vm165_vm0, %v163_v33 }
 0x279   :  { %v186_v37 = vpop.f32.mrf.mxu0 }
 0x27a   :  { %v187_v38 = vadd.f32 %v186_v37, %v2141_v36 }
 0x27c   :  { %1860 = vtanh.f32 %v187_v38  ;;  %v1736_v40 = vmul.f32 -1.442695, %v187_v38 }
 0x27e   :  { %1862 = vpow2.f32 %v1736_v40 }
 0x282   :  { %v1861_v39 = vpop.eup %1860 }
 0x283   :  { %211 = vrot.lane.b32.xlu1 %v1861_v39, %s2024_s26 }
 0x284   :  { %v1863_v41 = vpop.eup %1862 }
 0x285   :  { %v192_v42 = vadd.f32 1.0, %v1863_v41 }
 0x287   :  { %1864 = vrcp.f32 %v192_v42  ;;  %v204_v48 = vand.u32 2147483648, %v192_v42  ;;  %vm198_vm2 = vweird.f32 %v192_v42  ;;  %v202_v49 = vand.u32 2147483647, %v192_v42 }
 0x289   :  { %v205_v51 = vor.u32 1.1754944e-38, %v204_v48  ;;  %vm203_vm4 = vcmp.eq.f32.partialorder %v202_v49, 8.507059e+37 }
 0x28b   :  { %227 = vperm.xlu1 %1810, %v2099_v9  }
 0x28d   :  { %v1865_v43 = vpop.eup %1864 }
 0x28e   :  { %v194_v44 = vmul.f32 %v1865_v43, %v192_v42  ;;  %vm199_vm1 = vweird.f32 %v1865_v43 }
 0x28f   :  { %vm200_vm3 = vmor %vm198_vm2, %vm199_vm1 }
 0x290   :  { %v195_v45 = vsub.f32 1.0, %v194_v44 }
 0x292   :  { %v196_v46 = vmul.f32 %v1865_v43, %v195_v45 }
 0x293   :  { %1813 = vset.pattern.permute.xlu1 %v2026_v55 }
 0x294   :  { %v197_v47 = vadd.f32 %v1865_v43, %v196_v46  ;;  %244 = vperm.xlu1 %1813, %v2065_v0  }
 0x296   :  { %v201_v50 = vsel %vm200_vm3, %v1865_v43, %v197_v47  ;;  %v2028_v43 = vmov 26  }
 0x297   :  { %v206_v53 = vsel %vm203_vm4, %v205_v51, %v201_v50 }
 0x298   :  { %v209_v56 = vmul.f32 0.0, %v206_v53 }
 0x29c   :  { %1814 = vset.pattern.permute.xlu1 %v2027_v20 }
 0x2f5   :  { %v212_v52 = vpop.permute.xlu1 %211 }
 0x2f6   :  { %v214_v54 = vmul.f32 %v212_v52, %v206_v53 }
 0x2f8   :  { %216 = vrot.lane.b32.xlu2 %v214_v54, %s2025_s27 }
 0x2fd   :  { %v228_v62 = vpop.permute.xlu1 %227 }
 0x2fe   :  { %v230_v5 = vmul.f32 %v228_v62, %v2118_v15 }
 0x300   :  { %232 = vperm.xlu2 %1811, %v2101_v10  }
 0x306   :  { %v245_v7 = vpop.permute.xlu1 %244 }
 0x307   :  { %v247_v1 = vmul.f32 %v245_v7, %v2124_v19 }
 0x308   :  { %1815 = vset.pattern.permute.xlu2 %v2027_v20 }
 0x352   :  { %v217_v57 = vpop.permute.xlu2 %216 }
 0x353   :  { %v219_v58 = vadd.f32 %v217_v57, %v209_v56 }
 0x355   :  { %1866 = vtanh.f32 %v219_v58 }
 0x35a   :  { %v233_v63 = vpop.permute.xlu2 %232 }
 0x35b   :  { %v1867_v59 = vpop.eup %1866  ;;  %v235_v3 = vmul.f32 %v233_v63, %v2120_v16 }
 0x35c   :  { %222 = vrot.lane.b32.xlu0 %v1867_v59, %s2025_s27 }
 0x35d   :  { %v236_v8 = vadd.f32 %v235_v3, %v230_v5  ;;  %v2029_v3 = vmov 3  }
 0x364   :  { %238 = vperm.xlu0 %1812, %v2065_v0  }
 0x36c   :  { %1816 = vset.pattern.permute.xlu0 %v2027_v20 }
 0x3ce   :  { %v223_v60 = vpop.permute.xlu0 %222 }
 0x3cf   :  { %v225_v61 = vmul.f32 %v223_v60, %v206_v53 }
 0x3d1   :  { %252 = vrot.lane.b32.xlu2 %v225_v61, %s2018_s13 }
 0x3d6   :  { %v239_v2 = vpop.permute.xlu0 %238 }
 0x3d7   :  { %v241_v6 = vmul.f32 %v239_v2, %v2122_v17 }
 0x3d9   :  { %v242_v11 = vadd.f32 %v241_v6, %v236_v8 }
 0x3db   :  { %v248_v4 = vadd.f32 %v247_v1, %v242_v11 }
 0x3dd   :  { %v249_v12 = vadd.f32 %v248_v4, %v2130_v28 }
 0x3df   :  { %v250_v13 = vmax.f32 %v249_v12, 0.0 }
 0x42b   :  { %v253_v14 = vpop.permute.xlu2 %252 }
 0x42c   :  { %v255_v18 = vsel %vm162_vm15, %v250_v13, %v253_v14 }
 0x42d   :  { %1737 = vmatmul.msk.f32.vlgmr.msra.gmra.mxu1 %vm165_vm0, %v255_v18 }
 0x4aa   :  { %v276_v21 = vpop.f32.mrf.mxu1 }
 0x4ab   :  { %v277_v22 = vadd.f32 %v276_v21, %v2141_v36 }
 0x4ad   :  { %1868 = vtanh.f32 %v277_v22  ;;  %v1738_v24 = vmul.f32 -1.442695, %v277_v22 }
 0x4af   :  { %1870 = vpow2.f32 %v1738_v24 }
 0x4b3   :  { %v1869_v23 = vpop.eup %1868 }
 0x4b4   :  { %301 = vrot.lane.b32.xlu1 %v1869_v23, %s2024_s26 }
 0x4b5   :  { %v1871_v25 = vpop.eup %1870 }
 0x4b6   :  { %v282_v26 = vadd.f32 1.0, %v1871_v25 }
 0x4b8   :  { %1872 = vrcp.f32 %v282_v26  ;;  %v294_v35 = vand.u32 2147483648, %v282_v26  ;;  %vm288_vm6 = vweird.f32 %v282_v26  ;;  %v292_v37 = vand.u32 2147483647, %v282_v26 }
 0x4ba   :  { %v295_v39 = vor.u32 1.1754944e-38, %v294_v35  ;;  %vm293_vm8 = vcmp.eq.f32.partialorder %v292_v37, 8.507059e+37 }
 0x4bc   :  { %317 = vperm.xlu1 %1814, %v2099_v9  }
 0x4be   :  { %v1873_v27 = vpop.eup %1872 }
 0x4bf   :  { %v284_v29 = vmul.f32 %v1873_v27, %v282_v26  ;;  %vm289_vm5 = vweird.f32 %v1873_v27 }
 0x4c0   :  { %vm290_vm7 = vmor %vm288_vm6, %vm289_vm5 }
 0x4c1   :  { %v285_v31 = vsub.f32 1.0, %v284_v29 }
 0x4c3   :  { %v286_v32 = vmul.f32 %v1873_v27, %v285_v31 }
 0x4c4   :  { %1817 = vset.pattern.permute.xlu1 %v2028_v43 }
 0x4c5   :  { %v287_v33 = vadd.f32 %v1873_v27, %v286_v32  ;;  %334 = vperm.xlu1 %1817, %v2065_v0  }
 0x4c7   :  { %v291_v38 = vsel %vm290_vm7, %v1873_v27, %v287_v33  ;;  %v2030_v27 = vmov 27  }
 0x4c8   :  { %v296_v41 = vsel %vm293_vm8, %v295_v39, %v291_v38 }
 0x4c9   :  { %v299_v44 = vmul.f32 %v296_v41, %v219_v58 }
 0x4cd   :  { %1818 = vset.pattern.permute.xlu1 %v2029_v3 }
 0x526   :  { %v302_v40 = vpop.permute.xlu1 %301 }
 0x527   :  { %v304_v42 = vmul.f32 %v302_v40, %v296_v41 }
 0x529   :  { %306 = vrot.lane.b32.xlu2 %v304_v42, %s2025_s27 }
 0x52e   :  { %v318_v50 = vpop.permute.xlu1 %317 }
 0x52f   :  { %v320_v54 = vmul.f32 %v318_v50, %v2118_v15 }
 0x531   :  { %322 = vperm.xlu2 %1815, %v2101_v10  }
 0x537   :  { %v335_v56 = vpop.permute.xlu1 %334 }
 0x538   :  { %v337_v59 = vmul.f32 %v335_v56, %v2124_v19 }
 0x539   :  { %1819 = vset.pattern.permute.xlu2 %v2029_v3 }
 0x583   :  { %v307_v45 = vpop.permute.xlu2 %306 }
 0x584   :  { %v309_v46 = vadd.f32 %v307_v45, %v299_v44 }
 0x586   :  { %1874 = vtanh.f32 %v309_v46 }
 0x58b   :  { %v323_v51 = vpop.permute.xlu2 %322 }
 0x58c   :  { %v1875_v47 = vpop.eup %1874  ;;  %v325_v53 = vmul.f32 %v323_v51, %v2120_v16 }
 0x58d   :  { %312 = vrot.lane.b32.xlu0 %v1875_v47, %s2025_s27 }
 0x58e   :  { %v326_v57 = vadd.f32 %v325_v53, %v320_v54  ;;  %v2031_v53 = vmov 4  }
 0x595   :  { %328 = vperm.xlu0 %1816, %v2065_v0  }
 0x59d   :  { %1820 = vset.pattern.permute.xlu0 %v2029_v3 }
 0x5ff   :  { %v313_v48 = vpop.permute.xlu0 %312 }
 0x600   :  { %v315_v49 = vmul.f32 %v313_v48, %v296_v41 }
 0x602   :  { %342 = vrot.lane.b32.xlu2 %v315_v49, %s2018_s13 }
 0x607   :  { %v329_v52 = vpop.permute.xlu0 %328 }
 0x608   :  { %v331_v55 = vmul.f32 %v329_v52, %v2122_v17 }
 0x60a   :  { %v332_v58 = vadd.f32 %v331_v55, %v326_v57 }
 0x60c   :  { %v338_v60 = vadd.f32 %v337_v59, %v332_v58 }
 0x60e   :  { %v339_v61 = vadd.f32 %v338_v60, %v2130_v28 }
 0x610   :  { %v340_v62 = vmax.f32 %v339_v61, 0.0 }
 0x65c   :  { %v343_v63 = vpop.permute.xlu2 %342 }
 0x65d   :  { %v345_v2 = vsel %vm162_vm15, %v340_v62, %v343_v63 }
 0x65e   :  { %1739 = vmatmul.msk.f32.vlgmr.msra.gmra.mxu2 %vm165_vm0, %v345_v2 }
 0x6e1   :  { %v366_v5 = vpop.f32.mrf.mxu2 }
 0x6e2   :  { %v367_v6 = vadd.f32 %v366_v5, %v2141_v36 }
 0x6e4   :  { %1876 = vtanh.f32 %v367_v6  ;;  %v1740_v8 = vmul.f32 -1.442695, %v367_v6 }
 0x6e6   :  { %1878 = vpow2.f32 %v1740_v8 }
 0x6ea   :  { %v1877_v7 = vpop.eup %1876 }
 0x6eb   :  { %391 = vrot.lane.b32.xlu1 %v1877_v7, %s2024_s26 }
 0x6ec   :  { %v1879_v11 = vpop.eup %1878 }
 0x6ed   :  { %v372_v1 = vadd.f32 1.0, %v1879_v11 }
 0x6ef   :  { %1880 = vrcp.f32 %v372_v1  ;;  %v384_v20 = vand.u32 2147483648, %v372_v1  ;;  %vm378_vm10 = vweird.f32 %v372_v1  ;;  %v382_v21 = vand.u32 2147483647, %v372_v1 }
 0x6f1   :  { %v385_v23 = vor.u32 1.1754944e-38, %v384_v20  ;;  %vm383_vm12 = vcmp.eq.f32.partialorder %v382_v21, 8.507059e+37 }
 0x6f3   :  { %407 = vperm.xlu1 %1818, %v2099_v9  }
 0x6f5   :  { %v1881_v4 = vpop.eup %1880 }
 0x6f6   :  { %v374_v12 = vmul.f32 %v1881_v4, %v372_v1  ;;  %vm379_vm9 = vweird.f32 %v1881_v4 }
 0x6f7   :  { %vm380_vm11 = vmor %vm378_vm10, %vm379_vm9 }
 0x6f8   :  { %v375_v13 = vsub.f32 1.0, %v374_v12 }
 0x6fa   :  { %v376_v14 = vmul.f32 %v1881_v4, %v375_v13 }
 0x6fb   :  { %1821 = vset.pattern.permute.xlu1 %v2030_v27 }
 0x6fc   :  { %v377_v18 = vadd.f32 %v1881_v4, %v376_v14  ;;  %424 = vperm.xlu1 %1821, %v2065_v0  }
 0x6fe   :  { %v381_v22 = vsel %vm380_vm11, %v1881_v4, %v377_v18  ;;  %v2032_v4 = vmov 28  }
 0x6ff   :  { %v386_v25 = vsel %vm383_vm12, %v385_v23, %v381_v22 }
 0x700   :  { %v389_v29 = vmul.f32 %v386_v25, %v309_v46 }
 0x704   :  { %1822 = vset.pattern.permute.xlu1 %v2031_v53 }
 0x75d   :  { %v392_v24 = vpop.permute.xlu1 %391 }
 0x75e   :  { %v394_v26 = vmul.f32 %v392_v24, %v386_v25 }
 0x760   :  { %396 = vrot.lane.b32.xlu2 %v394_v26, %s2025_s27 }
 0x765   :  { %v408_v38 = vpop.permute.xlu1 %407 }
 0x766   :  { %v410_v42 = vmul.f32 %v408_v38, %v2118_v15 }
 0x768   :  { %412 = vperm.xlu2 %1819, %v2101_v10  }
 0x76e   :  { %v425_v44 = vpop.permute.xlu1 %424 }
 0x76f   :  { %v427_v47 = vmul.f32 %v425_v44, %v2124_v19 }
 0x770   :  { %1823 = vset.pattern.permute.xlu2 %v2031_v53 }
 0x7ba   :  { %v397_v31 = vpop.permute.xlu2 %396 }
 0x7bb   :  { %v399_v32 = vadd.f32 %v397_v31, %v389_v29 }
 0x7bd   :  { %1882 = vtanh.f32 %v399_v32 }
 0x7c2   :  { %v413_v39 = vpop.permute.xlu2 %412 }
 0x7c3   :  { %v1883_v33 = vpop.eup %1882  ;;  %v415_v41 = vmul.f32 %v413_v39, %v2120_v16 }
 0x7c4   :  { %402 = vrot.lane.b32.xlu0 %v1883_v33, %s2025_s27 }
 0x7c5   :  { %v416_v45 = vadd.f32 %v415_v41, %v410_v42  ;;  %v2033_v41 = vmov 5  }
 0x7cc   :  { %418 = vperm.xlu0 %1820, %v2065_v0  }
 0x7d4   :  { %1824 = vset.pattern.permute.xlu0 %v2031_v53 }
 0x836   :  { %v403_v35 = vpop.permute.xlu0 %402 }
 0x837   :  { %v405_v37 = vmul.f32 %v403_v35, %v386_v25 }
 0x839   :  { %432 = vrot.lane.b32.xlu2 %v405_v37, %s2018_s13 }
 0x83e   :  { %v419_v40 = vpop.permute.xlu0 %418 }
 0x83f   :  { %v421_v43 = vmul.f32 %v419_v40, %v2122_v17 }
 0x841   :  { %v422_v46 = vadd.f32 %v421_v43, %v416_v45 }
 0x843   :  { %v428_v48 = vadd.f32 %v427_v47, %v422_v46 }
 0x845   :  { %v429_v49 = vadd.f32 %v428_v48, %v2130_v28 }
 0x847   :  { %v430_v50 = vmax.f32 %v429_v49, 0.0 }
 0x893   :  { %v433_v51 = vpop.permute.xlu2 %432 }
 0x894   :  { %v435_v52 = vsel %vm162_vm15, %v430_v50, %v433_v51 }
 0x895   :  { %1741 = vmatmul.msk.f32.vlgmr.msra.gmra.mxu3 %vm165_vm0, %v435_v52 }
 0x918   :  { %v456_v54 = vpop.f32.mrf.mxu3 }
 0x919   :  { %v457_v55 = vadd.f32 %v456_v54, %v2141_v36 }
 0x91b   :  { %1884 = vtanh.f32 %v457_v55  ;;  %v1742_v57 = vmul.f32 -1.442695, %v457_v55 }
 0x91d   :  { %1886 = vpow2.f32 %v1742_v57 }
 0x921   :  { %v1885_v56 = vpop.eup %1884 }
 0x922   :  { %481 = vrot.lane.b32.xlu1 %v1885_v56, %s2024_s26 }
 0x923   :  { %v1887_v58 = vpop.eup %1886 }
 0x924   :  { %v462_v59 = vadd.f32 1.0, %v1887_v58 }
 0x926   :  { %1888 = vrcp.f32 %v462_v59  ;;  %v474_v3 = vand.u32 2147483648, %v462_v59  ;;  %vm468_vm14 = vweird.f32 %v462_v59  ;;  %v472_v5 = vand.u32 2147483647, %v462_v59 }
 0x928   :  { %v475_v7 = vor.u32 1.1754944e-38, %v474_v3  ;;  %vm473_vm2 = vcmp.eq.f32.partialorder %v472_v5, 8.507059e+37 }
 0x92a   :  { %497 = vperm.xlu1 %1822, %v2099_v9  }
 0x92c   :  { %v1889_v60 = vpop.eup %1888 }
 0x92d   :  { %v464_v61 = vmul.f32 %v1889_v60, %v462_v59  ;;  %vm469_vm13 = vweird.f32 %v1889_v60 }
 0x92e   :  { %vm470_vm1 = vmor %vm468_vm14, %vm469_vm13 }
 0x92f   :  { %v465_v62 = vsub.f32 1.0, %v464_v61 }
 0x931   :  { %v466_v63 = vmul.f32 %v1889_v60, %v465_v62 }
 0x932   :  { %1825 = vset.pattern.permute.xlu1 %v2032_v4 }
 0x933   :  { %v467_v2 = vadd.f32 %v1889_v60, %v466_v63  ;;  %514 = vperm.xlu1 %1825, %v2065_v0  }
 0x935   :  { %v471_v6 = vsel %vm470_vm1, %v1889_v60, %v467_v2  ;;  %v2034_v60 = vmov 29  }
 0x936   :  { %v476_v11 = vsel %vm473_vm2, %v475_v7, %v471_v6 }
 0x937   :  { %v479_v12 = vmul.f32 %v476_v11, %v399_v32 }
 0x93b   :  { %1826 = vset.pattern.permute.xlu1 %v2033_v41 }
 0x994   :  { %v482_v8 = vpop.permute.xlu1 %481 }
 0x995   :  { %v484_v1 = vmul.f32 %v482_v8, %v476_v11 }
 0x997   :  { %486 = vrot.lane.b32.xlu2 %v484_v1, %s2025_s27 }
 0x99c   :  { %v498_v22 = vpop.permute.xlu1 %497 }
 0x99d   :  { %v500_v26 = vmul.f32 %v498_v22, %v2118_v15 }
 0x99f   :  { %502 = vperm.xlu2 %1823, %v2101_v10  }
 0x9a5   :  { %v515_v29 = vpop.permute.xlu1 %514 }
 0x9a6   :  { %v517_v33 = vmul.f32 %v515_v29, %v2124_v19 }
 0x9a7   :  { %1827 = vset.pattern.permute.xlu2 %v2033_v41 }
 0x9f1   :  { %v487_v13 = vpop.permute.xlu2 %486 }
 0x9f2   :  { %v489_v14 = vadd.f32 %v487_v13, %v479_v12 }
 0x9f4   :  { %1890 = vtanh.f32 %v489_v14 }
 0x9f9   :  { %v503_v23 = vpop.permute.xlu2 %502 }
 0x9fa   :  { %v1891_v18 = vpop.eup %1890  ;;  %v505_v25 = vmul.f32 %v503_v23, %v2120_v16 }
 0x9fb   :  { %492 = vrot.lane.b32.xlu0 %v1891_v18, %s2025_s27 }
 0x9fc   :  { %v506_v31 = vadd.f32 %v505_v25, %v500_v26 }
 0xa03   :  { %508 = vperm.xlu0 %1824, %v2065_v0  }
 0xa0b   :  { %1828 = vset.pattern.permute.xlu0 %v2033_v41 }
 0xa6d   :  { %v493_v20 = vpop.permute.xlu0 %492 }
 0xa6e   :  { %v495_v21 = vmul.f32 %v493_v20, %v476_v11 }
 0xa70   :  { %522 = vrot.lane.b32.xlu2 %v495_v21, %s2018_s13 }
 0xa75   :  { %v509_v24 = vpop.permute.xlu0 %508 }
 0xa76   :  { %v511_v27 = vmul.f32 %v509_v24, %v2122_v17  ;;  %v2035_v24 = vmov 6  }
 0xa78   :  { %v512_v32 = vadd.f32 %v511_v27, %v506_v31 }
 0xa7a   :  { %v518_v35 = vadd.f32 %v517_v33, %v512_v32 }
 0xa7c   :  { %v519_v37 = vadd.f32 %v518_v35, %v2130_v28 }
 0xa7e   :  { %v520_v38 = vmax.f32 %v519_v37, 0.0 }
 0xaca   :  { %v523_v39 = vpop.permute.xlu2 %522 }
 0xacb   :  { %v525_v40 = vsel %vm162_vm15, %v520_v38, %v523_v39 }
 0xacc   :  { %1743 = vmatmul.msk.f32.vlgmr.msrb.gmra.mxu0 %vm165_vm0, %v525_v40 }
 0xb49   :  { %v546_v42 = vpop.f32.mrf.mxu0 }
 0xb4a   :  { %v547_v43 = vadd.f32 %v546_v42, %v2141_v36 }
 0xb4c   :  { %1892 = vtanh.f32 %v547_v43  ;;  %v1744_v45 = vmul.f32 -1.442695, %v547_v43 }
 0xb4e   :  { %1894 = vpow2.f32 %v1744_v45 }
 0xb52   :  { %v1893_v44 = vpop.eup %1892 }
 0xb53   :  { %571 = vrot.lane.b32.xlu1 %v1893_v44, %s2024_s26 }
 0xb54   :  { %v1895_v46 = vpop.eup %1894 }
 0xb55   :  { %v552_v47 = vadd.f32 1.0, %v1895_v46 }
 0xb57   :  { %1896 = vrcp.f32 %v552_v47  ;;  %v564_v53 = vand.u32 2147483648, %v552_v47  ;;  %vm558_vm4 = vweird.f32 %v552_v47  ;;  %v562_v54 = vand.u32 2147483647, %v552_v47 }
 0xb59   :  { %v565_v56 = vor.u32 1.1754944e-38, %v564_v53  ;;  %vm563_vm6 = vcmp.eq.f32.partialorder %v562_v54, 8.507059e+37 }
 0xb5b   :  { %587 = vperm.xlu1 %1826, %v2099_v9  }
 0xb5d   :  { %v1897_v48 = vpop.eup %1896 }
 0xb5e   :  { %v554_v49 = vmul.f32 %v1897_v48, %v552_v47  ;;  %vm559_vm3 = vweird.f32 %v1897_v48  ;;  %v2036_v47 = vmov 30  }
 0xb5f   :  { %vm560_vm5 = vmor %vm558_vm4, %vm559_vm3 }
 0xb60   :  { %v555_v50 = vsub.f32 1.0, %v554_v49 }
 0xb62   :  { %v556_v51 = vmul.f32 %v1897_v48, %v555_v50 }
 0xb63   :  { %1829 = vset.pattern.permute.xlu1 %v2034_v60 }
 0xb64   :  { %v557_v52 = vadd.f32 %v1897_v48, %v556_v51  ;;  %604 = vperm.xlu1 %1829, %v2065_v0  }
 0xb66   :  { %v561_v55 = vsel %vm560_vm5, %v1897_v48, %v557_v52  ;;  %v2231_v48 = vld [vmem:[%s2520_s0] sm:$0xff] }
 0xb67   :  { %v566_v58 = vsel %vm563_vm6, %v565_v56, %v561_v55 }
 0xb68   :  { %v569_v61 = vmul.f32 %v566_v58, %v489_v14 }
 0xb6c   :  { %1830 = vset.pattern.permute.xlu1 %v2035_v24 }
 0xbc5   :  { %v572_v57 = vpop.permute.xlu1 %571 }
 0xbc6   :  { %v574_v59 = vmul.f32 %v572_v57, %v566_v58 }
 0xbc8   :  { %576 = vrot.lane.b32.xlu2 %v574_v59, %s2025_s27 }
 0xbcd   :  { %v588_v6 = vpop.permute.xlu1 %587 }
 0xbce   :  { %v590_v1 = vmul.f32 %v588_v6, %v2118_v15 }
 0xbd0   :  { %592 = vperm.xlu2 %1827, %v2101_v10  }
 0xbd6   :  { %v605_v12 = vpop.permute.xlu1 %604 }
 0xbd7   :  { %v607_v18 = vmul.f32 %v605_v12, %v2124_v19 }
 0xbd8   :  { %1831 = vset.pattern.permute.xlu2 %v2035_v24 }
 0xc22   :  { %v577_v62 = vpop.permute.xlu2 %576 }
 0xc23   :  { %v579_v63 = vadd.f32 %v577_v62, %v569_v61 }
 0xc25   :  { %1898 = vtanh.f32 %v579_v63 }
 0xc2a   :  { %v593_v7 = vpop.permute.xlu2 %592 }
 0xc2b   :  { %v1899_v2 = vpop.eup %1898  ;;  %v595_v11 = vmul.f32 %v593_v7, %v2120_v16 }
 0xc2c   :  { %582 = vrot.lane.b32.xlu0 %v1899_v2, %s2025_s27 }
 0xc2d   :  { %v596_v13 = vadd.f32 %v595_v11, %v590_v1  ;;  %v2037_v11 = vmov 7  }
 0xc34   :  { %598 = vperm.xlu0 %1828, %v2065_v0  }
 0xc3c   :  { %1832 = vset.pattern.permute.xlu0 %v2035_v24 }
 0xc9e   :  { %v583_v3 = vpop.permute.xlu0 %582 }
 0xc9f   :  { %v585_v5 = vmul.f32 %v583_v3, %v566_v58 }
 0xca1   :  { %612 = vrot.lane.b32.xlu2 %v585_v5, %s2018_s13 }
 0xca6   :  { %v599_v8 = vpop.permute.xlu0 %598 }
 0xca7   :  { %v601_v4 = vmul.f32 %v599_v8, %v2122_v17 }
 0xca9   :  { %v602_v14 = vadd.f32 %v601_v4, %v596_v13 }
 0xcab   :  { %v608_v20 = vadd.f32 %v607_v18, %v602_v14 }
 0xcad   :  { %v609_v0 = vadd.f32 %v608_v20, %v2130_v28 }
 0xcaf   :  { %v610_v21 = vmax.f32 %v609_v0, 0.0 }
 0xcfb   :  { %v613_v22 = vpop.permute.xlu2 %612 }
 0xcfc   :  { %v615_v23 = vsel %vm162_vm15, %v610_v21, %v613_v22 }
 0xcfd   :  { %1745 = vmatmul.msk.f32.vlgmr.msrb.gmra.mxu1 %vm165_vm0, %v615_v23 }
 0xd7a   :  { %v636_v25 = vpop.f32.mrf.mxu1 }
 0xd7b   :  { %v637_v26 = vadd.f32 %v636_v25, %v2141_v36 }
 0xd7d   :  { %1900 = vtanh.f32 %v637_v26  ;;  %v1746_v29 = vmul.f32 -1.442695, %v637_v26 }
 0xd7f   :  { %1902 = vpow2.f32 %v1746_v29 }
 0xd83   :  { %v1901_v27 = vpop.eup %1900 }
 0xd84   :  { %661 = vrot.lane.b32.xlu1 %v1901_v27, %s2024_s26 }
 0xd85   :  { %v1903_v31 = vpop.eup %1902 }
 0xd86   :  { %v642_v32 = vadd.f32 1.0, %v1903_v31 }
 0xd88   :  { %1904 = vrcp.f32 %v642_v32  ;;  %v654_v40 = vand.u32 2147483648, %v642_v32  ;;  %vm648_vm8 = vweird.f32 %v642_v32  ;;  %v652_v41 = vand.u32 2147483647, %v642_v32 }
 0xd8a   :  { %v655_v43 = vor.u32 1.1754944e-38, %v654_v40  ;;  %vm653_vm10 = vcmp.eq.f32.partialorder %v652_v41, 8.507059e+37 }
 0xd8c   :  { %677 = vperm.xlu1 %1830, %v2099_v9  }
 0xd8e   :  { %v1905_v33 = vpop.eup %1904 }
 0xd8f   :  { %v644_v35 = vmul.f32 %v1905_v33, %v642_v32  ;;  %vm649_vm7 = vweird.f32 %v1905_v33  ;;  %v2038_v32 = vmov 31  }
 0xd90   :  { %vm650_vm9 = vmor %vm648_vm8, %vm649_vm7 }
 0xd91   :  { %v645_v37 = vsub.f32 1.0, %v644_v35 }
 0xd93   :  { %v646_v38 = vmul.f32 %v1905_v33, %v645_v37 }
 0xd94   :  { %1833 = vset.pattern.permute.xlu1 %v2036_v47 }
 0xd95   :  { %v647_v39 = vadd.f32 %v1905_v33, %v646_v38  ;;  %694 = vperm.xlu1 %1833, %v2231_v48  }
 0xd97   :  { %v651_v42 = vsel %vm650_vm9, %v1905_v33, %v647_v39  ;;  %vm934_vm9 = vcmask 130048  }
 0xd98   :  { %v656_v45 = vsel %vm653_vm10, %v655_v43, %v651_v42 }
 0xd99   :  { %v659_v49 = vmul.f32 %v656_v45, %v579_v63 }
 0xd9d   :  { %1834 = vset.pattern.permute.xlu1 %v2037_v11 }
 0xdf6   :  { %v662_v44 = vpop.permute.xlu1 %661 }
 0xdf7   :  { %v664_v46 = vmul.f32 %v662_v44, %v656_v45 }
 0xdf9   :  { %666 = vrot.lane.b32.xlu2 %v664_v46, %s2025_s27 }
 0xdfe   :  { %v678_v55 = vpop.permute.xlu1 %677 }
 0xdff   :  { %v680_v59 = vmul.f32 %v678_v55, %v2118_v15 }
 0xe01   :  { %682 = vperm.xlu2 %1831, %v2101_v10  }
 0xe07   :  { %v695_v61 = vpop.permute.xlu1 %694 }
 0xe08   :  { %v697_v2 = vmul.f32 %v695_v61, %v2124_v19 }
 0xe09   :  { %1835 = vset.pattern.permute.xlu2 %v2037_v11 }
 0xe53   :  { %v667_v50 = vpop.permute.xlu2 %666 }
 0xe54   :  { %v669_v51 = vadd.f32 %v667_v50, %v659_v49 }
 0xe56   :  { %1906 = vtanh.f32 %v669_v51 }
 0xe5b   :  { %v683_v56 = vpop.permute.xlu2 %682 }
 0xe5c   :  { %v1907_v52 = vpop.eup %1906  ;;  %v685_v58 = vmul.f32 %v683_v56, %v2120_v16 }
 0xe5d   :  { %672 = vrot.lane.b32.xlu0 %v1907_v52, %s2025_s27 }
 0xe5e   :  { %v686_v62 = vadd.f32 %v685_v58, %v680_v59 }
 0xe65   :  { %688 = vperm.xlu0 %1832, %v2231_v48  }
 0xe6d   :  { %1836 = vset.pattern.permute.xlu0 %v2037_v11 }
 0xecf   :  { %v673_v53 = vpop.permute.xlu0 %672 }
 0xed0   :  { %v675_v54 = vmul.f32 %v673_v53, %v656_v45 }
 0xed2   :  { %702 = vrot.lane.b32.xlu2 %v675_v54, %s2018_s13 }
 0xed7   :  { %v689_v57 = vpop.permute.xlu0 %688 }
 0xed8   :  { %v691_v60 = vmul.f32 %v689_v57, %v2122_v17 }
 0xeda   :  { %v692_v63 = vadd.f32 %v691_v60, %v686_v62 }
 0xedc   :  { %v698_v3 = vadd.f32 %v697_v2, %v692_v63 }
 0xede   :  { %v699_v5 = vadd.f32 %v698_v3, %v2130_v28 }
 0xee0   :  { %v700_v6 = vmax.f32 %v699_v5, 0.0 }
 0xf2c   :  { %v703_v7 = vpop.permute.xlu2 %702 }
 0xf2d   :  { %v705_v8 = vsel %vm162_vm15, %v700_v6, %v703_v7 }
 0xf2e   :  { %1747 = vmatmul.msk.f32.vlgmr.msrb.gmra.mxu2 %vm165_vm0, %v705_v8 }
 0xfb1   :  { %v726_v1 = vpop.f32.mrf.mxu2 }
 0xfb2   :  { %v727_v4 = vadd.f32 %v726_v1, %v2141_v36  ;;  %v2279_v1 = vld [vmem:[%s2521_s1 + $0x30] sm:$0xff] }
 0xfb3   :  { %886 = vmatpush.msra.mxu0 %v2279_v1  ;;  %991 = vmatpush.msra.mxu2 %v2279_v1 }
 0xfb4   :  { %1908 = vtanh.f32 %v727_v4  ;;  %v1748_v13 = vmul.f32 -1.442695, %v727_v4  ;;  %v2284_v4 = vld [vmem:[%s2521_s1 + $0x28] sm:$0xff] }
 0xfb5   :  { %887 = vmatpush.msra.mxu0 %v2284_v4  ;;  %992 = vmatpush.msra.mxu2 %v2284_v4 }
 0xfb6   :  { %1910 = vpow2.f32 %v1748_v13 }
 0xfba   :  { %v1909_v12 = vpop.eup %1908 }
 0xfbb   :  { %751 = vrot.lane.b32.xlu1 %v1909_v12, %s2024_s26  ;;  %v2291_v12 = vld [vmem:[%s2521_s1 + $0x20] sm:$0xff] }
 0xfbc   :  { %v1911_v14 = vpop.eup %1910  ;;  %888 = vmatpush.msra.mxu0 %v2291_v12  ;;  %993 = vmatpush.msra.mxu2 %v2291_v12 }
 0xfbd   :  { %v732_v18 = vadd.f32 1.0, %v1911_v14 }
 0xfbe   :  { %1094 = vmatpush.msrb.mxu0 %v2279_v1  ;;  %1197 = vmatpush.msrb.mxu2 %v2279_v1 }
 0xfbf   :  { %1912 = vrcp.f32 %v732_v18  ;;  %v744_v24 = vand.u32 2147483648, %v732_v18  ;;  %vm738_vm12 = vweird.f32 %v732_v18  ;;  %v742_v25 = vand.u32 2147483647, %v732_v18 }
 0xfc0   :  { %1095 = vmatpush.msrb.mxu0 %v2284_v4  ;;  %1198 = vmatpush.msrb.mxu2 %v2284_v4 }
 0xfc1   :  { %v745_v27 = vor.u32 1.1754944e-38, %v744_v24  ;;  %vm743_vm14 = vcmp.eq.f32.partialorder %v742_v25, 8.507059e+37 }
 0xfc2   :  { %1096 = vmatpush.msrb.mxu0 %v2291_v12  ;;  %1199 = vmatpush.msrb.mxu2 %v2291_v12 }
 0xfc3   :  { %767 = vperm.xlu1 %1834, %v2099_v9  }
 0xfc5   :  { %v1913_v20 = vpop.eup %1912 }
 0xfc6   :  { %v734_v0 = vmul.f32 %v1913_v20, %v732_v18  ;;  %vm739_vm11 = vweird.f32 %v1913_v20  ;;  %v1989_v18 = vld [vmem:[%s2521_s1 + $0x40] sm:$0xff] }
 0xfc7   :  { %vm740_vm13 = vmor %vm738_vm12, %vm739_vm11 }
 0xfc8   :  { %v735_v21 = vsub.f32 1.0, %v734_v0  ;;  %v2312_v0 = vperm.slane %v1989_v18, 6 }
 0xfca   :  { %v736_v22 = vmul.f32 %v1913_v20, %v735_v21 }
 0xfcb   :  { %1837 = vset.pattern.permute.xlu1 %v2038_v32 }
 0xfcc   :  { %v737_v23 = vadd.f32 %v1913_v20, %v736_v22  ;;  %784 = vperm.xlu1 %1837, %v2231_v48  }
 0xfce   :  { %v741_v26 = vsel %vm740_vm13, %v1913_v20, %v737_v23  ;;  %v2310_v20 = vperm.slane %v1989_v18, 5  ;;  %v2318_v23 = vperm.slane %v1989_v18, 7 }
 0xfcf   :  { %v746_v9 = vsel %vm743_vm14, %v745_v27, %v741_v26 }
 0xfd0   :  { %v749_v33 = vmul.f32 %v746_v9, %v669_v51 }
 0xfd4   :  { %1839 = vset.pattern.permute.xlu1 %v2023_v34 }
0x102d   :  { %v752_v29 = vpop.permute.xlu1 %751 }
0x102e   :  { %v754_v31 = vmul.f32 %v752_v29, %v746_v9 }
0x1030   :  { %756 = vrot.lane.b32.xlu2 %v754_v31, %s2025_s27 }
0x1035   :  { %v768_v40 = vpop.permute.xlu1 %767 }
0x1036   :  { %v770_v44 = vmul.f32 %v768_v40, %v2118_v15 }
0x1038   :  { %772 = vperm.xlu2 %1835, %v2101_v10  }
0x103e   :  { %v2262_v46 = vpop.permute.xlu1 %784 }
0x103f   :  { %v787_v49 = vmul.f32 %v2262_v46, %v2124_v19  ;;  %v859_v22 = vmul.f32 %v2312_v0, %v2262_v46 }
0x1040   :  { %1840 = vset.pattern.permute.xlu2 %v2021_v30 }
0x108a   :  { %v757_v35 = vpop.permute.xlu2 %756 }
0x108b   :  { %v759_v37 = vadd.f32 %v757_v35, %v749_v33 }
0x108d   :  { %1914 = vtanh.f32 %v759_v37 }
0x1092   :  { %v773_v41 = vpop.permute.xlu2 %772 }
0x1093   :  { %v1915_v38 = vpop.eup %1914  ;;  %v775_v43 = vmul.f32 %v773_v41, %v2120_v16 }
0x1094   :  { %762 = vrot.lane.b32.xlu0 %v1915_v38, %s2025_s27 }
0x1095   :  { %v776_v47 = vadd.f32 %v775_v43, %v770_v44 }
0x109c   :  { %778 = vperm.xlu0 %1836, %v2231_v48  }
0x10a4   :  { %1838 = vset.pattern.permute.xlu0 %v2021_v30 }
0x1106   :  { %v763_v10 = vpop.permute.xlu0 %762 }
0x1107   :  { %v765_v39 = vmul.f32 %v763_v10, %v746_v9  ;;  %v19_v9 = vld [vmem:[%s2521_s1 + $0x38] sm:$0xff] }
0x1108   :  { %v2329_v31 = vperm.slane %v19_v9, 0 }
0x1109   :  { %792 = vrot.lane.b32.xlu2 %v765_v39, %s2018_s13 }
0x110e   :  { %v2256_v42 = vpop.permute.xlu0 %778 }
0x110f   :  { %v781_v45 = vmul.f32 %v2256_v42, %v2122_v17  ;;  %v857_v21 = vmul.f32 %v2310_v20, %v2256_v42 }
0x1111   :  { %v782_v48 = vadd.f32 %v781_v45, %v776_v47  ;;  %v860_v24 = vadd.f32 %v859_v22, %v857_v21 }
0x1113   :  { %v788_v50 = vadd.f32 %v787_v49, %v782_v48  ;;  %v862_v25 = vadd.f32 %v2318_v23, %v860_v24 }
0x1115   :  { %v789_v51 = vadd.f32 %v788_v50, %v2130_v28  ;;  %v863_v26 = vmax.f32 %v862_v25, 0.0 }
0x1117   :  { %v790_v52 = vmax.f32 %v789_v51, 0.0 }
0x1163   :  { %v793_v53 = vpop.permute.xlu2 %792 }
0x1164   :  { %v795_v54 = vsel %vm162_vm15, %v790_v52, %v793_v53 }
0x1165   :  { %1749 = vmatmul.msk.f32.vlgmr.msrb.gmra.mxu3 %vm165_vm0, %v795_v54 }
0x11e8   :  { %v816_v15 = vpop.f32.mrf.mxu3 }
0x11e9   :  { %v817_v16 = vadd.f32 %v816_v15, %v2141_v36  ;;  %v2342_v15 = vld [vmem:[%s2521_s1 + $0x50] sm:$0xff] }
0x11ea   :  { %951 = vmatpush.msra.mxu1 %v2342_v15  ;;  %1054 = vmatpush.msra.mxu3 %v2342_v15 }
0x11eb   :  { %1916 = vtanh.f32 %v817_v16  ;;  %v1750_v55 = vmul.f32 -1.442695, %v817_v16  ;;  %v2347_v16 = vld [vmem:[%s2521_s1 + $0x48] sm:$0xff] }
0x11ec   :  { %952 = vmatpush.msra.mxu1 %v2347_v16  ;;  %1055 = vmatpush.msra.mxu3 %v2347_v16 }
0x11ed   :  { %1918 = vpow2.f32 %v1750_v55 }
0x11ee   :  { %1157 = vmatpush.msrb.mxu1 %v2342_v15  ;;  %1260 = vmatpush.msrb.mxu3 %v2342_v15 }
0x11f0   :  { %1158 = vmatpush.msrb.mxu1 %v2347_v16  ;;  %1261 = vmatpush.msrb.mxu3 %v2347_v16 }
0x11f1   :  { %v1917_v17 = vpop.eup %1916 }
0x11f2   :  { %841 = vrot.lane.b32.xlu1 %v1917_v17, %s2024_s26 }
0x11f3   :  { %v1919_v56 = vpop.eup %1918 }
0x11f4   :  { %v822_v19 = vadd.f32 1.0, %v1919_v56 }
0x11f6   :  { %1920 = vrcp.f32 %v822_v19  ;;  %v834_v61 = vand.u32 2147483648, %v822_v19  ;;  %vm828_vm2 = vweird.f32 %v822_v19  ;;  %v832_v62 = vand.u32 2147483647, %v822_v19 }
0x11f8   :  { %v835_v63 = vor.u32 1.1754944e-38, %v834_v61  ;;  %vm833_vm4 = vcmp.eq.f32.partialorder %v832_v62, 8.507059e+37 }
0x11fc   :  { %v1921_v57 = vpop.eup %1920 }
0x11fd   :  { %v824_v28 = vmul.f32 %v1921_v57, %v822_v19  ;;  %vm829_vm1 = vweird.f32 %v1921_v57  ;;  %v23_v19 = vld [vmem:[%s2521_s1 + $0x58] sm:$0xff]  ;;  %s2039_s1 = smov 2  }
0x11fe   :  { %vm830_vm3 = vmor %vm828_vm2, %vm829_vm1 }
0x11ff   :  { %v825_v58 = vsub.f32 1.0, %v824_v28 }
0x1201   :  { %v826_v59 = vmul.f32 %v1921_v57, %v825_v58 }
0x1203   :  { %v827_v60 = vadd.f32 %v1921_v57, %v826_v59 }
0x1205   :  { %v831_v36 = vsel %vm830_vm3, %v1921_v57, %v827_v60  ;;  %v2365_v57 = vperm.slane %v23_v19, 0 }
0x1206   :  { %v836_v3 = vsel %vm833_vm4, %v835_v63, %v831_v36 }
0x1207   :  { %v839_v6 = vmul.f32 %v836_v3, %v759_v37 }
0x1264   :  { %v842_v2 = vpop.permute.xlu1 %841 }
0x1265   :  { %v844_v5 = vmul.f32 %v842_v2, %v836_v3 }
0x1267   :  { %846 = vrot.lane.b32.xlu2 %v844_v5, %s2025_s27 }
0x12c1   :  { %v847_v7 = vpop.permute.xlu2 %846 }
0x12c2   :  { %v2272_v8 = vadd.f32 %v847_v7, %v839_v6 }
0x12c4   :  { %1922 = vtanh.f32 %v2272_v8 }
0x12ca   :  { %v1923_v11 = vpop.eup %1922 }
0x12cb   :  { %852 = vrot.lane.b32.xlu0 %v1923_v11, %s2025_s27 }
0x133d   :  { %v853_v13 = vpop.permute.xlu0 %852 }
0x133e   :  { %v2303_v14 = vmul.f32 %v853_v13, %v836_v3 }
0x1340   :  { %865 = vrot.lane.b32.xlu1 %v2303_v14, %s2018_s13 }
0x13b2   :  { %v866_v27 = vpop.permute.xlu1 %865 }
0x13b3   :  { %v868_v29 = vsel %vm162_vm15, %v863_v26, %v866_v27 }
0x13b4   :  { %1751 = vmatmul.msk.f32.vlgmr.msra.gmra.mxu0 %vm165_vm0, %v868_v29 }
0x13b5   :  { %1300 = vmatpush.msra.mxu0 %v2279_v1 }
0x13b7   :  { %1301 = vmatpush.msra.mxu0 %v2284_v4 }
0x13b9   :  { %1302 = vmatpush.msra.mxu0 %v2291_v12 }
0x1431   :  { %v890_v32 = vpop.f32.mrf.mxu0 }
0x1432   :  { %v891_v33 = vadd.f32 %v890_v32, %v2329_v31 }
0x1434   :  { %1924 = vtanh.f32 %v891_v33  ;;  %v1752_v37 = vmul.f32 -1.442695, %v891_v33 }
0x1436   :  { %1926 = vpow2.f32 %v1752_v37 }
0x143a   :  { %v1925_v35 = vpop.eup %1924 }
0x143b   :  { %915 = vrot.lane.b32.xlu2 %v1925_v35, %s2024_s26 }
0x143c   :  { %v1927_v38 = vpop.eup %1926 }
0x143d   :  { %v896_v10 = vadd.f32 1.0, %v1927_v38 }
0x143f   :  { %1928 = vrcp.f32 %v896_v10  ;;  %v908_v44 = vand.u32 2147483648, %v896_v10  ;;  %vm902_vm6 = vweird.f32 %v896_v10  ;;  %v906_v45 = vand.u32 2147483647, %v896_v10 }
0x1441   :  { %v909_v47 = vor.u32 1.1754944e-38, %v908_v44  ;;  %vm907_vm8 = vcmp.eq.f32.partialorder %v906_v45, 8.507059e+37 }
0x1445   :  { %v1929_v39 = vpop.eup %1928 }
0x1446   :  { %v898_v40 = vmul.f32 %v1929_v39, %v896_v10  ;;  %vm903_vm5 = vweird.f32 %v1929_v39 }
0x1447   :  { %vm904_vm7 = vmor %vm902_vm6, %vm903_vm5 }
0x1448   :  { %v899_v41 = vsub.f32 1.0, %v898_v40 }
0x144a   :  { %v900_v42 = vmul.f32 %v1929_v39, %v899_v41 }
0x144c   :  { %v901_v43 = vadd.f32 %v1929_v39, %v900_v42 }
0x144e   :  { %v905_v46 = vsel %vm904_vm7, %v1929_v39, %v901_v43 }
0x144f   :  { %v910_v49 = vsel %vm907_vm8, %v909_v47, %v905_v46 }
0x1450   :  { %v913_v51 = vmul.f32 %v910_v49, %v2272_v8 }
0x1495   :  { %v916_v48 = vpop.permute.xlu2 %915 }
0x1496   :  { %v918_v50 = vmul.f32 %v916_v48, %v910_v49 }
0x1498   :  { %920 = vrot.lane.b32.xlu0 %v918_v50, %s2025_s27 }
0x150a   :  { %v921_v52 = vpop.permute.xlu0 %920 }
0x150b   :  { %v2335_v53 = vadd.f32 %v921_v52, %v913_v51 }
0x150d   :  { %1930 = vtanh.f32 %v2335_v53 }
0x1513   :  { %v1931_v54 = vpop.eup %1930 }
0x1514   :  { %926 = vrot.lane.b32.xlu1 %v1931_v54, %s2025_s27 }
0x1586   :  { %v927_v17 = vpop.permute.xlu1 %926 }
0x1587   :  { %v929_v55 = vmul.f32 %v927_v17, %v910_v49 }
0x1589   :  { %932 = vrot.lane.b32.xlu2 %v929_v55, %s2019_s14 }
0x1591   :  { %971 = vrot.lane.b32.xlu2 %v929_v55, %s2018_s13 }
0x15e3   :  { %v933_v56 = vpop.permute.xlu2 %932 }
0x15e4   :  { %1753 = vmatmul.msk.f32.vlgmr.msra.gmra.mxu1 %vm934_vm9, %v933_v56 }
0x15e5   :  { %1363 = vmatpush.msra.mxu1 %v2342_v15 }
0x15e7   :  { %1364 = vmatpush.msra.mxu1 %v2347_v16 }
0x15eb   :  { %v972_v3 = vpop.permute.xlu2 %971 }
0x1661   :  { %v954_v28 = vpop.f32.mrf.mxu1 }
0x1662   :  { %v2368_v58 = vadd.f32 %v954_v28, %v2365_v57 }
0x1664   :  { %964 = vperm.xlu1 %1839, %v2368_v58   ;;  %959 = vperm.xlu0 %1838, %v2368_v58  }
0x166c   :  { %1841 = vset.pattern.permute.xlu0 %v2023_v34  ;;  %1842 = vset.pattern.permute.xlu1 %v2021_v30 }
0x16d6   :  { %v965_v59 = vpop.permute.xlu1 %964  ;;  %v960_v60 = vpop.permute.xlu0 %959 }
0x16d7   :  { %v967_v61 = vmul.f32 %v965_v59, %v2312_v0  ;;  %v962_v62 = vmul.f32 %v960_v60, %v2310_v20 }
0x16d9   :  { %v968_v36 = vadd.f32 %v967_v61, %v962_v62 }
0x16db   :  { %v969_v63 = vadd.f32 %v968_v36, %v2318_v23 }
0x16dd   :  { %v970_v2 = vmax.f32 %v969_v63, 0.0 }
0x16df   :  { %v974_v5 = vsel %vm162_vm15, %v970_v2, %v972_v3 }
0x16e0   :  { %1754 = vmatmul.msk.f32.vlgmr.msra.gmra.mxu2 %vm165_vm0, %v974_v5 }
0x16e1   :  { %1403 = vmatpush.msra.mxu2 %v2279_v1 }
0x16e3   :  { %1404 = vmatpush.msra.mxu2 %v2284_v4 }
0x16e5   :  { %1405 = vmatpush.msra.mxu2 %v2291_v12 }
0x1763   :  { %v995_v6 = vpop.f32.mrf.mxu2 }
0x1764   :  { %v996_v7 = vadd.f32 %v995_v6, %v2329_v31 }
0x1766   :  { %1932 = vtanh.f32 %v996_v7  ;;  %v1755_v11 = vmul.f32 -1.442695, %v996_v7 }
0x1768   :  { %1934 = vpow2.f32 %v1755_v11 }
0x176c   :  { %v1933_v8 = vpop.eup %1932 }
0x176d   :  { %1020 = vrot.lane.b32.xlu1 %v1933_v8, %s2024_s26 }
0x176e   :  { %v1935_v13 = vpop.eup %1934 }
0x176f   :  { %v1001_v18 = vadd.f32 1.0, %v1935_v13 }
0x1771   :  { %1936 = vrcp.f32 %v1001_v18  ;;  %v1013_v27 = vand.u32 2147483648, %v1001_v18  ;;  %vm1007_vm11 = vweird.f32 %v1001_v18  ;;  %v1011_v29 = vand.u32 2147483647, %v1001_v18 }
0x1773   :  { %v1014_v32 = vor.u32 1.1754944e-38, %v1013_v27  ;;  %vm1012_vm13 = vcmp.eq.f32.partialorder %v1011_v29, 8.507059e+37 }
0x1777   :  { %v1937_v21 = vpop.eup %1936 }
0x1778   :  { %v1003_v22 = vmul.f32 %v1937_v21, %v1001_v18  ;;  %vm1008_vm10 = vweird.f32 %v1937_v21 }
0x1779   :  { %vm1009_vm12 = vmor %vm1007_vm11, %vm1008_vm10 }
0x177a   :  { %v1004_v24 = vsub.f32 1.0, %v1003_v22 }
0x177c   :  { %v1005_v25 = vmul.f32 %v1937_v21, %v1004_v24 }
0x177e   :  { %v1006_v26 = vadd.f32 %v1937_v21, %v1005_v25 }
0x1780   :  { %v1010_v9 = vsel %vm1009_vm12, %v1937_v21, %v1006_v26 }
0x1781   :  { %v1015_v35 = vsel %vm1012_vm13, %v1014_v32, %v1010_v9 }
0x1782   :  { %v1018_v38 = vmul.f32 %v1015_v35, %v2335_v53 }
0x17df   :  { %v1021_v33 = vpop.permute.xlu1 %1020 }
0x17e0   :  { %v1023_v37 = vmul.f32 %v1021_v33, %v1015_v35 }
0x17e2   :  { %1025 = vrot.lane.b32.xlu2 %v1023_v37, %s2025_s27 }
0x183c   :  { %v1026_v10 = vpop.permute.xlu2 %1025 }
0x183d   :  { %v1028_v39 = vadd.f32 %v1026_v10, %v1018_v38 }
0x183f   :  { %1938 = vtanh.f32 %v1028_v39 }
0x1845   :  { %v1939_v40 = vpop.eup %1938 }
0x1846   :  { %1031 = vrot.lane.b32.xlu0 %v1939_v40, %s2025_s27 }
0x18b8   :  { %v1032_v41 = vpop.permute.xlu0 %1031 }
0x18b9   :  { %v1034_v42 = vmul.f32 %v1032_v41, %v1015_v35 }
0x18bb   :  { %1036 = vrot.lane.b32.xlu1 %v1034_v42, %s2019_s14 }
0x18c3   :  { %1074 = vrot.lane.b32.xlu1 %v1034_v42, %s2018_s13 }
0x192d   :  { %v1037_v43 = vpop.permute.xlu1 %1036 }
0x192e   :  { %1756 = vmatmul.msk.f32.vlgmr.msra.gmra.mxu3 %vm934_vm9, %v1037_v43 }
0x192f   :  { %1466 = vmatpush.msra.mxu3 %v2342_v15 }
0x1931   :  { %1467 = vmatpush.msra.mxu3 %v2347_v16 }
0x1935   :  { %v1075_v53 = vpop.permute.xlu1 %1074 }
0x19b1   :  { %v1057_v44 = vpop.f32.mrf.mxu3 }
0x19b2   :  { %v2393_v45 = vadd.f32 %v1057_v44, %v2365_v57 }
0x19b4   :  { %1067 = vperm.xlu0 %1841, %v2393_v45   ;;  %1062 = vperm.xlu2 %1840, %v2393_v45  }
0x19bc   :  { %1843 = vset.pattern.permute.xlu2 %v2023_v34 }
0x1a0e   :  { %v1063_v46 = vpop.permute.xlu2 %1062 }
0x1a0f   :  { %v1065_v48 = vmul.f32 %v1063_v46, %v2310_v20 }
0x1a26   :  { %v1068_v47 = vpop.permute.xlu0 %1067 }
0x1a27   :  { %v1070_v49 = vmul.f32 %v1068_v47, %v2312_v0 }
0x1a29   :  { %v1071_v50 = vadd.f32 %v1070_v49, %v1065_v48 }
0x1a2b   :  { %v1072_v51 = vadd.f32 %v1071_v50, %v2318_v23 }
0x1a2d   :  { %v1073_v52 = vmax.f32 %v1072_v51, 0.0 }
0x1a2f   :  { %v1077_v54 = vsel %vm162_vm15, %v1073_v52, %v1075_v53 }
0x1a30   :  { %1757 = vmatmul.msk.f32.vlgmr.msrb.gmra.mxu0 %vm165_vm0, %v1077_v54 }
0x1a31   :  { %1506 = vmatpush.msrb.mxu0 %v2279_v1 }
0x1a33   :  { %1507 = vmatpush.msrb.mxu0 %v2284_v4 }
0x1a35   :  { %1508 = vmatpush.msrb.mxu0 %v2291_v12 }
0x1aad   :  { %v1098_v17 = vpop.f32.mrf.mxu0 }
0x1aae   :  { %v1099_v55 = vadd.f32 %v1098_v17, %v2329_v31 }
0x1ab0   :  { %1940 = vtanh.f32 %v1099_v55  ;;  %v1758_v19 = vmul.f32 -1.442695, %v1099_v55 }
0x1ab2   :  { %1942 = vpow2.f32 %v1758_v19 }
0x1ab6   :  { %v1941_v56 = vpop.eup %1940 }
0x1ab7   :  { %1123 = vrot.lane.b32.xlu2 %v1941_v56, %s2024_s26 }
0x1ab8   :  { %v1943_v28 = vpop.eup %1942 }
0x1ab9   :  { %v1104_v59 = vadd.f32 1.0, %v1943_v28 }
0x1abb   :  { %1944 = vrcp.f32 %v1104_v59  ;;  %v1116_v2 = vand.u32 2147483648, %v1104_v59  ;;  %vm1110_vm1 = vweird.f32 %v1104_v59  ;;  %v1114_v3 = vand.u32 2147483647, %v1104_v59 }
0x1abd   :  { %v1117_v6 = vor.u32 1.1754944e-38, %v1116_v2  ;;  %vm1115_vm3 = vcmp.eq.f32.partialorder %v1114_v3, 8.507059e+37 }
0x1ac1   :  { %v1945_v60 = vpop.eup %1944 }
0x1ac2   :  { %v1106_v61 = vmul.f32 %v1945_v60, %v1104_v59  ;;  %vm1111_vm14 = vweird.f32 %v1945_v60 }
0x1ac3   :  { %vm1112_vm2 = vmor %vm1110_vm1, %vm1111_vm14 }
0x1ac4   :  { %v1107_v62 = vsub.f32 1.0, %v1106_v61 }
0x1ac6   :  { %v1108_v36 = vmul.f32 %v1945_v60, %v1107_v62 }
0x1ac8   :  { %v1109_v63 = vadd.f32 %v1945_v60, %v1108_v36 }
0x1aca   :  { %v1113_v5 = vsel %vm1112_vm2, %v1945_v60, %v1109_v63 }
0x1acb   :  { %v1118_v8 = vsel %vm1115_vm3, %v1117_v6, %v1113_v5 }
0x1acc   :  { %v1121_v13 = vmul.f32 %v1118_v8, %v1028_v39 }
0x1b11   :  { %v1124_v7 = vpop.permute.xlu2 %1123 }
0x1b12   :  { %v1126_v11 = vmul.f32 %v1124_v7, %v1118_v8 }
0x1b14   :  { %1128 = vrot.lane.b32.xlu1 %v1126_v11, %s2025_s27 }
0x1b86   :  { %v1129_v18 = vpop.permute.xlu1 %1128 }
0x1b87   :  { %v1131_v21 = vadd.f32 %v1129_v18, %v1121_v13 }
0x1b89   :  { %1946 = vtanh.f32 %v1131_v21 }
0x1b8f   :  { %v1947_v22 = vpop.eup %1946 }
0x1b90   :  { %1134 = vrot.lane.b32.xlu2 %v1947_v22, %s2025_s27 }
0x1bea   :  { %v1135_v24 = vpop.permute.xlu2 %1134 }
0x1beb   :  { %v1137_v25 = vmul.f32 %v1135_v24, %v1118_v8 }
0x1bed   :  { %1139 = vrot.lane.b32.xlu0 %v1137_v25, %s2019_s14 }
0x1bf5   :  { %1177 = vrot.lane.b32.xlu0 %v1137_v25, %s2018_s13 }
0x1c5f   :  { %v1140_v26 = vpop.permute.xlu0 %1139 }
0x1c60   :  { %1759 = vmatmul.msk.f32.vlgmr.msrb.gmra.mxu1 %vm934_vm9, %v1140_v26 }
0x1c61   :  { %1569 = vmatpush.msrb.mxu1 %v2342_v15 }
0x1c63   :  { %1570 = vmatpush.msrb.mxu1 %v2347_v16 }
0x1c67   :  { %v1178_v39 = vpop.permute.xlu0 %1177 }
0x1cdd   :  { %v1160_v27 = vpop.f32.mrf.mxu1 }
0x1cde   :  { %v2416_v29 = vadd.f32 %v1160_v27, %v2365_v57 }
0x1ce0   :  { %1170 = vperm.xlu2 %1843, %v2416_v29   ;;  %1165 = vperm.xlu1 %1842, %v2416_v29  }
0x1ce8   :  { %1844 = vset.pattern.permute.xlu2 %v2021_v30  ;;  %1846 = vset.pattern.permute.xlu1 %v2023_v34 }
0x1d3a   :  { %v1171_v9 = vpop.permute.xlu2 %1170 }
0x1d3b   :  { %v1173_v33 = vmul.f32 %v1171_v9, %v2312_v0 }
0x1d52   :  { %v1166_v32 = vpop.permute.xlu1 %1165 }
0x1d53   :  { %v1168_v35 = vmul.f32 %v1166_v32, %v2310_v20 }
0x1d55   :  { %v1174_v37 = vadd.f32 %v1173_v33, %v1168_v35 }
0x1d57   :  { %v1175_v38 = vadd.f32 %v1174_v37, %v2318_v23 }
0x1d59   :  { %v1176_v10 = vmax.f32 %v1175_v38, 0.0 }
0x1d5b   :  { %v1180_v40 = vsel %vm162_vm15, %v1176_v10, %v1178_v39 }
0x1d5c   :  { %1760 = vmatmul.msk.f32.vlgmr.msrb.gmra.mxu2 %vm165_vm0, %v1180_v40 }
0x1d5d   :  { %1609 = vmatpush.msrb.mxu2 %v2279_v1 }
0x1d5f   :  { %1610 = vmatpush.msrb.mxu2 %v2284_v4 }
0x1d61   :  { %1611 = vmatpush.msrb.mxu2 %v2291_v12 }
0x1ddf   :  { %v1201_v41 = vpop.f32.mrf.mxu2 }
0x1de0   :  { %v1202_v42 = vadd.f32 %v1201_v41, %v2329_v31 }
0x1de2   :  { %1948 = vtanh.f32 %v1202_v42  ;;  %v1761_v44 = vmul.f32 -1.442695, %v1202_v42 }
0x1de4   :  { %1950 = vpow2.f32 %v1761_v44 }
0x1de8   :  { %v1949_v43 = vpop.eup %1948 }
0x1de9   :  { %1226 = vrot.lane.b32.xlu1 %v1949_v43, %s2024_s26 }
0x1dea   :  { %v1951_v46 = vpop.eup %1950 }
0x1deb   :  { %v1207_v47 = vadd.f32 1.0, %v1951_v46 }
0x1ded   :  { %1952 = vrcp.f32 %v1207_v47  ;;  %v1219_v4 = vand.u32 2147483648, %v1207_v47  ;;  %vm1213_vm5 = vweird.f32 %v1207_v47  ;;  %v1217_v12 = vand.u32 2147483647, %v1207_v47 }
0x1def   :  { %v1220_v53 = vor.u32 1.1754944e-38, %v1219_v4  ;;  %vm1218_vm7 = vcmp.eq.f32.partialorder %v1217_v12, 8.507059e+37 }
0x1df3   :  { %v1953_v48 = vpop.eup %1952 }
0x1df4   :  { %v1209_v49 = vmul.f32 %v1953_v48, %v1207_v47  ;;  %vm1214_vm4 = vweird.f32 %v1953_v48 }
0x1df5   :  { %vm1215_vm6 = vmor %vm1213_vm5, %vm1214_vm4 }
0x1df6   :  { %v1210_v50 = vsub.f32 1.0, %v1209_v49 }
0x1df8   :  { %v1211_v1 = vmul.f32 %v1953_v48, %v1210_v50 }
0x1dfa   :  { %v1212_v51 = vadd.f32 %v1953_v48, %v1211_v1 }
0x1dfc   :  { %v1216_v52 = vsel %vm1215_vm6, %v1953_v48, %v1212_v51 }
0x1dfd   :  { %v1221_v17 = vsel %vm1218_vm7, %v1220_v53, %v1216_v52 }
0x1dfe   :  { %v1224_v56 = vmul.f32 %v1221_v17, %v1131_v21 }
0x1e5b   :  { %v1227_v54 = vpop.permute.xlu1 %1226 }
0x1e5c   :  { %v1229_v55 = vmul.f32 %v1227_v54, %v1221_v17 }
0x1e5e   :  { %1231 = vrot.lane.b32.xlu2 %v1229_v55, %s2025_s27 }
0x1eb8   :  { %v1232_v19 = vpop.permute.xlu2 %1231 }
0x1eb9   :  { %v1234_v28 = vadd.f32 %v1232_v19, %v1224_v56 }
0x1ebb   :  { %1954 = vtanh.f32 %v1234_v28 }
0x1ec1   :  { %v1955_v59 = vpop.eup %1954 }
0x1ec2   :  { %1237 = vrot.lane.b32.xlu0 %v1955_v59, %s2025_s27 }
0x1f34   :  { %v1238_v60 = vpop.permute.xlu0 %1237 }
0x1f35   :  { %v1240_v61 = vmul.f32 %v1238_v60, %v1221_v17 }
0x1f37   :  { %1242 = vrot.lane.b32.xlu1 %v1240_v61, %s2019_s14 }
0x1f3f   :  { %1280 = vrot.lane.b32.xlu1 %v1240_v61, %s2018_s13 }
0x1fa9   :  { %v1243_v62 = vpop.permute.xlu1 %1242 }
0x1faa   :  { %1762 = vmatmul.msk.f32.vlgmr.msrb.gmra.mxu3 %vm934_vm9, %v1243_v62 }
0x1fab   :  { %1672 = vmatpush.msrb.mxu3 %v2342_v15 }
0x1fad   :  { %1673 = vmatpush.msrb.mxu3 %v2347_v16 }
0x1fb1   :  { %v1281_v8 = vpop.permute.xlu1 %1280 }
0x202d   :  { %v1263_v36 = vpop.f32.mrf.mxu3 }
0x202e   :  { %v2440_v63 = vadd.f32 %v1263_v36, %v2365_v57 }
0x2030   :  { %1273 = vperm.xlu0 %1841, %v2440_v63   ;;  %1268 = vperm.xlu2 %1844, %v2440_v63  }
0x2038   :  { %1845 = vset.pattern.permute.xlu0 %v2021_v30 }
0x208a   :  { %v1269_v2 = vpop.permute.xlu2 %1268 }
0x208b   :  { %v1271_v5 = vmul.f32 %v1269_v2, %v2310_v20 }
0x20a2   :  { %v1274_v3 = vpop.permute.xlu0 %1273 }
0x20a3   :  { %v1276_v6 = vmul.f32 %v1274_v3, %v2312_v0 }
0x20a5   :  { %v1277_v7 = vadd.f32 %v1276_v6, %v1271_v5 }
0x20a7   :  { %v1278_v15 = vadd.f32 %v1277_v7, %v2318_v23 }
0x20a9   :  { %v1279_v16 = vmax.f32 %v1278_v15, 0.0 }
0x20ab   :  { %v1283_v11 = vsel %vm162_vm15, %v1279_v16, %v1281_v8 }
0x20ac   :  { %1763 = vmatmul.msk.f32.vlgmr.msra.gmra.mxu0 %vm165_vm0, %v1283_v11 }
0x2129   :  { %v1304_v13 = vpop.f32.mrf.mxu0 }
0x212a   :  { %v1305_v18 = vadd.f32 %v1304_v13, %v2329_v31 }
0x212c   :  { %1956 = vtanh.f32 %v1305_v18  ;;  %v1764_v22 = vmul.f32 -1.442695, %v1305_v18 }
0x212e   :  { %1958 = vpow2.f32 %v1764_v22 }
0x2132   :  { %v1957_v21 = vpop.eup %1956 }
0x2133   :  { %1329 = vrot.lane.b32.xlu2 %v1957_v21, %s2024_s26 }
0x2134   :  { %v1959_v24 = vpop.eup %1958 }
0x2135   :  { %v1310_v25 = vadd.f32 1.0, %v1959_v24 }
0x2137   :  { %1960 = vrcp.f32 %v1310_v25  ;;  %v1322_v35 = vand.u32 2147483648, %v1310_v25  ;;  %vm1316_vm10 = vweird.f32 %v1310_v25  ;;  %v1320_v37 = vand.u32 2147483647, %v1310_v25 }
0x2139   :  { %v1323_v10 = vor.u32 1.1754944e-38, %v1322_v35  ;;  %vm1321_vm12 = vcmp.eq.f32.partialorder %v1320_v37, 8.507059e+37 }
0x213d   :  { %v1961_v26 = vpop.eup %1960 }
0x213e   :  { %v1312_v27 = vmul.f32 %v1961_v26, %v1310_v25  ;;  %vm1317_vm8 = vweird.f32 %v1961_v26 }
0x213f   :  { %vm1318_vm11 = vmor %vm1316_vm10, %vm1317_vm8 }
0x2140   :  { %v1313_v9 = vsub.f32 1.0, %v1312_v27 }
0x2142   :  { %v1314_v32 = vmul.f32 %v1961_v26, %v1313_v9 }
0x2144   :  { %v1315_v33 = vadd.f32 %v1961_v26, %v1314_v32 }
0x2146   :  { %v1319_v38 = vsel %vm1318_vm11, %v1961_v26, %v1315_v33  ;;  %vm1703_vm11 = vcmask 15360  }
0x2147   :  { %v1324_v40 = vsel %vm1321_vm12, %v1323_v10, %v1319_v38  ;;  %vm1705_vm12 = vcmask 31744  }
0x2148   :  { %v1327_v42 = vmul.f32 %v1324_v40, %v1234_v28 }
0x218d   :  { %v1330_v39 = vpop.permute.xlu2 %1329 }
0x218e   :  { %v1332_v41 = vmul.f32 %v1330_v39, %v1324_v40 }
0x2190   :  { %1334 = vrot.lane.b32.xlu0 %v1332_v41, %s2025_s27 }
0x2202   :  { %v1335_v43 = vpop.permute.xlu0 %1334 }
0x2203   :  { %v1337_v44 = vadd.f32 %v1335_v43, %v1327_v42 }
0x2205   :  { %1962 = vtanh.f32 %v1337_v44 }
0x220b   :  { %v1963_v46 = vpop.eup %1962 }
0x220c   :  { %1340 = vrot.lane.b32.xlu1 %v1963_v46, %s2025_s27 }
0x227e   :  { %v1341_v47 = vpop.permute.xlu1 %1340 }
0x227f   :  { %v1343_v48 = vmul.f32 %v1341_v47, %v1324_v40 }
0x2281   :  { %1345 = vrot.lane.b32.xlu2 %v1343_v48, %s2019_s14 }
0x2289   :  { %1383 = vrot.lane.b32.xlu2 %v1343_v48, %s2018_s13 }
0x22db   :  { %v1346_v49 = vpop.permute.xlu2 %1345 }
0x22dc   :  { %1765 = vmatmul.msk.f32.vlgmr.msra.gmra.mxu1 %vm934_vm9, %v1346_v49 }
0x22e3   :  { %v1384_v55 = vpop.permute.xlu2 %1383 }
0x2359   :  { %v1366_v50 = vpop.f32.mrf.mxu1 }
0x235a   :  { %v2458_v1 = vadd.f32 %v1366_v50, %v2365_v57 }
0x235c   :  { %1376 = vperm.xlu1 %1846, %v2458_v1   ;;  %1371 = vperm.xlu0 %1845, %v2458_v1  }
0x2364   :  { %1847 = vset.pattern.permute.xlu0 %v2023_v34  ;;  %1848 = vset.pattern.permute.xlu1 %v2021_v30 }
0x23ce   :  { %v1377_v51 = vpop.permute.xlu1 %1376  ;;  %v1372_v4 = vpop.permute.xlu0 %1371 }
0x23cf   :  { %v1379_v12 = vmul.f32 %v1377_v51, %v2312_v0  ;;  %v1374_v52 = vmul.f32 %v1372_v4, %v2310_v20 }
0x23d1   :  { %v1380_v53 = vadd.f32 %v1379_v12, %v1374_v52 }
0x23d3   :  { %v1381_v54 = vadd.f32 %v1380_v53, %v2318_v23 }
0x23d5   :  { %v1382_v17 = vmax.f32 %v1381_v54, 0.0 }
0x23d7   :  { %v1386_v56 = vsel %vm162_vm15, %v1382_v17, %v1384_v55 }
0x23d8   :  { %1766 = vmatmul.msk.f32.vlgmr.msra.gmra.mxu2 %vm165_vm0, %v1386_v56 }
0x245b   :  { %v1407_v19 = vpop.f32.mrf.mxu2 }
0x245c   :  { %v1408_v28 = vadd.f32 %v1407_v19, %v2329_v31 }
0x245e   :  { %1964 = vtanh.f32 %v1408_v28  ;;  %v1767_v59 = vmul.f32 -1.442695, %v1408_v28 }
0x2460   :  { %1966 = vpow2.f32 %v1767_v59 }
0x2464   :  { %v1965_v30 = vpop.eup %1964 }
0x2465   :  { %1432 = vrot.lane.b32.xlu1 %v1965_v30, %s2024_s26 }
0x2466   :  { %v1967_v60 = vpop.eup %1966 }
0x2467   :  { %v1413_v61 = vadd.f32 1.0, %v1967_v60 }
0x2469   :  { %1968 = vrcp.f32 %v1413_v61  ;;  %v1425_v6 = vand.u32 2147483648, %v1413_v61  ;;  %vm1419_vm14 = vweird.f32 %v1413_v61  ;;  %v1423_v7 = vand.u32 2147483647, %v1413_v61 }
0x246b   :  { %v1426_v16 = vor.u32 1.1754944e-38, %v1425_v6  ;;  %vm1424_vm2 = vcmp.eq.f32.partialorder %v1423_v7, 8.507059e+37 }
0x246f   :  { %v1969_v62 = vpop.eup %1968 }
0x2470   :  { %v1415_v36 = vmul.f32 %v1969_v62, %v1413_v61  ;;  %vm1420_vm13 = vweird.f32 %v1969_v62 }
0x2471   :  { %vm1421_vm1 = vmor %vm1419_vm14, %vm1420_vm13  ;;  %vm1707_vm13 = vcmask 48128   ;;  %vm1710_vm14 = vcmask 80896  }
0x2472   :  { %v1416_v2 = vsub.f32 1.0, %v1415_v36 }
0x2474   :  { %v1417_v3 = vmul.f32 %v1969_v62, %v1416_v2 }
0x2476   :  { %v1418_v5 = vadd.f32 %v1969_v62, %v1417_v3 }
0x2478   :  { %v1422_v15 = vsel %vm1421_vm1, %v1969_v62, %v1418_v5  ;;  %vm1712_vm1 = vcmask 97280  }
0x2479   :  { %v1427_v11 = vsel %vm1424_vm2, %v1426_v16, %v1422_v15  ;;  %vm1714_vm2 = vcmask 113664  }
0x247a   :  { %v1430_v18 = vmul.f32 %v1427_v11, %v1337_v44 }
0x24d7   :  { %v1433_v8 = vpop.permute.xlu1 %1432 }
0x24d8   :  { %v1435_v13 = vmul.f32 %v1433_v8, %v1427_v11 }
0x24da   :  { %1437 = vrot.lane.b32.xlu2 %v1435_v13, %s2025_s27 }
0x2534   :  { %v1438_v21 = vpop.permute.xlu2 %1437 }
0x2535   :  { %v1440_v22 = vadd.f32 %v1438_v21, %v1430_v18 }
0x2537   :  { %1970 = vtanh.f32 %v1440_v22 }
0x253d   :  { %v1971_v24 = vpop.eup %1970 }
0x253e   :  { %1443 = vrot.lane.b32.xlu0 %v1971_v24, %s2025_s27 }
0x25b0   :  { %v1444_v25 = vpop.permute.xlu0 %1443 }
0x25b1   :  { %v1446_v26 = vmul.f32 %v1444_v25, %v1427_v11 }
0x25b3   :  { %1448 = vrot.lane.b32.xlu1 %v1446_v26, %s2019_s14 }
0x25bb   :  { %1486 = vrot.lane.b32.xlu1 %v1446_v26, %s2018_s13 }
0x2625   :  { %v1449_v27 = vpop.permute.xlu1 %1448 }
0x2626   :  { %1768 = vmatmul.msk.f32.vlgmr.msra.gmra.mxu3 %vm934_vm9, %v1449_v27 }
0x262d   :  { %v1487_v41 = vpop.permute.xlu1 %1486 }
0x26a9   :  { %v1469_v9 = vpop.f32.mrf.mxu3 }
0x26aa   :  { %v2477_v32 = vadd.f32 %v1469_v9, %v2365_v57 }
0x26ac   :  { %1479 = vperm.xlu0 %1847, %v2477_v32   ;;  %1474 = vperm.xlu2 %1844, %v2477_v32  }
0x26b4   :  { %1849 = vset.pattern.permute.xlu2 %v2023_v34 }
0x2706   :  { %v1475_v33 = vpop.permute.xlu2 %1474 }
0x2707   :  { %v1477_v37 = vmul.f32 %v1475_v33, %v2310_v20 }
0x271e   :  { %v1480_v35 = vpop.permute.xlu0 %1479 }
0x271f   :  { %v1482_v38 = vmul.f32 %v1480_v35, %v2312_v0 }
0x2721   :  { %v1483_v10 = vadd.f32 %v1482_v38, %v1477_v37 }
0x2723   :  { %v1484_v39 = vadd.f32 %v1483_v10, %v2318_v23 }
0x2725   :  { %v1485_v40 = vmax.f32 %v1484_v39, 0.0 }
0x2727   :  { %v1489_v42 = vsel %vm162_vm15, %v1485_v40, %v1487_v41 }
0x2728   :  { %1769 = vmatmul.msk.f32.vlgmr.msrb.gmra.mxu0 %vm165_vm0, %v1489_v42 }
0x27a5   :  { %v1510_v43 = vpop.f32.mrf.mxu0 }
0x27a6   :  { %v1511_v44 = vadd.f32 %v1510_v43, %v2329_v31 }
0x27a8   :  { %1972 = vtanh.f32 %v1511_v44  ;;  %v1770_v46 = vmul.f32 -1.442695, %v1511_v44 }
0x27aa   :  { %1974 = vpow2.f32 %v1770_v46 }
0x27ae   :  { %v1973_v34 = vpop.eup %1972 }
0x27af   :  { %1535 = vrot.lane.b32.xlu2 %v1973_v34, %s2024_s26 }
0x27b0   :  { %v1975_v47 = vpop.eup %1974 }
0x27b1   :  { %v1516_v48 = vadd.f32 1.0, %v1975_v47 }
0x27b3   :  { %1976 = vrcp.f32 %v1516_v48  ;;  %v1528_v52 = vand.u32 2147483648, %v1516_v48  ;;  %vm1522_vm4 = vweird.f32 %v1516_v48  ;;  %v1526_v53 = vand.u32 2147483647, %v1516_v48 }
0x27b5   :  { %v1529_v17 = vor.u32 1.1754944e-38, %v1528_v52  ;;  %vm1527_vm6 = vcmp.eq.f32.partialorder %v1526_v53, 8.507059e+37 }
0x27b9   :  { %v1977_v49 = vpop.eup %1976 }
0x27ba   :  { %v1518_v50 = vmul.f32 %v1977_v49, %v1516_v48  ;;  %vm1523_vm3 = vweird.f32 %v1977_v49 }
0x27bb   :  { %vm1524_vm5 = vmor %vm1522_vm4, %vm1523_vm3  ;;  %vm1717_vm3 = vcmask 261120  }
0x27bc   :  { %v1519_v51 = vsub.f32 1.0, %v1518_v50 }
0x27be   :  { %v1520_v4 = vmul.f32 %v1977_v49, %v1519_v51 }
0x27c0   :  { %v1521_v12 = vadd.f32 %v1977_v49, %v1520_v4 }
0x27c2   :  { %v1525_v54 = vsel %vm1524_vm5, %v1977_v49, %v1521_v12 }
0x27c3   :  { %v1530_v56 = vsel %vm1527_vm6, %v1529_v17, %v1525_v54 }
0x27c4   :  { %v1533_v28 = vmul.f32 %v1530_v56, %v1440_v22 }
0x2809   :  { %v1536_v55 = vpop.permute.xlu2 %1535 }
0x280a   :  { %v1538_v19 = vmul.f32 %v1536_v55, %v1530_v56 }
0x280c   :  { %1540 = vrot.lane.b32.xlu1 %v1538_v19, %s2025_s27 }
0x287e   :  { %v1541_v30 = vpop.permute.xlu1 %1540 }
0x287f   :  { %v1543_v59 = vadd.f32 %v1541_v30, %v1533_v28 }
0x2881   :  { %1978 = vtanh.f32 %v1543_v59 }
0x2887   :  { %v1979_v60 = vpop.eup %1978 }
0x2888   :  { %1546 = vrot.lane.b32.xlu2 %v1979_v60, %s2025_s27 }
0x28e2   :  { %v1547_v61 = vpop.permute.xlu2 %1546 }
0x28e3   :  { %v1549_v62 = vmul.f32 %v1547_v61, %v1530_v56 }
0x28e5   :  { %1551 = vrot.lane.b32.xlu0 %v1549_v62, %s2019_s14 }
0x28ed   :  { %1589 = vrot.lane.b32.xlu0 %v1549_v62, %s2018_s13  ;;  %s2040_s13 = smov 8  }
0x2957   :  { %v1552_v36 = vpop.permute.xlu0 %1551 }
0x2958   :  { %1771 = vmatmul.msk.f32.vlgmr.msrb.gmra.mxu1 %vm934_vm9, %v1552_v36 }
0x295f   :  { %v1590_v13 = vpop.permute.xlu0 %1589 }
0x29d5   :  { %v1572_v2 = vpop.f32.mrf.mxu1 }
0x29d6   :  { %v1573_v3 = vadd.f32 %v1572_v2, %v2365_v57 }
0x29d8   :  { %1582 = vperm.xlu2 %1849, %v1573_v3   ;;  %1577 = vperm.xlu1 %1848, %v1573_v3  }
0x2a32   :  { %v1583_v5 = vpop.permute.xlu2 %1582 }
0x2a33   :  { %v1585_v7 = vmul.f32 %v1583_v5, %v2312_v0 }
0x2a4a   :  { %v1578_v6 = vpop.permute.xlu1 %1577 }
0x2a4b   :  { %v1580_v15 = vmul.f32 %v1578_v6, %v2310_v20 }
0x2a4d   :  { %v1586_v16 = vadd.f32 %v1585_v7, %v1580_v15 }
0x2a4f   :  { %v1587_v8 = vadd.f32 %v1586_v16, %v2318_v23 }
0x2a51   :  { %v1588_v11 = vmax.f32 %v1587_v8, 0.0 }
0x2a53   :  { %v1592_v18 = vsel %vm162_vm15, %v1588_v11, %v1590_v13 }
0x2a54   :  { %1772 = vmatmul.msk.f32.vlgmr.msrb.gmra.mxu2 %vm165_vm0, %v1592_v18 }
0x2ad7   :  { %v1613_v21 = vpop.f32.mrf.mxu2 }
0x2ad8   :  { %v1614_v22 = vadd.f32 %v1613_v21, %v2329_v31 }
0x2ada   :  { %1980 = vtanh.f32 %v1614_v22  ;;  %v1773_v25 = vmul.f32 -1.442695, %v1614_v22 }
0x2adc   :  { %1982 = vpow2.f32 %v1773_v25 }
0x2ae0   :  { %v1981_v24 = vpop.eup %1980 }
0x2ae1   :  { %1638 = vrot.lane.b32.xlu1 %v1981_v24, %s2024_s26 }
0x2ae2   :  { %v1983_v0 = vpop.eup %1982 }
0x2ae3   :  { %v1619_v20 = vadd.f32 1.0, %v1983_v0 }
0x2ae5   :  { %1984 = vrcp.f32 %v1619_v20  ;;  %v1631_v35 = vand.u32 2147483648, %v1619_v20  ;;  %vm1625_vm0 = vweird.f32 %v1619_v20  ;;  %v1629_v37 = vand.u32 2147483647, %v1619_v20 }
0x2ae7   :  { %v1632_v38 = vor.u32 1.1754944e-38, %v1631_v35  ;;  %vm1630_vm10 = vcmp.eq.f32.partialorder %v1629_v37, 8.507059e+37 }
0x2aeb   :  { %v1985_v26 = vpop.eup %1984 }
0x2aec   :  { %v1621_v23 = vmul.f32 %v1985_v26, %v1619_v20  ;;  %vm1626_vm7 = vweird.f32 %v1985_v26 }
0x2aed   :  { %vm1627_vm8 = vmor %vm1625_vm0, %vm1626_vm7 }
0x2aee   :  { %v1622_v27 = vsub.f32 1.0, %v1621_v23 }
0x2af0   :  { %v1623_v9 = vmul.f32 %v1985_v26, %v1622_v27 }
0x2af2   :  { %v1624_v33 = vadd.f32 %v1985_v26, %v1623_v9 }
0x2af4   :  { %v1628_v31 = vsel %vm1627_vm8, %v1985_v26, %v1624_v33 }
0x2af5   :  { %v1633_v39 = vsel %vm1630_vm10, %v1632_v38, %v1628_v31 }
0x2af6   :  { %v1636_v41 = vmul.f32 %v1633_v39, %v1543_v59 }
0x2b53   :  { %v1639_v10 = vpop.permute.xlu1 %1638 }
0x2b54   :  { %v1641_v40 = vmul.f32 %v1639_v10, %v1633_v39 }
0x2b56   :  { %1643 = vrot.lane.b32.xlu2 %v1641_v40, %s2025_s27 }
0x2b5e   :  { %1678 = vrot.lane.b32.xlu2 %v2393_v45, %s2039_s1 }
0x2b66   :  { %1687 = vrot.lane.b32.xlu2 %v2458_v1, %s2040_s13 }
0x2bb0   :  { %v1644_v42 = vpop.permute.xlu2 %1643 }
0x2bb1   :  { %v1646_v43 = vadd.f32 %v1644_v42, %v1636_v41 }
0x2bb3   :  { %1986 = vtanh.f32 %v1646_v43 }
0x2bb8   :  { %v1679_v47 = vpop.permute.xlu2 %1678 }
0x2bb9   :  { %v1987_v44 = vpop.eup %1986  ;;  %v1704_v48 = vsel %vm1703_vm11, %v2368_v58, %v1679_v47 }
0x2bba   :  { %1649 = vrot.lane.b32.xlu0 %v1987_v44, %s2025_s27  ;;  %s1726_s27 = sshll.u32 %s2522_s2, 4  ;;  %s1727_s27 = int_to_ptr.hbm [resolvable:$true] %s1726_s27 }
0x2bc2   :  { %1681 = vrot.lane.b32.xlu0 %v2416_v29, %s2041_s20 }
0x2bca   :  { %1690 = vrot.lane.b32.xlu0 %v2477_v32, %s2042_s21 }
0x2bd2   :  { %1700 = vrot.lane.b32.xlu0 %v2303_v14, %s2017_s12  ;;  %s2046_s12 = smov [#allocation2]  }
0x2c2c   :  { %v1650_v45 = vpop.permute.xlu0 %1649 }
0x2c2d   :  { %v1652_v34 = vmul.f32 %v1650_v45, %v1633_v39 }
0x2c2f   :  { %1654 = vrot.lane.b32.xlu1 %v1652_v34, %s2019_s14  ;;  %s1724_s14 = sshll.u32 %s2046_s12, 4  ;;  %s1725_s14 = int_to_ptr.vmem [resolvable:$true] %s1724_s14 }
0x2c34   :  { %v1682_v32 = vpop.permute.xlu0 %1681 }
0x2c35   :  { %v1706_v50 = vsel %vm1705_vm12, %v1704_v48, %v1682_v32 }
0x2c37   :  { %1684 = vrot.lane.b32.xlu1 %v2440_v63, %s2043_s22  ;;  %v1688_v63 = vpop.permute.xlu2 %1687 }
0x2c3c   :  { %v1691_v49 = vpop.permute.xlu0 %1690 }
0x2c3f   :  { %1693 = vrot.lane.b32.xlu1 %v1573_v3, %s2044_s23 }
0x2c44   :  { %v1701_v58 = vpop.permute.xlu0 %1700 }
0x2ca1   :  { %v1655_v1 = vpop.permute.xlu1 %1654 }
0x2ca2   :  { %1774 = vmatmul.msk.f32.vlgmr.msrb.gmra.mxu3 %vm934_vm9, %v1655_v1 }
0x2ca9   :  { %v1685_v14 = vpop.permute.xlu1 %1684 }
0x2caa   :  { %v1708_v51 = vsel %vm1707_vm13, %v1706_v50, %v1685_v14 }
0x2cab   :  { %v1709_v4 = vsel %vm162_vm15, %v1708_v51, %v1688_v63 }
0x2cb1   :  { %v1694_v12 = vpop.permute.xlu1 %1693 }
0x2d25   :  { %v1675_v46 = vpop.f32.mrf.mxu3 }
0x2d26   :  { %v1676_v29 = vadd.f32 %v1675_v46, %v2365_v57  ;;  %v1711_v57 = vsel %vm1710_vm14, %v1709_v4, %v1691_v49 }
0x2d27   :  { %v1713_v52 = vsel %vm1712_vm1, %v1711_v57, %v1694_v12 }
0x2d28   :  { %1697 = vrot.lane.b32.xlu2 %v1676_v29, %s2045_s24 }
0x2d82   :  { %v1698_v53 = vpop.permute.xlu2 %1697 }
0x2d83   :  { %v1715_v54 = vsel %vm1714_vm2, %v1713_v52, %v1698_v53 }
0x2d84   :  { %v1716_v17 = vsel %vm934_vm9, %v1715_v54, %v1701_v58 }
0x2d85   :  { %1718 = vst.msk [vmem:[#allocation2] sm:$0xff] %vm1717_vm3, %v1716_v17 }
0x2d86   :  { %1729 = dma.vmem_to_hbm [thread:$0]  %s1725_s14, 128, %s1727_s27, [#allocation3]  }
0x2d87   :  { %2014 = dma.done.wait [#allocation3], 128  }
0x2d88   :  { %2015 = vsyncadd [#allocation3], 4294967168 }
0x2d89   :  { %1734 = vsyncpa [#allocation3], 1 }

</bundles_post_ra>
